<compile_context>
chip_gen: v7x
topology: tpu7x:2x2x1
jax: 0.10.0
libtpu: 0.0.40
codegen_flags: <defaults>
</compile_context>

<pallas_src>
import functools

import jax
import jax.numpy as jnp
import numpy as np
from jax.experimental import pallas as pl
from jax.experimental.pallas import tpu as pltpu

BN_EPS = 1e-3
C_IN = 1792       # Block8 input/output channels
C_BR = 192        # per-branch channels
C_CAT = 2 * C_BR  # 384 = concat(branch0, branch1)


# ----------------------------------------------------------------------------
# Fused Block8 kernel: one grid step = nb full images.
# ----------------------------------------------------------------------------
def _block8_kernel(x_ref, w01_ref, b01_ref, wb_ref, bb_ref, wc_ref, bc_ref,
                   w2a_ref, w2b_ref, b2_ref, o_ref, *, scale, apply_relu):
    nb, hh, ww, c = x_ref.shape
    m = nb * hh * ww

    x = x_ref[...].reshape(m, c)                                # (m, 1792) bf16

    # Fused branch0 1x1 + branch1.0 1x1 convs (BN folded) + ReLU.
    y01 = jnp.dot(x, w01_ref[...], preferred_element_type=jnp.float32)
    y01 = jnp.maximum(y01 + b01_ref[...], 0.0)                  # (m, 384) f32

    x0 = y01[:, :C_BR].astype(jnp.bfloat16)                     # (m, 192)
    x1 = y01[:, C_BR:]                                          # (m, 192) f32

    def tap(s, w_ref, k):
        return jnp.dot(s.reshape(m, C_BR).astype(jnp.bfloat16), w_ref[k],
                       preferred_element_type=jnp.float32)

    # branch1.1 (1,3) conv, padding=(0,1): three shifted in-VMEM matmuls,
    # zero column at every row boundary.
    x1 = x1.reshape(nb * hh, ww, C_BR)
    zc = jnp.zeros((nb * hh, 1, C_BR), jnp.float32)
    prev = jnp.concatenate([zc, x1[:, :ww - 1, :]], axis=1)
    nxt = jnp.concatenate([x1[:, 1:, :], zc], axis=1)
    acc = tap(prev, wb_ref, 0) + tap(x1, wb_ref, 1) + tap(nxt, wb_ref, 2)
    x1 = jnp.maximum(acc + bb_ref[...], 0.0)                    # (m, 192) f32

    # branch1.2 (3,1) conv, padding=(1,0): zero row at every image boundary.
    x1 = x1.reshape(nb, hh, ww, C_BR)
    zr = jnp.zeros((nb, 1, ww, C_BR), jnp.float32)
    prev = jnp.concatenate([zr, x1[:, :hh - 1]], axis=1)
    nxt = jnp.concatenate([x1[:, 1:], zr], axis=1)
    acc = tap(prev, wc_ref, 0) + tap(x1, wc_ref, 1) + tap(nxt, wc_ref, 2)
    x1 = jnp.maximum(acc + bc_ref[...], 0.0).astype(jnp.bfloat16)  # (m, 192)

    # Final 1x1 conv 384 -> 1792 on the implicit concat [x0 | x1].
    out = jnp.dot(x0, w2a_ref[...], preferred_element_type=jnp.float32)
    out = out + jnp.dot(x1, w2b_ref[...], preferred_element_type=jnp.float32)
    out = (out + b2_ref[...]) * scale + x.astype(jnp.float32)   # residual
    if apply_relu:
        out = jnp.maximum(out, 0.0)
    o_ref[...] = out.reshape(nb, hh, ww, c).astype(o_ref.dtype)


# ----------------------------------------------------------------------------
# Weight layout conversion (PyTorch OIHW -> matmul) and BN folding.
# ----------------------------------------------------------------------------
def _conv1x1_to_mat(w):            # (cout, cin, 1, 1) -> (cin, cout)
    return jnp.transpose(w[:, :, 0, 0], (1, 0))


def _conv1x3_to_taps(w):           # (cout, cin, 1, 3) -> (3, cin, cout), tap kw
    return jnp.transpose(w[:, :, 0, :], (2, 1, 0))


def _conv3x1_to_taps(w):           # (cout, cin, 3, 1) -> (3, cin, cout), tap kh
    return jnp.transpose(w[:, :, :, 0], (2, 1, 0))


def _fold_bn(w_mat, bn_params):
    """Fold eval-mode BN into the conv (scale the out-channel / last axis)."""
    gamma, beta, mean, var = bn_params
    inv = gamma / jnp.sqrt(var + BN_EPS)
    return w_mat * inv, beta - mean * inv


def _pick_batch_tile(n, hw, row_cap=256):
    """Largest batch tile nb | n with nb*hw <= row_cap, keeping >=2 grid steps
    when n >= 2 (pipelining / megacore)."""
    limit = n if n == 1 else n // 2
    best = 1
    for nb in range(1, limit + 1):
        if n % nb == 0 and nb * hw <= row_cap:
            best = nb
    return best


# ----------------------------------------------------------------------------
# Block8 forward
# ----------------------------------------------------------------------------
def block8_forward(x_nchw, params, *, scale=1.0, noReLU=False):
    N, C, H, W = x_nchw.shape
    assert C == C_IN, (C, C_IN)

    # TODO(synk): in a full network keep activations NHWC across blocks so this
    # boundary transpose (an HBM round trip inside XLA) disappears.
    x_nhwc = jnp.transpose(x_nchw, (0, 2, 3, 1)).astype(jnp.bfloat16)

    # ---- fold BN and pack weights (bf16 for the MXU; biases stay f32) ----
    w0, b0 = _fold_bn(_conv1x1_to_mat(params["b0_w"]), params["b0_bn"])
    w1a, b1a = _fold_bn(_conv1x1_to_mat(params["b1a_w"]), params["b1a_bn"])
    w01 = jnp.concatenate([w0, w1a], axis=1).astype(jnp.bfloat16)   # (1792, 384)
    b01 = jnp.concatenate([b0, b1a]).reshape(1, C_CAT)              # (1, 384) f32

    wb, bb = _fold_bn(_conv1x3_to_taps(params["b1b_w"]), params["b1b_bn"])
    wb = wb.astype(jnp.bfloat16)                                    # (3, 192, 192)
    bb = bb.reshape(1, C_BR)

    wc, bc = _fold_bn(_conv3x1_to_taps(params["b1c_w"]), params["b1c_bn"])
    wc = wc.astype(jnp.bfloat16)                                    # (3, 192, 192)
    bc = bc.reshape(1, C_BR)

    w2 = jnp.transpose(params["conv2_w"][:, :, 0, 0], (1, 0))       # (384, 1792)
    w2a = w2[:C_BR].astype(jnp.bfloat16)                            # x0 half
    w2b = w2[C_BR:].astype(jnp.bfloat16)                            # x1 half
    b2 = params["conv2_b"].reshape(1, C)                            # (1, 1792) f32

    # TODO(synk): for very large H*W (plane + weights exceeding VMEM) add a
    # spatially tiled path with halo exchange; Block8 runs at tiny spatial
    # sizes (3x3 / 8x8), so whole-plane-per-step is the fast path.
    nb = _pick_batch_tile(N, H * W)

    out_nhwc = pl.pallas_call(
        functools.partial(_block8_kernel, scale=float(scale),
                          apply_relu=not noReLU),
        out_shape=jax.ShapeDtypeStruct((N, H, W, C), jnp.float32),
        grid_spec=pltpu.PrefetchScalarGridSpec(
            num_scalar_prefetch=0,
            grid=(N // nb,),
            in_specs=[
                pl.BlockSpec((nb, H, W, C), lambda n: (n, 0, 0, 0)),
                pl.BlockSpec((C, C_CAT), lambda n: (0, 0)),
                pl.BlockSpec((1, C_CAT), lambda n: (0, 0)),
                pl.BlockSpec((3, C_BR, C_BR), lambda n: (0, 0, 0)),
                pl.BlockSpec((1, C_BR), lambda n: (0, 0)),
                pl.BlockSpec((3, C_BR, C_BR), lambda n: (0, 0, 0)),
                pl.BlockSpec((1, C_BR), lambda n: (0, 0)),
                pl.BlockSpec((C_BR, C), lambda n: (0, 0)),
                pl.BlockSpec((C_BR, C), lambda n: (0, 0)),
                pl.BlockSpec((1, C), lambda n: (0, 0)),
            ],
            out_specs=pl.BlockSpec((nb, H, W, C), lambda n: (n, 0, 0, 0)),
        ),
        compiler_params=pltpu.CompilerParams(dimension_semantics=("parallel",)),
    )(x_nhwc, w01, b01, wb, bb, wc, bc, w2a, w2b, b2)

    return jnp.transpose(out_nhwc, (0, 3, 1, 2))


# ----------------------------------------------------------------------------
# Deterministic synthetic parameters (PyTorch shapes)
# ----------------------------------------------------------------------------
def init_params(key):
    ks = jax.random.split(key, 10)

    def conv_w(k, shape):
        return 0.05 * jax.random.normal(k, shape, jnp.float32)

    def bn(k, c):
        k1, k2, k3, k4 = jax.random.split(k, 4)
        gamma = 1.0 + 0.1 * jax.random.normal(k1, (c,), jnp.float32)
        beta = 0.1 * jax.random.normal(k2, (c,), jnp.float32)
        mean = 0.1 * jax.random.normal(k3, (c,), jnp.float32)
        var = jax.random.uniform(k4, (c,), jnp.float32, minval=0.5, maxval=1.5)
        return (gamma, beta, mean, var)

    return dict(
        b0_w=conv_w(ks[0], (192, 1792, 1, 1)), b0_bn=bn(ks[1], 192),
        b1a_w=conv_w(ks[2], (192, 1792, 1, 1)), b1a_bn=bn(ks[3], 192),
        b1b_w=conv_w(ks[4], (192, 192, 1, 3)), b1b_bn=bn(ks[5], 192),
        b1c_w=conv_w(ks[6], (192, 192, 3, 1)), b1c_bn=bn(ks[7], 192),
        conv2_w=conv_w(ks[8], (1792, 384, 1, 1)),
        conv2_b=0.05 * jax.random.normal(ks[9], (1792,), jnp.float32),
    )


# ----------------------------------------------------------------------------
# Pure-JAX f32 reference (NCHW conv, BN eval semantics) for verification
# ----------------------------------------------------------------------------
def reference(x, params, scale, noReLU):
    prec = jax.lax.Precision.HIGHEST

    def basic(x, w, bnp, pad):
        y = jax.lax.conv_general_dilated(
            x, w, (1, 1), pad, dimension_numbers=("NCHW", "OIHW", "NCHW"),
            precision=prec)
        g, b, m, v = bnp
        inv = g / jnp.sqrt(v + BN_EPS)
        y = y * inv[None, :, None, None] + (b - m * inv)[None, :, None, None]
        return jnp.maximum(y, 0.0)

    x0 = basic(x, params["b0_w"], params["b0_bn"], [(0, 0), (0, 0)])
    x1 = basic(x, params["b1a_w"], params["b1a_bn"], [(0, 0), (0, 0)])
    x1 = basic(x1, params["b1b_w"], params["b1b_bn"], [(0, 0), (1, 1)])
    x1 = basic(x1, params["b1c_w"], params["b1c_bn"], [(1, 1), (0, 0)])
    cat = jnp.concatenate([x0, x1], axis=1)
    out = jax.lax.conv_general_dilated(
        cat, params["conv2_w"], (1, 1), [(0, 0), (0, 0)],
        dimension_numbers=("NCHW", "OIHW", "NCHW"), precision=prec)
    out = out + params["conv2_b"][None, :, None, None]
    out = out * scale + x
    if not noReLU:
        out = jnp.maximum(out, 0.0)
    return out


if __name__ == "__main__":
    key = jax.random.PRNGKey(0)
    kx, kp = jax.random.split(key)

    # Channel counts are fixed by the module (1792 in/out); keep batch and
    # spatial dims small: N=2, H=W=8 -> 2 grid steps of one image each.
    x = jax.random.normal(kx, (2, C_IN, 8, 8), jnp.float32)
    params = init_params(kp)
    scale, noReLU = 1.0, False

    fwd = jax.jit(functools.partial(block8_forward, scale=scale, noReLU=noReLU))
    out = jax.block_until_ready(fwd(x, params))

    # bf16 matmuls (f32 accumulation, ~1800-term contractions, 5 conv layers)
    # compared against an f32 HIGHEST-precision reference -> bf16-sized tolerances.
    ref = reference(x, params, scale, noReLU)
    np.testing.assert_allclose(np.asarray(out), np.asarray(ref),
                               rtol=3e-2, atol=1.5e-1)
    print("KERNEL_OK")
</pallas_src>

<mosaic_0001>
module attributes {stable_mosaic.version = 11 : i64} {
  func.func @_block8_kernel(%arg0: i32, %arg1: memref<1x8x8x1792xbf16, #tpu.memory_space<vmem>>, %arg2: memref<1792x384xbf16, #tpu.memory_space<vmem>>, %arg3: memref<1x384xf32, #tpu.memory_space<vmem>>, %arg4: memref<3x192x192xbf16, #tpu.memory_space<vmem>>, %arg5: memref<1x192xf32, #tpu.memory_space<vmem>>, %arg6: memref<3x192x192xbf16, #tpu.memory_space<vmem>>, %arg7: memref<1x192xf32, #tpu.memory_space<vmem>>, %arg8: memref<192x1792xbf16, #tpu.memory_space<vmem>>, %arg9: memref<192x1792xbf16, #tpu.memory_space<vmem>>, %arg10: memref<1x1792xf32, #tpu.memory_space<vmem>>, %arg11: memref<1x8x8x1792xf32, #tpu.memory_space<vmem>>) attributes {dimension_semantics = [#tpu.dimension_semantics<parallel>], iteration_bounds = array<i64: 2>, scalar_prefetch = 0 : i64, scratch_operands = 0 : i64, tpu.core_type = #tpu.core_type<tc>, window_params = [{transform_indices = @transform_0, window_bounds = array<i64: 1, 8, 8, 1792>}, {pipeline_mode = #tpu.pipeline_mode<synchronous>, transform_indices = @transform_1, window_bounds = array<i64: 1792, 384>}, {pipeline_mode = #tpu.pipeline_mode<synchronous>, transform_indices = @transform_2, window_bounds = array<i64: 1, 384>}, {pipeline_mode = #tpu.pipeline_mode<synchronous>, transform_indices = @transform_3, window_bounds = array<i64: 3, 192, 192>}, {pipeline_mode = #tpu.pipeline_mode<synchronous>, transform_indices = @transform_4, window_bounds = array<i64: 1, 192>}, {pipeline_mode = #tpu.pipeline_mode<synchronous>, transform_indices = @transform_5, window_bounds = array<i64: 3, 192, 192>}, {pipeline_mode = #tpu.pipeline_mode<synchronous>, transform_indices = @transform_6, window_bounds = array<i64: 1, 192>}, {pipeline_mode = #tpu.pipeline_mode<synchronous>, transform_indices = @transform_7, window_bounds = array<i64: 192, 1792>}, {pipeline_mode = #tpu.pipeline_mode<synchronous>, transform_indices = @transform_8, window_bounds = array<i64: 192, 1792>}, {pipeline_mode = #tpu.pipeline_mode<synchronous>, transform_indices = @transform_9, window_bounds = array<i64: 1, 1792>}, {transform_indices = @transform_10, window_bounds = array<i64: 1, 8, 8, 1792>}]} {
    %c0 = arith.constant 0 : index
    %c0_0 = arith.constant 0 : index
    %c0_1 = arith.constant 0 : index
    %c0_2 = arith.constant 0 : index
    %0 = vector.load %arg1[%c0, %c0_0, %c0_1, %c0_2] : memref<1x8x8x1792xbf16, #tpu.memory_space<vmem>>, vector<1x8x8x1792xbf16>
    %1 = vector.shape_cast %0 : vector<1x8x8x1792xbf16> to vector<64x1792xbf16>
    %c0_3 = arith.constant 0 : index
    %c0_4 = arith.constant 0 : index
    %2 = vector.load %arg2[%c0_3, %c0_4] : memref<1792x384xbf16, #tpu.memory_space<vmem>>, vector<1792x384xbf16>
    %cst = arith.constant dense<0.000000e+00> : vector<64x384xf32>
    %3 = tpu.matmul %1, %2, %cst {dimension_numbers = #tpu.dot_dimension_numbers<[1], [0], [0], [1], [0, 0, 1, 1], [], []>} : vector<64x1792xbf16>, vector<1792x384xbf16>, vector<64x384xf32> -> vector<64x384xf32>
    %c0_5 = arith.constant 0 : index
    %c0_6 = arith.constant 0 : index
    %4 = vector.load %arg3[%c0_5, %c0_6] : memref<1x384xf32, #tpu.memory_space<vmem>>, vector<1x384xf32>
    %5 = vector.broadcast %4 : vector<1x384xf32> to vector<64x384xf32>
    %6 = arith.addf %3, %5 : vector<64x384xf32>
    %cst_7 = arith.constant 0.000000e+00 : f32
    %7 = vector.broadcast %cst_7 : f32 to vector<64x384xf32>
    %8 = arith.maximumf %6, %7 : vector<64x384xf32>
    %9 = vector.extract_strided_slice %8 {offsets = [0, 0], sizes = [64, 192], strides = [1, 1]} : vector<64x384xf32> to vector<64x192xf32>
    %10 = arith.truncf %9 : vector<64x192xf32> to vector<64x192xbf16>
    %11 = vector.extract_strided_slice %8 {offsets = [0, 192], sizes = [64, 192], strides = [1, 1]} : vector<64x384xf32> to vector<64x192xf32>
    %12 = vector.shape_cast %11 : vector<64x192xf32> to vector<8x8x192xf32>
    %cst_8 = arith.constant 0.000000e+00 : f32
    %13 = vector.broadcast %cst_8 : f32 to vector<8x1x192xf32>
    %14 = vector.extract_strided_slice %12 {offsets = [0, 0, 0], sizes = [8, 7, 192], strides = [1, 1, 1]} : vector<8x8x192xf32> to vector<8x7x192xf32>
    %15 = tpu.concatenate %13, %14 in 1 : vector<8x1x192xf32>, vector<8x7x192xf32> -> vector<8x8x192xf32>
    %16 = vector.extract_strided_slice %12 {offsets = [0, 1, 0], sizes = [8, 7, 192], strides = [1, 1, 1]} : vector<8x8x192xf32> to vector<8x7x192xf32>
    %17 = tpu.concatenate %16, %13 in 1 : vector<8x7x192xf32>, vector<8x1x192xf32> -> vector<8x8x192xf32>
    %18 = vector.shape_cast %15 : vector<8x8x192xf32> to vector<64x192xf32>
    %19 = arith.truncf %18 : vector<64x192xf32> to vector<64x192xbf16>
    %c0_9 = arith.constant 0 : index
    %c0_10 = arith.constant 0 : index
    %c0_11 = arith.constant 0 : index
    %20 = vector.load %arg4[%c0_9, %c0_10, %c0_11] : memref<3x192x192xbf16, #tpu.memory_space<vmem>>, vector<1x192x192xbf16>
    %21 = vector.shape_cast %20 : vector<1x192x192xbf16> to vector<192x192xbf16>
    %cst_12 = arith.constant dense<0.000000e+00> : vector<64x192xf32>
    %22 = tpu.matmul %19, %21, %cst_12 {dimension_numbers = #tpu.dot_dimension_numbers<[1], [0], [0], [1], [0, 0, 1, 1], [], []>} : vector<64x192xbf16>, vector<192x192xbf16>, vector<64x192xf32> -> vector<64x192xf32>
    %23 = vector.shape_cast %12 : vector<8x8x192xf32> to vector<64x192xf32>
    %24 = arith.truncf %23 : vector<64x192xf32> to vector<64x192xbf16>
    %c1 = arith.constant 1 : index
    %c0_13 = arith.constant 0 : index
    %c0_14 = arith.constant 0 : index
    %25 = vector.load %arg4[%c1, %c0_13, %c0_14] : memref<3x192x192xbf16, #tpu.memory_space<vmem>>, vector<1x192x192xbf16>
    %26 = vector.shape_cast %25 : vector<1x192x192xbf16> to vector<192x192xbf16>
    %cst_15 = arith.constant dense<0.000000e+00> : vector<64x192xf32>
    %27 = tpu.matmul %24, %26, %cst_15 {dimension_numbers = #tpu.dot_dimension_numbers<[1], [0], [0], [1], [0, 0, 1, 1], [], []>} : vector<64x192xbf16>, vector<192x192xbf16>, vector<64x192xf32> -> vector<64x192xf32>
    %28 = arith.addf %22, %27 : vector<64x192xf32>
    %29 = vector.shape_cast %17 : vector<8x8x192xf32> to vector<64x192xf32>
    %30 = arith.truncf %29 : vector<64x192xf32> to vector<64x192xbf16>
    %c2 = arith.constant 2 : index
    %c0_16 = arith.constant 0 : index
    %c0_17 = arith.constant 0 : index
    %31 = vector.load %arg4[%c2, %c0_16, %c0_17] : memref<3x192x192xbf16, #tpu.memory_space<vmem>>, vector<1x192x192xbf16>
    %32 = vector.shape_cast %31 : vector<1x192x192xbf16> to vector<192x192xbf16>
    %cst_18 = arith.constant dense<0.000000e+00> : vector<64x192xf32>
    %33 = tpu.matmul %30, %32, %cst_18 {dimension_numbers = #tpu.dot_dimension_numbers<[1], [0], [0], [1], [0, 0, 1, 1], [], []>} : vector<64x192xbf16>, vector<192x192xbf16>, vector<64x192xf32> -> vector<64x192xf32>
    %34 = arith.addf %28, %33 : vector<64x192xf32>
    %c0_19 = arith.constant 0 : index
    %c0_20 = arith.constant 0 : index
    %35 = vector.load %arg5[%c0_19, %c0_20] : memref<1x192xf32, #tpu.memory_space<vmem>>, vector<1x192xf32>
    %36 = vector.broadcast %35 : vector<1x192xf32> to vector<64x192xf32>
    %37 = arith.addf %34, %36 : vector<64x192xf32>
    %cst_21 = arith.constant 0.000000e+00 : f32
    %38 = vector.broadcast %cst_21 : f32 to vector<64x192xf32>
    %39 = arith.maximumf %37, %38 : vector<64x192xf32>
    %40 = vector.shape_cast %39 : vector<64x192xf32> to vector<1x8x8x192xf32>
    %cst_22 = arith.constant 0.000000e+00 : f32
    %41 = vector.broadcast %cst_22 : f32 to vector<1x1x8x192xf32>
    %42 = vector.extract_strided_slice %40 {offsets = [0, 0, 0, 0], sizes = [1, 7, 8, 192], strides = [1, 1, 1, 1]} : vector<1x8x8x192xf32> to vector<1x7x8x192xf32>
    %43 = tpu.concatenate %41, %42 in 1 : vector<1x1x8x192xf32>, vector<1x7x8x192xf32> -> vector<1x8x8x192xf32>
    %44 = vector.extract_strided_slice %40 {offsets = [0, 1, 0, 0], sizes = [1, 7, 8, 192], strides = [1, 1, 1, 1]} : vector<1x8x8x192xf32> to vector<1x7x8x192xf32>
    %45 = tpu.concatenate %44, %41 in 1 : vector<1x7x8x192xf32>, vector<1x1x8x192xf32> -> vector<1x8x8x192xf32>
    %46 = vector.shape_cast %43 : vector<1x8x8x192xf32> to vector<64x192xf32>
    %47 = arith.truncf %46 : vector<64x192xf32> to vector<64x192xbf16>
    %c0_23 = arith.constant 0 : index
    %c0_24 = arith.constant 0 : index
    %c0_25 = arith.constant 0 : index
    %48 = vector.load %arg6[%c0_23, %c0_24, %c0_25] : memref<3x192x192xbf16, #tpu.memory_space<vmem>>, vector<1x192x192xbf16>
    %49 = vector.shape_cast %48 : vector<1x192x192xbf16> to vector<192x192xbf16>
    %cst_26 = arith.constant dense<0.000000e+00> : vector<64x192xf32>
    %50 = tpu.matmul %47, %49, %cst_26 {dimension_numbers = #tpu.dot_dimension_numbers<[1], [0], [0], [1], [0, 0, 1, 1], [], []>} : vector<64x192xbf16>, vector<192x192xbf16>, vector<64x192xf32> -> vector<64x192xf32>
    %51 = vector.shape_cast %40 : vector<1x8x8x192xf32> to vector<64x192xf32>
    %52 = arith.truncf %51 : vector<64x192xf32> to vector<64x192xbf16>
    %c1_27 = arith.constant 1 : index
    %c0_28 = arith.constant 0 : index
    %c0_29 = arith.constant 0 : index
    %53 = vector.load %arg6[%c1_27, %c0_28, %c0_29] : memref<3x192x192xbf16, #tpu.memory_space<vmem>>, vector<1x192x192xbf16>
    %54 = vector.shape_cast %53 : vector<1x192x192xbf16> to vector<192x192xbf16>
    %cst_30 = arith.constant dense<0.000000e+00> : vector<64x192xf32>
    %55 = tpu.matmul %52, %54, %cst_30 {dimension_numbers = #tpu.dot_dimension_numbers<[1], [0], [0], [1], [0, 0, 1, 1], [], []>} : vector<64x192xbf16>, vector<192x192xbf16>, vector<64x192xf32> -> vector<64x192xf32>
    %56 = arith.addf %50, %55 : vector<64x192xf32>
    %57 = vector.shape_cast %45 : vector<1x8x8x192xf32> to vector<64x192xf32>
    %58 = arith.truncf %57 : vector<64x192xf32> to vector<64x192xbf16>
    %c2_31 = arith.constant 2 : index
    %c0_32 = arith.constant 0 : index
    %c0_33 = arith.constant 0 : index
    %59 = vector.load %arg6[%c2_31, %c0_32, %c0_33] : memref<3x192x192xbf16, #tpu.memory_space<vmem>>, vector<1x192x192xbf16>
    %60 = vector.shape_cast %59 : vector<1x192x192xbf16> to vector<192x192xbf16>
    %cst_34 = arith.constant dense<0.000000e+00> : vector<64x192xf32>
    %61 = tpu.matmul %58, %60, %cst_34 {dimension_numbers = #tpu.dot_dimension_numbers<[1], [0], [0], [1], [0, 0, 1, 1], [], []>} : vector<64x192xbf16>, vector<192x192xbf16>, vector<64x192xf32> -> vector<64x192xf32>
    %62 = arith.addf %56, %61 : vector<64x192xf32>
    %c0_35 = arith.constant 0 : index
    %c0_36 = arith.constant 0 : index
    %63 = vector.load %arg7[%c0_35, %c0_36] : memref<1x192xf32, #tpu.memory_space<vmem>>, vector<1x192xf32>
    %64 = vector.broadcast %63 : vector<1x192xf32> to vector<64x192xf32>
    %65 = arith.addf %62, %64 : vector<64x192xf32>
    %cst_37 = arith.constant 0.000000e+00 : f32
    %66 = vector.broadcast %cst_37 : f32 to vector<64x192xf32>
    %67 = arith.maximumf %65, %66 : vector<64x192xf32>
    %68 = arith.truncf %67 : vector<64x192xf32> to vector<64x192xbf16>
    %c0_38 = arith.constant 0 : index
    %c0_39 = arith.constant 0 : index
    %69 = vector.load %arg8[%c0_38, %c0_39] : memref<192x1792xbf16, #tpu.memory_space<vmem>>, vector<192x1792xbf16>
    %cst_40 = arith.constant dense<0.000000e+00> : vector<64x1792xf32>
    %70 = tpu.matmul %10, %69, %cst_40 {dimension_numbers = #tpu.dot_dimension_numbers<[1], [0], [0], [1], [0, 0, 1, 1], [], []>} : vector<64x192xbf16>, vector<192x1792xbf16>, vector<64x1792xf32> -> vector<64x1792xf32>
    %c0_41 = arith.constant 0 : index
    %c0_42 = arith.constant 0 : index
    %71 = vector.load %arg9[%c0_41, %c0_42] : memref<192x1792xbf16, #tpu.memory_space<vmem>>, vector<192x1792xbf16>
    %cst_43 = arith.constant dense<0.000000e+00> : vector<64x1792xf32>
    %72 = tpu.matmul %68, %71, %cst_43 {dimension_numbers = #tpu.dot_dimension_numbers<[1], [0], [0], [1], [0, 0, 1, 1], [], []>} : vector<64x192xbf16>, vector<192x1792xbf16>, vector<64x1792xf32> -> vector<64x1792xf32>
    %73 = arith.addf %70, %72 : vector<64x1792xf32>
    %c0_44 = arith.constant 0 : index
    %c0_45 = arith.constant 0 : index
    %74 = vector.load %arg10[%c0_44, %c0_45] : memref<1x1792xf32, #tpu.memory_space<vmem>>, vector<1x1792xf32>
    %75 = vector.broadcast %74 : vector<1x1792xf32> to vector<64x1792xf32>
    %76 = arith.addf %73, %75 : vector<64x1792xf32>
    %cst_46 = arith.constant 1.000000e+00 : f32
    %77 = vector.broadcast %cst_46 : f32 to vector<64x1792xf32>
    %78 = arith.mulf %76, %77 : vector<64x1792xf32>
    %79 = arith.extf %1 : vector<64x1792xbf16> to vector<64x1792xf32>
    %80 = arith.addf %78, %79 : vector<64x1792xf32>
    %cst_47 = arith.constant 0.000000e+00 : f32
    %81 = vector.broadcast %cst_47 : f32 to vector<64x1792xf32>
    %82 = arith.maximumf %80, %81 : vector<64x1792xf32>
    %83 = vector.shape_cast %82 : vector<64x1792xf32> to vector<1x8x8x1792xf32>
    %c0_48 = arith.constant 0 : index
    %c0_49 = arith.constant 0 : index
    %c0_50 = arith.constant 0 : index
    %c0_51 = arith.constant 0 : index
    %84 = vector.load %arg11[%c0_48, %c0_49, %c0_50, %c0_51] : memref<1x8x8x1792xf32, #tpu.memory_space<vmem>>, vector<1x8x8x1792xf32>
    tpu.vector_store %arg11[%c0_48, %c0_49, %c0_50, %c0_51], %83 {strides = array<i32>} : memref<1x8x8x1792xf32, #tpu.memory_space<vmem>>, vector<1x8x8x1792xf32>,
    return
  }
  func.func @transform_0(%arg0: i32) -> (i32, i32, i32, i32) {
    %c0_i32 = arith.constant 0 : i32
    %c0_i32_0 = arith.constant 0 : i32
    %c0_i32_1 = arith.constant 0 : i32
    %c0_i32_2 = arith.constant 0 : i32
    return %arg0, %c0_i32, %c0_i32_0, %c0_i32_1 : i32, i32, i32, i32
  }
  func.func @transform_1(%arg0: i32) -> (i32, i32) {
    %c0_i32 = arith.constant 0 : i32
    %c0_i32_0 = arith.constant 0 : i32
    %c0_i32_1 = arith.constant 0 : i32
    return %c0_i32, %c0_i32_0 : i32, i32
  }
  func.func @transform_2(%arg0: i32) -> (i32, i32) {
    %c0_i32 = arith.constant 0 : i32
    %c0_i32_0 = arith.constant 0 : i32
    %c0_i32_1 = arith.constant 0 : i32
    return %c0_i32, %c0_i32_0 : i32, i32
  }
  func.func @transform_3(%arg0: i32) -> (i32, i32, i32) {
    %c0_i32 = arith.constant 0 : i32
    %c0_i32_0 = arith.constant 0 : i32
    %c0_i32_1 = arith.constant 0 : i32
    %c0_i32_2 = arith.constant 0 : i32
    return %c0_i32, %c0_i32_0, %c0_i32_1 : i32, i32, i32
  }
  func.func @transform_4(%arg0: i32) -> (i32, i32) {
    %c0_i32 = arith.constant 0 : i32
    %c0_i32_0 = arith.constant 0 : i32
    %c0_i32_1 = arith.constant 0 : i32
    return %c0_i32, %c0_i32_0 : i32, i32
  }
  func.func @transform_5(%arg0: i32) -> (i32, i32, i32) {
    %c0_i32 = arith.constant 0 : i32
    %c0_i32_0 = arith.constant 0 : i32
    %c0_i32_1 = arith.constant 0 : i32
    %c0_i32_2 = arith.constant 0 : i32
    return %c0_i32, %c0_i32_0, %c0_i32_1 : i32, i32, i32
  }
  func.func @transform_6(%arg0: i32) -> (i32, i32) {
    %c0_i32 = arith.constant 0 : i32
    %c0_i32_0 = arith.constant 0 : i32
    %c0_i32_1 = arith.constant 0 : i32
    return %c0_i32, %c0_i32_0 : i32, i32
  }
  func.func @transform_7(%arg0: i32) -> (i32, i32) {
    %c0_i32 = arith.constant 0 : i32
    %c0_i32_0 = arith.constant 0 : i32
    %c0_i32_1 = arith.constant 0 : i32
    return %c0_i32, %c0_i32_0 : i32, i32
  }
  func.func @transform_8(%arg0: i32) -> (i32, i32) {
    %c0_i32 = arith.constant 0 : i32
    %c0_i32_0 = arith.constant 0 : i32
    %c0_i32_1 = arith.constant 0 : i32
    return %c0_i32, %c0_i32_0 : i32, i32
  }
  func.func @transform_9(%arg0: i32) -> (i32, i32) {
    %c0_i32 = arith.constant 0 : i32
    %c0_i32_0 = arith.constant 0 : i32
    %c0_i32_1 = arith.constant 0 : i32
    return %c0_i32, %c0_i32_0 : i32, i32
  }
  func.func @transform_10(%arg0: i32) -> (i32, i32, i32, i32) {
    %c0_i32 = arith.constant 0 : i32
    %c0_i32_0 = arith.constant 0 : i32
    %c0_i32_1 = arith.constant 0 : i32
    %c0_i32_2 = arith.constant 0 : i32
    return %arg0, %c0_i32, %c0_i32_0, %c0_i32_1 : i32, i32, i32, i32
  }
}

</mosaic_0001>

<bundles_post_ra>
// kernel: block8_forward.1
= control target key start
LH: loop header
LB: loop body
LE: loop exit
PB: predicated region body
PF: predicated region fallthrough
CT: control target
= control target key end

     0   :  { %15 = vsyncpa [#allocation3], 0  ;;  %s16455_s0 = inlined_call_operand.vmem [shape: bf16[2,8,8,1792], index: 0, kind: input, shape index: {}]   ;;  %s16456_s1 = inlined_call_operand.vmem [shape: bf16[1792,384], index: 1, kind: input, shape index: {}]   ;;  %s16457_s2 = inlined_call_operand.vmem [shape: f32[1,384], index: 2, kind: input, shape index: {}]   ;;  %s16458_s3 = inlined_call_operand.vmem [shape: bf16[3,192,192], index: 3, kind: input, shape index: {}]   ;;  %s16459_s4 = inlined_call_operand.vmem [shape: f32[1,192], index: 4, kind: input, shape index: {}]   ;;  %s16460_s5 = inlined_call_operand.vmem [shape: bf16[3,192,192], index: 5, kind: input, shape index: {}]   ;;  %s16461_s6 = inlined_call_operand.vmem [shape: f32[1,192], index: 6, kind: input, shape index: {}]   ;;  %s16462_s7 = inlined_call_operand.vmem [shape: bf16[192,1792], index: 7, kind: input, shape index: {}]   ;;  %s16463_s8 = inlined_call_operand.vmem [shape: bf16[192,1792], index: 8, kind: input, shape index: {}]   ;;  %s16464_s9 = inlined_call_operand.vmem [shape: f32[1,1792], index: 9, kind: input, shape index: {}]   ;;  %s16465_s10 = inlined_call_operand.hbm [shape: f32[2,8,8,1792], index: 10, kind: output, shape index: {}]  }
   0x1   :  { %17 = vsyncpa [#allocation3 + $0x1], 0  ;;  %s12612_s13 = smov 0   ;;  %s12614_s14 = smov 0  }
   0x2   :  { %s12616_s15 = smov 0   ;;  %s12618_s16 = smov 0  }
   0x3 LB: > { %s12633_s17 = sadd.s32 4294967295, %s12550_s16   ;;  %s9477_s18 = sadd.s32 4294967294, %s12550_s16   ;;  %s12550_s16 = sphi %s12618_s16, %s16475_s16   ;;  %s12546_s15 = sphi %s12616_s15, %s16474_s15   ;;  %s12542_s14 = sphi %s12614_s14, %s16473_s14   ;;  %s12538_s13 = sphi %s12612_s13, %s16472_s13  }
   0x4   : > { %s12637_s19 = sadd.s32 1, %s12550_s16   ;;  %s245_s20 = sadd.s32 1, %s12546_s15 }
   0x5   : > { %s242_s21 = ssub.s32 %s12550_s16, %s12637_s19  ;;  %p255_p0 = scmp.ne.s32.totalorder %s12546_s15, %s12542_s14 }
   0x6   : > { %p243_p1 = scmp.eq.s32.totalorder %s242_s21, 0  ;;  %p256_p2 = scmp.eq.s32.totalorder %s12633_s17, 1 }
   0x7   : > { %p261_p3 = scmp.ne.s32.totalorder %s12542_s14, %s12538_s13  ;;  %p262_p4 = scmp.eq.s32.totalorder %s9477_s18, 1 }
   0x8   : > { %s12648_s22 = scalar_select %p243_p1, %s12546_s15, %s245_s20  }
   0x9   : > { %p12650_p5 = por %p256_p2, %p255_p0  ;;  %p12654_p6 = por %p262_p4, %p261_p3 }
   0xa   : > { %16466 = sst [smem:[#allocation5_spill]] %s12648_s22  ;;  %p9480_p7 = scmp.ge.s32.totalorder %s12550_s16, 1 }
   0xb   : > { %p315_p8 = scmp.lt.s32.totalorder %s12550_s16, 3 }
   0xd   : > { %p316_p9 = pnand %p9480_p7, %p315_p8 }
   0xe   : > { %v11207_v0 = vld [vmem:[%s16456_s1 + $0x4] ss:$12 sps:$4 sm:$0xff] (!%p316_p9)   ;;  %v11209_v1 = vld [vmem:[%s16456_s1] ss:$12 sps:$4 sm:$0xff] (!%p316_p9)   ;;  %v11210_v2 = vld [vmem:[%s16456_s1 + $0x1c] ss:$12 sps:$4 sm:$0xff] (!%p316_p9)  }
   0xf   : > { %319 = sbr.rel (%p316_p9) target bundleno = 2040 (0x7f8), region = 60  ;;  %2952 = vmatprep.subr.bf16.mxu0 (!%p316_p9), %v11207_v0  ;;  %v11212_v3 = vld [vmem:[%s16456_s1 + $0x18] ss:$12 sps:$4 sm:$0xff] (!%p316_p9)   ;;  %v11213_v4 = vld [vmem:[%s16456_s1 + $0x34] ss:$12 sps:$4 sm:$0xff] (!%p316_p9)   ;;  %p353_p10 = scmp.lt.s32.totalorder (!%p316_p9), %s12633_s17, 1 }
  0x10   : > { %2953 = vmatpush1.bf16.msra.mxu0 (!%p316_p9), %v11209_v1  ;;  %v11215_v5 = vld [vmem:[%s16456_s1 + $0x30] ss:$12 sps:$4 sm:$0xff] (!%p316_p9)   ;;  %v11216_v6 = vld [vmem:[%s16456_s1 + $0x4c] ss:$12 sps:$4 sm:$0xff] (!%p316_p9)   ;;  %v11218_v7 = vld [vmem:[%s16456_s1 + $0x48] ss:$12 sps:$4 sm:$0xff] (!%p316_p9)  }
  0x11   : > { %2954 = vmatprep.subr.bf16.mxu0 (!%p316_p9), %v11210_v2  ;;  %v11219_v8 = vld [vmem:[%s16456_s1 + $0x64] ss:$12 sps:$4 sm:$0xff] (!%p316_p9)   ;;  %v11221_v9 = vld [vmem:[%s16456_s1 + $0x60] ss:$12 sps:$4 sm:$0xff] (!%p316_p9)   ;;  %v11240_v10 = vld [vmem:[%s16456_s1 + $0xc8] ss:$12 sps:$4 sm:$0xff] (!%p316_p9)  }
  0x12   : > { %v11222_v11 = vld [vmem:[%s16456_s1 + $0x7c] ss:$12 sps:$4 sm:$0xff] (!%p316_p9)   ;;  %v11224_v12 = vld [vmem:[%s16456_s1 + $0x78] ss:$12 sps:$4 sm:$0xff] (!%p316_p9)   ;;  %10553 = vmatprep.subr.bf16.mxu1 (!%p316_p9), %v11240_v10  ;;  %v11245_v14 = vld [vmem:[%s16456_s1 + $0xe0] ss:$12 sps:$4 sm:$0xff] (!%p316_p9)  }
  0x13   : > { %v11243_v13 = vld [vmem:[%s16456_s1 + $0x8] ss:$12 sps:$4 sm:$0xff] (!%p316_p9)   ;;  %v11248_v16 = vld [vmem:[%s16456_s1 + $0x20] ss:$12 sps:$4 sm:$0xff] (!%p316_p9)   ;;  %v11250_v17 = vld [vmem:[%s16456_s1 + $0xf8] ss:$12 sps:$4 sm:$0xff] (!%p316_p9)  }
  0x14   : > { %2955 = vmatpush1.bf16.msra.mxu0 (!%p316_p9), %v11212_v3  ;;  %v11225_v15 = vld [vmem:[%s16456_s1 + $0x94] ss:$12 sps:$4 sm:$0xff] (!%p316_p9)   ;;  %10554 = vmatpush3.bf16.msra.mxu1 (!%p316_p9), %v11243_v13  ;;  %v11227_v18 = vld [vmem:[%s16456_s1 + $0x90] ss:$12 sps:$4 sm:$0xff] (!%p316_p9)   ;;  %v11228_v19 = vld [vmem:[%s16456_s1 + $0xac] ss:$12 sps:$4 sm:$0xff] (!%p316_p9)  }
  0x15   : > { %2956 = vmatprep.subr.bf16.mxu0 (!%p316_p9), %v11213_v4  ;;  %10555 = vmatprep.subr.bf16.mxu1 (!%p316_p9), %v11245_v14  ;;  %v11253_v20 = vld [vmem:[%s16456_s1 + $0x38] ss:$12 sps:$4 sm:$0xff] (!%p316_p9)   ;;  %v11255_v21 = vld [vmem:[%s16456_s1 + $0x110] ss:$12 sps:$4 sm:$0xff] (!%p316_p9)   ;;  %v11230_v22 = vld [vmem:[%s16456_s1 + $0xa8] ss:$12 sps:$4 sm:$0xff] (!%p316_p9)  }
  0x16   : > { %s354_s26 = scalar_select %p353_p10, %s12633_s17, 1  ;;  %v11231_v23 = vld [vmem:[%s16456_s1 + $0xc4] ss:$12 sps:$4 sm:$0xff]   ;;  %v11260_v25 = vld [vmem:[%s16456_s1 + $0x128] ss:$12 sps:$4 sm:$0xff]   ;;  %vm4088_vm0 = vcmask 1046528  }
  0x17   : > { %v11258_v24 = vld [vmem:[%s16456_s1 + $0x50] ss:$12 sps:$4 sm:$0xff]   ;;  %v11233_v26 = vld [vmem:[%s16456_s1 + $0xc0] ss:$12 sps:$4 sm:$0xff]   ;;  %v11263_v28 = vld [vmem:[%s16456_s1 + $0x68] ss:$12 sps:$4 sm:$0xff]  }
  0x18   : > { %2957 = vmatpush1.bf16.msra.mxu0 %v11215_v5  ;;  %10556 = vmatpush3.bf16.msra.mxu1 %v11248_v16  ;;  %s11122_s27 = smul.u32 448, %s354_s26  ;;  %v11234_v27 = vld [vmem:[%s16456_s1 + $0xdc] ss:$12 sps:$4 sm:$0xff]   ;;  %v11265_v29 = vld [vmem:[%s16456_s1 + $0x140] ss:$12 sps:$4 sm:$0xff]   ;;  %s12552_s30 = smov 64  }
  0x19   : > { %2958 = vmatprep.subr.bf16.mxu0 %v11216_v6  ;;  %10557 = vmatprep.subr.bf16.mxu1 %v11250_v17  ;;  %v11236_v32 = vld [vmem:[%s16456_s1 + $0xd8] ss:$12 sps:$4 sm:$0xff]   ;;  %v11237_v34 = vld [vmem:[%s16456_s1 + $0xf4] ss:$12 sps:$4 sm:$0xff]   ;;  %v11239_v37 = vld [vmem:[%s16456_s1 + $0xf0] ss:$12 sps:$4 sm:$0xff]  }
  0x1a   : > { %s12746_s28 = scalar_lea.vmem %s16455_s0, %s11122_s27  ;;  %v11270_v35 = vld [vmem:[%s16456_s1 + $0x80] ss:$12 sps:$4 sm:$0xff]   ;;  %v11272_v36 = vld [vmem:[%s16456_s1 + $0x158] ss:$12 sps:$4 sm:$0xff]   ;;  %v11277_v40 = vld [vmem:[%s16456_s1 + $0x170] ss:$12 sps:$4 sm:$0xff]  }
  0x1b   : > { %v359_v30 = vld [vmem:[%s12746_s28] sm:$0xff]  ;;  %v366_v31 = vld [vmem:[%s12746_s28 + $0x38] sm:$0xff]  ;;  %v11244_v41 = vld [vmem:[%s16456_s1 + $0x108] ss:$12 sps:$4 sm:$0xff]   ;;  %vm4014_vm1 = vcmask 523264   ;;  %vm4039_vm2 = vcmask 1040384  }
  0x1c   : > { %2959 = vmatpush1.bf16.msra.mxu0 %v11218_v7  ;;  %10558 = vmatpush3.bf16.msra.mxu1 %v11253_v20  ;;  %v9483_v33 = vcombine.high %v359_v30, %v366_v31  ;;  %v11276_v38 = vld [vmem:[%s16456_s1 + $0x98] ss:$12 sps:$4 sm:$0xff]   ;;  %v11281_v43 = vld [vmem:[%s16456_s1 + $0xb0] ss:$12 sps:$4 sm:$0xff]   ;;  %v11282_v44 = vld [vmem:[%s16456_s1 + $0x248] ss:$12 sps:$4 sm:$0xff]   ;;  %v9482_v48 = vcombine.low %v359_v30, %v366_v31 }
  0x1d   : > { %2960 = vmatprep.subr.bf16.mxu0 %v11219_v8  ;;  %10559 = vmatprep.subr.bf16.mxu1 %v11255_v21  ;;  %v11241_v39 = vld [vmem:[%s16456_s1 + $0x10c] ss:$12 sps:$4 sm:$0xff]   ;;  %v11246_v42 = vld [vmem:[%s16456_s1 + $0x124] ss:$12 sps:$4 sm:$0xff]   ;;  %v11251_v46 = vld [vmem:[%s16456_s1 + $0x13c] ss:$12 sps:$4 sm:$0xff]  }
  0x1e   : > { %2984 = vmatprep.mubr.bf16.mxu0 %v9483_v33  ;;  %3495 = vmatprep.mubr.bf16.mxu1 %v9483_v33  ;;  %v11249_v45 = vld [vmem:[%s16456_s1 + $0x120] ss:$12 sps:$4 sm:$0xff]   ;;  %v11286_v47 = vld [vmem:[%s16456_s1 + $0x188] ss:$12 sps:$4 sm:$0xff]   ;;  %v11254_v52 = vld [vmem:[%s16456_s1 + $0x138] ss:$12 sps:$4 sm:$0xff]  }
  0x1f   : > { %v11287_v49 = vld [vmem:[%s16456_s1 + $0x260] ss:$12 sps:$4 sm:$0xff]   ;;  %v373_v50 = vld [vmem:[%s12746_s28 + $0x70] sm:$0xff]  ;;  %v11294_v56 = vld [vmem:[%s16456_s1 + $0x278] ss:$12 sps:$4 sm:$0xff]   ;;  %s350_s20 = sand.u32 1, %s12542_s14  }
  0x20   : > { %2961 = vmatpush1.bf16.msra.mxu0 %v11221_v9  ;;  %10560 = vmatpush3.bf16.msra.mxu1 %v11258_v24  ;;  %v380_v51 = vld [vmem:[%s12746_s28 + $0xa8] sm:$0xff]  ;;  %v11256_v54 = vld [vmem:[%s16456_s1 + $0x154] ss:$12 sps:$4 sm:$0xff]   ;;  %v11259_v57 = vld [vmem:[%s16456_s1 + $0x150] ss:$12 sps:$4 sm:$0xff]   ;;  %s11121_s27 = smul.u32 896, %s350_s20 }
  0x21   : > { %2962 = vmatprep.subr.bf16.mxu0 %v11222_v11  ;;  %10561 = vmatprep.subr.bf16.mxu1 %v11260_v25  ;;  %v9497_v53 = vcombine.high %v373_v50, %v380_v51  ;;  %v11291_v55 = vld [vmem:[%s16456_s1 + $0x1a0] ss:$12 sps:$4 sm:$0xff]   ;;  %v9496_v59 = vcombine.low %v373_v50, %v380_v51  ;;  %v11298_v60 = vld [vmem:[%s16456_s1 + $0x1b8] ss:$12 sps:$4 sm:$0xff]   ;;  %v11299_v61 = vld [vmem:[%s16456_s1 + $0x290] ss:$12 sps:$4 sm:$0xff]  }
  0x22   : > { %v11261_v58 = vld [vmem:[%s16456_s1 + $0x16c] ss:$12 sps:$4 sm:$0xff]   ;;  %v387_v62 = vld [vmem:[%s12746_s28 + $0xe0] sm:$0xff]  ;;  %v11264_v1 = vld [vmem:[%s16456_s1 + $0x168] ss:$12 sps:$4 sm:$0xff]   ;;  %s16068_s26 = scalar_lea.vmem [#allocation2], %s11121_s27 }
  0x23   : > { %v394_v63 = vld [vmem:[%s12746_s28 + $0x118] sm:$0xff]  ;;  %v11269_v2 = vld [vmem:[%s16456_s1 + $0x184] ss:$12 sps:$4 sm:$0xff]   ;;  %v11306_v4 = vld [vmem:[%s16456_s1 + $0x2a8] ss:$12 sps:$4 sm:$0xff]   ;;  %s11123_s25 = smul.u32 14336, %s12633_s17 }
  0x24   : > { %2963 = vmatpush1.bf16.msra.mxu0 %v11224_v12  ;;  %10562 = vmatpush3.bf16.msra.mxu1 %v11263_v28  ;;  %v9511_v0 = vcombine.high %v387_v62, %v394_v63  ;;  %v11303_v3 = vld [vmem:[%s16456_s1 + $0x1d0] ss:$12 sps:$4 sm:$0xff]   ;;  %v11267_v5 = vld [vmem:[%s16456_s1 + $0x180] ss:$12 sps:$4 sm:$0xff]   ;;  %v9510_v7 = vcombine.low %v387_v62, %v394_v63  ;;  %v11310_v8 = vld [vmem:[%s16456_s1 + $0x1e8] ss:$12 sps:$4 sm:$0xff]  }
  0x25   : > { %2964 = vmatprep.subr.bf16.mxu0 %v11225_v15  ;;  %10563 = vmatprep.subr.bf16.mxu1 %v11265_v29  ;;  %v11275_v6 = vld [vmem:[%s16456_s1 + $0x19c] ss:$12 sps:$4 sm:$0xff]   ;;  %v401_v9 = vld [vmem:[%s12746_s28 + $0x150] sm:$0xff]  ;;  %v11311_v11 = vld [vmem:[%s16456_s1 + $0x2c0] ss:$12 sps:$4 sm:$0xff]   ;;  %s16405_s11 = scalar_lea.hbm %s16465_s10, %s11123_s25  ;;  %s16414_s17 = scalar_lea.sflag [#allocation3], %s350_s20 }
  0x26   : > { %v408_v10 = vld [vmem:[%s12746_s28 + $0x188] sm:$0xff]  ;;  %v11273_v12 = vld [vmem:[%s16456_s1 + $0x198] ss:$12 sps:$4 sm:$0xff]   ;;  %v11280_v14 = vld [vmem:[%s16456_s1 + $0x1b4] ss:$12 sps:$4 sm:$0xff]   ;;  %s12554_s18 = smov [#allocation2]  }
  0x27   : > { %v9525_v13 = vcombine.high %v401_v9, %v408_v10  ;;  %v11315_v15 = vld [vmem:[%s16456_s1 + $0x200] ss:$12 sps:$4 sm:$0xff]   ;;  %v11318_v16 = vld [vmem:[%s16456_s1 + $0x2d8] ss:$12 sps:$4 sm:$0xff]   ;;  %v11278_v17 = vld [vmem:[%s16456_s1 + $0x1b0] ss:$12 sps:$4 sm:$0xff]  }
  0x28   : > { %2965 = vmatpush1.bf16.msra.mxu0 %v11227_v18  ;;  %10564 = vmatpush3.bf16.msra.mxu1 %v11270_v35  ;;  %v11285_v18 = vld [vmem:[%s16456_s1 + $0x1cc] ss:$12 sps:$4 sm:$0xff]   ;;  %v11283_v25 = vld [vmem:[%s16456_s1 + $0x1c8] ss:$12 sps:$4 sm:$0xff]   ;;  %v11351_v50 = vld [vmem:[%s16456_s1 + $0x350] ss:$12 sps:$4 sm:$0xff]  }
  0x29   : > { %2966 = vmatprep.subr.bf16.mxu0 %v11228_v19  ;;  %10565 = vmatprep.subr.bf16.mxu1 %v11272_v36  ;;  %v9524_v19 = vcombine.low %v401_v9, %v408_v10  ;;  %v11322_v20 = vld [vmem:[%s16456_s1 + $0x218] ss:$12 sps:$4 sm:$0xff]   ;;  %v360_v21 = vld [vmem:[%s12746_s28 + $0x8] sm:$0xff]  ;;  %v11326_v63 = vld [vmem:[%s16456_s1 + $0x274] ss:$12 sps:$4 sm:$0xff]   ;;  %s12492_s27 = sshll.u32 %s12554_s18, 4  ;;  %s12493_s27 = int_to_ptr.vmem [resolvable:$false] %s12492_s27 }
  0x2a   : > { %v11330_v28 = vld [vmem:[%s16456_s1 + $0x3c8] ss:$12 sps:$4 sm:$0xff]   ;;  %v11288_v29 = vld [vmem:[%s16456_s1 + $0x1e0] ss:$12 sps:$4 sm:$0xff]   ;;  %v374_v31 = vld [vmem:[%s12746_s28 + $0x78] sm:$0xff]  ;;  %s12494_s21 = scalar_lea.vmem %s12493_s27, 28672 }
  0x2b   : > { %v11334_v33 = vld [vmem:[%s16456_s1 + $0x308] ss:$12 sps:$4 sm:$0xff]   ;;  %v11335_v35 = vld [vmem:[%s16456_s1 + $0x3e0] ss:$12 sps:$4 sm:$0xff]   ;;  %v11295_v36 = vld [vmem:[%s16456_s1 + $0x1f8] ss:$12 sps:$4 sm:$0xff]  }
  0x2c   : > { %2967 = vmatpush1.bf16.msra.mxu0 %v11230_v22  ;;  %10566 = vmatpush3.bf16.msra.mxu1 %v11276_v38  ;;  %v367_v22 = vld [vmem:[%s12746_s28 + $0x40] sm:$0xff]  ;;  %v11331_v9 = vld [vmem:[%s16456_s1 + $0x288] ss:$12 sps:$4 sm:$0xff]   ;;  %vm9951_vm3 = vmneg %vm4039_vm2 }
  0x2d   : > { %2968 = vmatprep.subr.bf16.mxu0 %v11231_v23  ;;  %10567 = vmatprep.subr.bf16.mxu1 %v11277_v40  ;;  %v11323_v23 = vld [vmem:[%s16456_s1 + $0x2f0] ss:$12 sps:$4 sm:$0xff]   ;;  %v9485_v24 = vcombine.high %v360_v21, %v367_v22  ;;  %v12902_v30 = vcombine.low %v360_v21, %v367_v22  ;;  %v11302_v38 = vld [vmem:[%s16456_s1 + $0x214] ss:$12 sps:$4 sm:$0xff]   ;;  %v11342_v40 = vld [vmem:[%s16456_s1 + $0x3f8] ss:$12 sps:$4 sm:$0xff]  }
  0x2e   : > { %v11314_v51 = vld [vmem:[%s16456_s1 + $0x244] ss:$12 sps:$4 sm:$0xff]   ;;  %v11363_v62 = vld [vmem:[%s16456_s1 + $0x380] ss:$12 sps:$4 sm:$0xff]   ;;  %vm14427_vm4 = vmpackc.low %vm9951_vm3, %vm9951_vm3 }
  0x2f   : > { %v11338_v10 = vld [vmem:[%s16456_s1 + $0x2a4] ss:$12 sps:$4 sm:$0xff]   ;;  %v11350_v22 = vld [vmem:[%s16456_s1 + $0x2d4] ss:$12 sps:$4 sm:$0xff]  }
  0x30   : > { %2969 = vmatpush1.bf16.msra.mxu0 %v11233_v26  ;;  %10568 = vmatpush3.bf16.msra.mxu1 %v11281_v43  ;;  %v11327_v26 = vld [vmem:[%s16456_s1 + $0x230] ss:$12 sps:$4 sm:$0xff]   ;;  %v11309_v43 = vld [vmem:[%s16456_s1 + $0x22c] ss:$12 sps:$4 sm:$0xff]  }
  0x31   : > { %2970 = vmatprep.subr.bf16.mxu0 %v11234_v27  ;;  %10593 = vmatprep.subr.bf16.mxu1 %v11282_v44  ;;  %v11290_v27 = vld [vmem:[%s16456_s1 + $0x1e4] ss:$12 sps:$4 sm:$0xff]  }
  0x32   : > { %v11343_v21 = vld [vmem:[%s16456_s1 + $0x2b8] ss:$12 sps:$4 sm:$0xff]  }
  0x33   : > { %3496 = vmatmul.mubr.bf16.vlgmr.msra.gmra.mrb[0].mxu1 %v9482_v48 }
  0x34   : > { %2971 = vmatpush1.bf16.msra.mxu0 %v11236_v32  ;;  %10594 = vmatpush3.bf16.msra.mxu1 %v11286_v47  ;;  %v381_v32 = vld [vmem:[%s12746_s28 + $0xb0] sm:$0xff] }
  0x35   : > { %2972 = vmatprep.subr.bf16.mxu0 %v11237_v34  ;;  %10595 = vmatprep.subr.bf16.mxu1 %v11287_v49  ;;  %v11297_v34 = vld [vmem:[%s16456_s1 + $0x1fc] ss:$12 sps:$4 sm:$0xff]   ;;  %v12938_v44 = vcombine.low %v374_v31, %v381_v32 }
  0x36   : > { %3503 = vmatprep.mubr.bf16.mxu1 %v9497_v53  ;;  %v11347_v47 = vld [vmem:[%s16456_s1 + $0x410] ss:$12 sps:$4 sm:$0xff]   ;;  %v11307_v49 = vld [vmem:[%s16456_s1 + $0x228] ss:$12 sps:$4 sm:$0xff]  }
  0x38   : > { %2973 = vmatpush1.bf16.msra.mxu0 %v11239_v37  ;;  %10596 = vmatpush3.bf16.msra.mxu1 %v11291_v55  ;;  %v12918_v37 = vcombine.high %v374_v31, %v381_v32  ;;  %v11357_v31 = vld [vmem:[%s16456_s1 + $0x2ec] ss:$12 sps:$4 sm:$0xff]   ;;  %v11395_v32 = vld [vmem:[%s16456_s1 + $0x590] ss:$12 sps:$4 sm:$0xff]  }
  0x39   : > { %2974 = vmatprep.subr.bf16.mxu0 %v11241_v39  ;;  %10597 = vmatprep.subr.bf16.mxu1 %v11294_v56  ;;  %v11339_v39 = vld [vmem:[%s16456_s1 + $0x320] ss:$12 sps:$4 sm:$0xff]   ;;  %v409_v56 = vld [vmem:[%s12746_s28 + $0x190] sm:$0xff] }
  0x3b   : > { %3504 = vmatmul.mubr.bf16.gmra.mrb[4].mxu1 %v9496_v59 }
  0x3c   : > { %2975 = vmatpush1.bf16.msra.mxu0 %v11244_v41  ;;  %10598 = vmatpush3.bf16.msra.mxu1 %v11298_v60  ;;  %v11300_v41 = vld [vmem:[%s16456_s1 + $0x210] ss:$12 sps:$4 sm:$0xff]  }
  0x3d   : > { %2976 = vmatprep.subr.bf16.mxu0 %v11246_v42  ;;  %10599 = vmatprep.subr.bf16.mxu1 %v11299_v61  ;;  %v388_v42 = vld [vmem:[%s12746_s28 + $0xe8] sm:$0xff]  ;;  %v11319_v61 = vld [vmem:[%s16456_s1 + $0x258] ss:$12 sps:$4 sm:$0xff]  }
  0x3e   : > { %3511 = vmatprep.mubr.bf16.mxu1 %v9511_v0 }
  0x40   : > { %2977 = vmatpush1.bf16.msra.mxu0 %v11249_v45  ;;  %10600 = vmatpush3.bf16.msra.mxu1 %v11303_v3  ;;  %v395_v45 = vld [vmem:[%s12746_s28 + $0x120] sm:$0xff] }
  0x41   : > { %2978 = vmatprep.subr.bf16.mxu0 %v11251_v46  ;;  %10601 = vmatprep.subr.bf16.mxu1 %v11306_v4  ;;  %v11346_v46 = vld [vmem:[%s16456_s1 + $0x338] ss:$12 sps:$4 sm:$0xff]   ;;  %v12967_v55 = vcombine.low %v388_v42, %v395_v45  ;;  %v361_v4 = vld [vmem:[%s12746_s28 + $0x10] sm:$0xff] }
  0x43   : > { %3512 = vmatmul.mubr.bf16.gmra.mrb[8].mxu1 %v9510_v7 }
  0x44   : > { %2979 = vmatpush1.bf16.msra.mxu0 %v11254_v52  ;;  %10602 = vmatpush3.bf16.msra.mxu1 %v11310_v8  ;;  %v11354_v52 = vld [vmem:[%s16456_s1 + $0x428] ss:$12 sps:$4 sm:$0xff]  }
  0x45   : > { %2980 = vmatprep.subr.bf16.mxu0 %v11256_v54  ;;  %10603 = vmatprep.subr.bf16.mxu1 %v11311_v11  ;;  %v402_v54 = vld [vmem:[%s12746_s28 + $0x158] sm:$0xff] }
  0x46   : > { %3519 = vmatprep.mubr.bf16.mxu1 %v9525_v13  ;;  %v12979_v60 = vcombine.high %v402_v54, %v409_v56  ;;  %v13001_v3 = vcombine.low %v402_v54, %v409_v56  ;;  %v11375_v11 = vld [vmem:[%s16456_s1 + $0x3b0] ss:$12 sps:$4 sm:$0xff]  }
  0x47   : > { %v369_v54 = vld [vmem:[%s12746_s28 + $0x50] sm:$0xff] }
  0x48   : > { %2981 = vmatpush1.bf16.msra.mxu0 %v11259_v57  ;;  %10604 = vmatpush3.bf16.msra.mxu1 %v11315_v15  ;;  %v11321_v57 = vld [vmem:[%s16456_s1 + $0x25c] ss:$12 sps:$4 sm:$0xff]  }
  0x49   : > { %2982 = vmatprep.subr.bf16.mxu0 %v11261_v58  ;;  %10605 = vmatprep.subr.bf16.mxu1 %v11318_v16  ;;  %v11358_v58 = vld [vmem:[%s16456_s1 + $0x368] ss:$12 sps:$4 sm:$0xff]   ;;  %v11372_v56 = vld [vmem:[%s16456_s1 + $0x330] ss:$12 sps:$4 sm:$0xff]  }
  0x4a   : > { %v11345_v15 = vld [vmem:[%s16456_s1 + $0x2bc] ss:$12 sps:$4 sm:$0xff]  }
  0x4b   : > { %3520 = vmatmul.mubr.bf16.gmra.mrb[12].mxu1 %v9524_v19 }
  0x4c   : > { %2983 = vmatpush1.bf16.msra.mxu0 %v11264_v1  ;;  %10606 = vmatpush3.bf16.msra.mxu1 %v11322_v20  ;;  %v11324_v1 = vld [vmem:[%s16456_s1 + $0x270] ss:$12 sps:$4 sm:$0xff]  }
  0x4d   : > { %3025 = vmatprep.subr.bf16.mxu0 %v11269_v2  ;;  %10607 = vmatprep.subr.bf16.mxu1 %v11323_v23  ;;  %v11333_v2 = vld [vmem:[%s16456_s1 + $0x28c] ss:$12 sps:$4 sm:$0xff]  }
  0x4e   : > { %3560 = vmatprep.mubr.bf16.mxu1 %v9485_v24  ;;  %v11387_v23 = vld [vmem:[%s16456_s1 + $0x4a0] ss:$12 sps:$4 sm:$0xff]  }
  0x4f   : > { %2985 = vmatmul.mubr.bf16.vlgmr.msra.gmra.mrb[0].mxu0 %v9482_v48  ;;  %v12947_v48 = vcombine.high %v388_v42, %v395_v45  ;;  %v11406_v45 = vld [vmem:[%s16456_s1 + $0x4e8] ss:$12 sps:$4 sm:$0xff]  }
  0x50   : > { %3026 = vmatpush1.bf16.msra.mxu0 %v11267_v5  ;;  %2994 = vmatprep.mubr.bf16.mxu0 %v9497_v53  ;;  %v11312_v53 = vld [vmem:[%s16456_s1 + $0x240] ss:$12 sps:$4 sm:$0xff]  }
  0x51   : > { %3027 = vmatprep.subr.bf16.mxu0 %v11275_v6  ;;  %10608 = vmatpush3.bf16.msra.mxu1 %v11327_v26  ;;  %v368_v5 = vld [vmem:[%s12746_s28 + $0x48] sm:$0xff]  ;;  %v11370_v6 = vld [vmem:[%s16456_s1 + $0x398] ss:$12 sps:$4 sm:$0xff]   ;;  %v389_v26 = vld [vmem:[%s12746_s28 + $0xf0] sm:$0xff] }
  0x52   : > { %10633 = vmatprep.subr.bf16.mxu1 %v11330_v28  ;;  %v13011_v8 = vcombine.high %v361_v4, %v368_v5  ;;  %v13034_v16 = vcombine.low %v361_v4, %v368_v5  ;;  %v396_v28 = vld [vmem:[%s12746_s28 + $0x128] sm:$0xff]  ;;  %v383_v4 = vld [vmem:[%s12746_s28 + $0xc0] sm:$0xff] }
  0x53   : > { %v13098_v42 = vcombine.low %v389_v26, %v396_v28  ;;  %v11430_v5 = vld [vmem:[%s16456_s1 + $0x608] ss:$12 sps:$4 sm:$0xff]  }
  0x54   : > { %3028 = vmatpush1.bf16.msra.mxu0 %v11273_v12  ;;  %3561 = vmatmul.mubr.bf16.vlgmr.msra.gmra.mrb[16].mxu1 %v12902_v30  ;;  %v11378_v12 = vld [vmem:[%s16456_s1 + $0x548] ss:$12 sps:$4 sm:$0xff]  }
  0x55   : > { %3029 = vmatprep.subr.bf16.mxu0 %v11280_v14  ;;  %10634 = vmatpush3.bf16.msra.mxu1 %v11334_v33  ;;  %v375_v14 = vld [vmem:[%s12746_s28 + $0x80] sm:$0xff]  ;;  %v13075_v33 = vcombine.high %v389_v26, %v396_v28  ;;  %v404_v28 = vld [vmem:[%s12746_s28 + $0x168] sm:$0xff] }
  0x56   : > { %10635 = vmatprep.subr.bf16.mxu1 %v11335_v35  ;;  %3568 = vmatprep.mubr.bf16.mxu1 %v12918_v37  ;;  %v11399_v35 = vld [vmem:[%s16456_s1 + $0x4d0] ss:$12 sps:$4 sm:$0xff]  }
  0x57   : > { %2995 = vmatmul.mubr.bf16.gmra.mrb[4].mxu0 %v9496_v59  ;;  %v11359_v59 = vld [vmem:[%s16456_s1 + $0x440] ss:$12 sps:$4 sm:$0xff]  }
  0x58   : > { %3030 = vmatpush1.bf16.msra.mxu0 %v11278_v17  ;;  %3004 = vmatprep.mubr.bf16.mxu0 %v9511_v0  ;;  %v11366_v0 = vld [vmem:[%s16456_s1 + $0x458] ss:$12 sps:$4 sm:$0xff]  }
  0x59   : > { %3031 = vmatprep.subr.bf16.mxu0 %v11285_v18  ;;  %10636 = vmatpush3.bf16.msra.mxu1 %v11339_v39  ;;  %v382_v17 = vld [vmem:[%s12746_s28 + $0xb8] sm:$0xff]  ;;  %v11382_v18 = vld [vmem:[%s16456_s1 + $0x488] ss:$12 sps:$4 sm:$0xff]   ;;  %v11360_v39 = vld [vmem:[%s16456_s1 + $0x300] ss:$12 sps:$4 sm:$0xff]  }
  0x5a   : > { %10637 = vmatprep.subr.bf16.mxu1 %v11342_v40  ;;  %v13043_v20 = vcombine.high %v375_v14, %v382_v17  ;;  %v403_v40 = vld [vmem:[%s12746_s28 + $0x160] sm:$0xff] }
  0x5c   : > { %3032 = vmatpush1.bf16.msra.mxu0 %v11283_v25  ;;  %3569 = vmatmul.mubr.bf16.gmra.mrb[20].mxu1 %v12938_v44  ;;  %v11348_v25 = vld [vmem:[%s16456_s1 + $0x2d0] ss:$12 sps:$4 sm:$0xff]  }
  0x5d   : > { %3033 = vmatprep.subr.bf16.mxu0 %v11290_v27  ;;  %10638 = vmatpush3.bf16.msra.mxu1 %v11346_v46  ;;  %v13063_v27 = vcombine.low %v375_v14, %v382_v17  ;;  %v11407_v46 = vld [vmem:[%s16456_s1 + $0x5c0] ss:$12 sps:$4 sm:$0xff]  }
  0x5e   : > { %10639 = vmatprep.subr.bf16.mxu1 %v11347_v47  ;;  %3576 = vmatprep.mubr.bf16.mxu1 %v12947_v48  ;;  %v11367_v47 = vld [vmem:[%s16456_s1 + $0x318] ss:$12 sps:$4 sm:$0xff]  }
  0x5f   : > { %3005 = vmatmul.mubr.bf16.gmra.mrb[8].mxu0 %v9510_v7  ;;  %v11371_v7 = vld [vmem:[%s16456_s1 + $0x470] ss:$12 sps:$4 sm:$0xff]   ;;  %v11405_v17 = vld [vmem:[%s16456_s1 + $0x3ac] ss:$12 sps:$4 sm:$0xff]  }
  0x60   : > { %3034 = vmatpush1.bf16.msra.mxu0 %v11288_v29  ;;  %3014 = vmatprep.mubr.bf16.mxu0 %v9525_v13  ;;  %v11336_v13 = vld [vmem:[%s16456_s1 + $0x2a0] ss:$12 sps:$4 sm:$0xff]   ;;  %v11394_v29 = vld [vmem:[%s16456_s1 + $0x4b8] ss:$12 sps:$4 sm:$0xff]  }
  0x61   : > { %3035 = vmatprep.subr.bf16.mxu0 %v11297_v34  ;;  %10640 = vmatpush3.bf16.msra.mxu1 %v11351_v50  ;;  %v11355_v34 = vld [vmem:[%s16456_s1 + $0x2e8] ss:$12 sps:$4 sm:$0xff]  }
  0x62   : > { %10641 = vmatprep.subr.bf16.mxu1 %v11354_v52  ;;  %v11374_v50 = vld [vmem:[%s16456_s1 + $0x334] ss:$12 sps:$4 sm:$0xff]   ;;  %v11414_v52 = vld [vmem:[%s16456_s1 + $0x5d8] ss:$12 sps:$4 sm:$0xff]  }
  0x64   : > { %3036 = vmatpush1.bf16.msra.mxu0 %v11295_v36  ;;  %3577 = vmatmul.mubr.bf16.gmra.mrb[24].mxu1 %v12967_v55  ;;  %v11362_v36 = vld [vmem:[%s16456_s1 + $0x304] ss:$12 sps:$4 sm:$0xff]  }
  0x65   : > { %3037 = vmatprep.subr.bf16.mxu0 %v11302_v38  ;;  %10642 = vmatpush3.bf16.msra.mxu1 %v11358_v58  ;;  %v11402_v38 = vld [vmem:[%s16456_s1 + $0x5a8] ss:$12 sps:$4 sm:$0xff]   ;;  %v11381_v58 = vld [vmem:[%s16456_s1 + $0x34c] ss:$12 sps:$4 sm:$0xff]  }
  0x66   : > { %10643 = vmatprep.subr.bf16.mxu1 %v11359_v59  ;;  %3584 = vmatprep.mubr.bf16.mxu1 %v12979_v60 }
  0x67   : > { %3015 = vmatmul.mubr.bf16.gmra.mrb[12].mxu0 %v9524_v19  ;;  %v11383_v19 = vld [vmem:[%s16456_s1 + $0x560] ss:$12 sps:$4 sm:$0xff]  }
  0x68   : > { %3038 = vmatpush1.bf16.msra.mxu0 %v11300_v41  ;;  %3057 = vmatprep.mubr.bf16.mxu0 %v9485_v24  ;;  %v11390_v24 = vld [vmem:[%s16456_s1 + $0x578] ss:$12 sps:$4 sm:$0xff]   ;;  %v11369_v41 = vld [vmem:[%s16456_s1 + $0x31c] ss:$12 sps:$4 sm:$0xff]  }
  0x69   : > { %3039 = vmatprep.subr.bf16.mxu0 %v11309_v43  ;;  %10644 = vmatpush3.bf16.msra.mxu1 %v11363_v62  ;;  %v410_v43 = vld [vmem:[%s12746_s28 + $0x198] sm:$0xff]  ;;  %v11386_v62 = vld [vmem:[%s16456_s1 + $0x364] ss:$12 sps:$4 sm:$0xff]  }
  0x6a   : > { %10645 = vmatprep.subr.bf16.mxu1 %v11366_v0  ;;  %v11426_v0 = vld [vmem:[%s16456_s1 + $0x6c8] ss:$12 sps:$4 sm:$0xff]  }
  0x6c   : > { %3040 = vmatpush1.bf16.msra.mxu0 %v11307_v49  ;;  %3585 = vmatmul.mubr.bf16.gmra.mrb[28].mxu1 %v13001_v3  ;;  %v13110_v49 = vcombine.high %v403_v40, %v410_v43 }
  0x6d   : > { %3041 = vmatprep.subr.bf16.mxu0 %v11314_v51  ;;  %10646 = vmatpush3.bf16.msra.mxu1 %v11370_v6  ;;  %v11411_v51 = vld [vmem:[%s16456_s1 + $0x500] ss:$12 sps:$4 sm:$0xff]   ;;  %v11393_v6 = vld [vmem:[%s16456_s1 + $0x37c] ss:$12 sps:$4 sm:$0xff]  }
  0x6e   : > { %10647 = vmatprep.subr.bf16.mxu1 %v11371_v7  ;;  %3625 = vmatprep.mubr.bf16.mxu1 %v13011_v8 }
  0x70   : > { %3042 = vmatpush1.bf16.msra.mxu0 %v11312_v53  ;;  %v13126_v53 = vcombine.low %v403_v40, %v410_v43  ;;  %v370_v43 = vld [vmem:[%s12746_s28 + $0x58] sm:$0xff] }
  0x71   : > { %3043 = vmatprep.subr.bf16.mxu0 %v11321_v57  ;;  %10648 = vmatpush3.bf16.msra.mxu1 %v11375_v11  ;;  %v11418_v57 = vld [vmem:[%s16456_s1 + $0x518] ss:$12 sps:$4 sm:$0xff]   ;;  %v11435_v11 = vld [vmem:[%s16456_s1 + $0x620] ss:$12 sps:$4 sm:$0xff]  }
  0x72   : > { %10673 = vmatprep.subr.bf16.mxu1 %v11378_v12  ;;  %v11438_v12 = vld [vmem:[%s16456_s1 + $0x6f8] ss:$12 sps:$4 sm:$0xff]  }
  0x74   : > { %3044 = vmatpush1.bf16.msra.mxu0 %v11319_v61  ;;  %3626 = vmatmul.mubr.bf16.vlgmr.msra.gmra.mrb[32].mxu1 %v13034_v16  ;;  %v11379_v61 = vld [vmem:[%s16456_s1 + $0x348] ss:$12 sps:$4 sm:$0xff]  }
  0x75   : > { %3045 = vmatprep.subr.bf16.mxu0 %v11326_v63  ;;  %10674 = vmatpush3.bf16.msra.mxu1 %v11382_v18  ;;  %v11423_v63 = vld [vmem:[%s16456_s1 + $0x530] ss:$12 sps:$4 sm:$0xff]   ;;  %v11442_v18 = vld [vmem:[%s16456_s1 + $0x638] ss:$12 sps:$4 sm:$0xff]  }
  0x76   : > { %10675 = vmatprep.subr.bf16.mxu1 %v11383_v19  ;;  %3633 = vmatprep.mubr.bf16.mxu1 %v13043_v20  ;;  %v11403_v19 = vld [vmem:[%s16456_s1 + $0x3a8] ss:$12 sps:$4 sm:$0xff]  }
  0x78   : > { %3046 = vmatpush1.bf16.msra.mxu0 %v11324_v1 }
  0x79   : > { %3047 = vmatprep.subr.bf16.mxu0 %v11333_v2  ;;  %10676 = vmatpush3.bf16.msra.mxu1 %v11387_v23  ;;  %v376_v2 = vld [vmem:[%s12746_s28 + $0x88] sm:$0xff]  ;;  %v11447_v23 = vld [vmem:[%s16456_s1 + $0x650] ss:$12 sps:$4 sm:$0xff]  }
  0x7a   : > { %10677 = vmatprep.subr.bf16.mxu1 %v11390_v24  ;;  %v13175_v7 = vcombine.high %v376_v2, %v383_v4  ;;  %v13194_v14 = vcombine.low %v376_v2, %v383_v4  ;;  %v11450_v24 = vld [vmem:[%s16456_s1 + $0x728] ss:$12 sps:$4 sm:$0xff]   ;;  %v11483_v2 = vld [vmem:[%s16456_s1 + $0x7a0] ss:$12 sps:$4 sm:$0xff]  }
  0x7b   : > { %v11446_v4 = vld [vmem:[%s16456_s1 + $0x454] ss:$12 sps:$4 sm:$0xff]  }
  0x7c   : > { %3048 = vmatpush1.bf16.msra.mxu0 %v11331_v9  ;;  %3634 = vmatmul.mubr.bf16.gmra.mrb[36].mxu1 %v13063_v27  ;;  %v11391_v9 = vld [vmem:[%s16456_s1 + $0x378] ss:$12 sps:$4 sm:$0xff]  }
  0x7d   : > { %3049 = vmatprep.subr.bf16.mxu0 %v11338_v10  ;;  %10678 = vmatpush3.bf16.msra.mxu1 %v11394_v29  ;;  %v11398_v10 = vld [vmem:[%s16456_s1 + $0x394] ss:$12 sps:$4 sm:$0xff]  }
  0x7e   : > { %10679 = vmatprep.subr.bf16.mxu1 %v11395_v32  ;;  %3641 = vmatprep.mubr.bf16.mxu1 %v13075_v33  ;;  %v411_v29 = vld [vmem:[%s12746_s28 + $0x1a0] sm:$0xff] }
  0x7f   : > { %v13243_v32 = vcombine.high %v404_v28, %v411_v29  ;;  %v13262_v40 = vcombine.low %v404_v28, %v411_v29  ;;  %v11503_v28 = vld [vmem:[%s16456_s1 + $0x8c0] ss:$12 sps:$4 sm:$0xff]  }
  0x80   : > { %3050 = vmatpush1.bf16.msra.mxu0 %v11336_v13  ;;  %v390_v13 = vld [vmem:[%s12746_s28 + $0xf8] sm:$0xff] }
  0x81   : > { %3051 = vmatprep.subr.bf16.mxu0 %v11345_v15  ;;  %10680 = vmatpush3.bf16.msra.mxu1 %v11399_v35  ;;  %v11396_v15 = vld [vmem:[%s16456_s1 + $0x390] ss:$12 sps:$4 sm:$0xff]   ;;  %v11459_v35 = vld [vmem:[%s16456_s1 + $0x680] ss:$12 sps:$4 sm:$0xff]  }
  0x82   : > { %10681 = vmatprep.subr.bf16.mxu1 %v11402_v38  ;;  %v11462_v38 = vld [vmem:[%s16456_s1 + $0x758] ss:$12 sps:$4 sm:$0xff]  }
  0x84   : > { %3052 = vmatpush1.bf16.msra.mxu0 %v11343_v21  ;;  %3642 = vmatmul.mubr.bf16.gmra.mrb[40].mxu1 %v13098_v42 }
  0x85   : > { %3053 = vmatprep.subr.bf16.mxu0 %v11350_v22  ;;  %10682 = vmatpush3.bf16.msra.mxu1 %v11406_v45  ;;  %v11410_v22 = vld [vmem:[%s16456_s1 + $0x3c4] ss:$12 sps:$4 sm:$0xff]  }
  0x86   : > { %10683 = vmatprep.subr.bf16.mxu1 %v11407_v46  ;;  %3649 = vmatprep.mubr.bf16.mxu1 %v13110_v49  ;;  %v11466_v45 = vld [vmem:[%s16456_s1 + $0x698] ss:$12 sps:$4 sm:$0xff]  }
  0x87   : > { %v11429_v46 = vld [vmem:[%s16456_s1 + $0x40c] ss:$12 sps:$4 sm:$0xff]  }
  0x88   : > { %3054 = vmatpush1.bf16.msra.mxu0 %v11348_v25  ;;  %v11408_v25 = vld [vmem:[%s16456_s1 + $0x3c0] ss:$12 sps:$4 sm:$0xff]  }
  0x89   : > { %3055 = vmatprep.subr.bf16.mxu0 %v11357_v31  ;;  %10684 = vmatpush3.bf16.msra.mxu1 %v11411_v51  ;;  %v11454_v31 = vld [vmem:[%s16456_s1 + $0x668] ss:$12 sps:$4 sm:$0xff]  }
  0x8a   : > { %10685 = vmatprep.subr.bf16.mxu1 %v11414_v52  ;;  %v11434_v52 = vld [vmem:[%s16456_s1 + $0x424] ss:$12 sps:$4 sm:$0xff]  }
  0x8c   : > { %3056 = vmatpush1.bf16.msra.mxu0 %v11355_v34  ;;  %3650 = vmatmul.mubr.bf16.gmra.mrb[44].mxu1 %v13126_v53  ;;  %v11415_v34 = vld [vmem:[%s16456_s1 + $0x3d8] ss:$12 sps:$4 sm:$0xff]  }
  0x8d   : > { %3098 = vmatprep.subr.bf16.mxu0 %v11362_v36  ;;  %10686 = vmatpush3.bf16.msra.mxu1 %v11418_v57  ;;  %v11422_v36 = vld [vmem:[%s16456_s1 + $0x3f4] ss:$12 sps:$4 sm:$0xff]  }
  0x8e   : > { %v377_v57 = vld [vmem:[%s12746_s28 + $0x90] sm:$0xff] }
  0x8f   : > { %3058 = vmatmul.mubr.bf16.vlgmr.msra.gmra.mrb[0].mxu0 %v12902_v30  ;;  %v362_v30 = vld [vmem:[%s12746_s28 + $0x18] sm:$0xff] }
  0x90   : > { %3099 = vmatpush1.bf16.msra.mxu0 %v11360_v39  ;;  %3067 = vmatprep.mubr.bf16.mxu0 %v12918_v37  ;;  %v11419_v37 = vld [vmem:[%s16456_s1 + $0x5f0] ss:$12 sps:$4 sm:$0xff]   ;;  %v13141_v59 = vcombine.high %v362_v30, %v369_v54  ;;  %v13162_v1 = vcombine.low %v362_v30, %v369_v54  ;;  %v11474_v54 = vld [vmem:[%s16456_s1 + $0x848] ss:$12 sps:$4 sm:$0xff]  }
  0x91   : > { %3100 = vmatprep.subr.bf16.mxu0 %v11369_v41  ;;  %10687 = vmatprep.subr.bf16.mxu1 %v11419_v37  ;;  %v11420_v39 = vld [vmem:[%s16456_s1 + $0x3f0] ss:$12 sps:$4 sm:$0xff]   ;;  %v363_v41 = vld [vmem:[%s12746_s28 + $0x20] sm:$0xff] }
  0x92   : > { %3690 = vmatprep.mubr.bf16.mxu1 %v13141_v59  ;;  %10688 = vmatpush3.bf16.msra.mxu1 %v11423_v63  ;;  %v13278_v51 = vcombine.high %v363_v41, %v370_v43  ;;  %v11471_v30 = vld [vmem:[%s16456_s1 + $0x6b0] ss:$12 sps:$4 sm:$0xff]   ;;  %v13298_v37 = vcombine.low %v363_v41, %v370_v43  ;;  %v11479_v63 = vld [vmem:[%s16456_s1 + $0x860] ss:$12 sps:$4 sm:$0xff]   ;;  %v11514_v43 = vld [vmem:[%s16456_s1 + $0x818] ss:$12 sps:$4 sm:$0xff]  }
  0x93   : > { %10713 = vmatprep.subr.bf16.mxu1 %v11426_v0  ;;  %v371_v41 = vld [vmem:[%s12746_s28 + $0x60] sm:$0xff] }
  0x94   : > { %3101 = vmatpush1.bf16.msra.mxu0 %v11367_v47  ;;  %v11467_v47 = vld [vmem:[%s16456_s1 + $0x770] ss:$12 sps:$4 sm:$0xff]  }
  0x95   : > { %3102 = vmatprep.subr.bf16.mxu0 %v11374_v50  ;;  %3691 = vmatmul.mubr.bf16.vlgmr.msra.gmra.mrb[48].mxu1 %v13162_v1  ;;  %v11427_v50 = vld [vmem:[%s16456_s1 + $0x408] ss:$12 sps:$4 sm:$0xff]  }
  0x96   : > { %10714 = vmatpush3.bf16.msra.mxu1 %v11430_v5  ;;  %3698 = vmatprep.mubr.bf16.mxu1 %v13175_v7  ;;  %v11486_v5 = vld [vmem:[%s16456_s1 + $0x878] ss:$12 sps:$4 sm:$0xff]  }
  0x97   : > { %3068 = vmatmul.mubr.bf16.gmra.mrb[4].mxu0 %v12938_v44  ;;  %v11384_v44 = vld [vmem:[%s16456_s1 + $0x360] ss:$12 sps:$4 sm:$0xff]  }
  0x98   : > { %3103 = vmatpush1.bf16.msra.mxu0 %v11372_v56  ;;  %3077 = vmatprep.mubr.bf16.mxu0 %v12947_v48  ;;  %v11431_v48 = vld [vmem:[%s16456_s1 + $0x6e0] ss:$12 sps:$4 sm:$0xff]  }
  0x99   : > { %3104 = vmatprep.subr.bf16.mxu0 %v11381_v58  ;;  %10715 = vmatprep.subr.bf16.mxu1 %v11431_v48  ;;  %v11432_v56 = vld [vmem:[%s16456_s1 + $0x420] ss:$12 sps:$4 sm:$0xff]   ;;  %v11441_v58 = vld [vmem:[%s16456_s1 + $0x43c] ss:$12 sps:$4 sm:$0xff]  }
  0x9a   : > { %10716 = vmatpush3.bf16.msra.mxu1 %v11435_v11  ;;  %v391_v48 = vld [vmem:[%s12746_s28 + $0x100] sm:$0xff]  ;;  %v11453_v11 = vld [vmem:[%s16456_s1 + $0x46c] ss:$12 sps:$4 sm:$0xff]  }
  0x9b   : > { %10717 = vmatprep.subr.bf16.mxu1 %v11438_v12  ;;  %v11490_v12 = vld [vmem:[%s16456_s1 + $0x7b8] ss:$12 sps:$4 sm:$0xff]  }
  0x9c   : > { %3105 = vmatpush1.bf16.msra.mxu0 %v11379_v61  ;;  %v384_v61 = vld [vmem:[%s12746_s28 + $0xc8] sm:$0xff] }
  0x9d   : > { %3106 = vmatprep.subr.bf16.mxu0 %v11386_v62  ;;  %3699 = vmatmul.mubr.bf16.gmra.mrb[52].mxu1 %v13194_v14  ;;  %v11478_v62 = vld [vmem:[%s16456_s1 + $0x788] ss:$12 sps:$4 sm:$0xff]   ;;  %v13307_v0 = vcombine.high %v377_v57, %v384_v61 }
  0x9e   : > { %10718 = vmatpush3.bf16.msra.mxu1 %v11442_v18  ;;  %v11458_v18 = vld [vmem:[%s16456_s1 + $0x484] ss:$12 sps:$4 sm:$0xff]  }
  0x9f   : > { %3078 = vmatmul.mubr.bf16.gmra.mrb[8].mxu0 %v12967_v55  ;;  %v397_v55 = vld [vmem:[%s12746_s28 + $0x130] sm:$0xff] }
  0xa0   : > { %3107 = vmatpush1.bf16.msra.mxu0 %v11384_v44  ;;  %3087 = vmatprep.mubr.bf16.mxu0 %v12979_v60  ;;  %v11443_v60 = vld [vmem:[%s16456_s1 + $0x710] ss:$12 sps:$4 sm:$0xff]   ;;  %v13212_v21 = vcombine.high %v390_v13, %v397_v55  ;;  %v13233_v26 = vcombine.low %v390_v13, %v397_v55  ;;  %v11439_v44 = vld [vmem:[%s16456_s1 + $0x438] ss:$12 sps:$4 sm:$0xff]  }
  0xa1   : > { %3108 = vmatprep.subr.bf16.mxu0 %v11393_v6  ;;  %10719 = vmatprep.subr.bf16.mxu1 %v11443_v60  ;;  %v11444_v6 = vld [vmem:[%s16456_s1 + $0x450] ss:$12 sps:$4 sm:$0xff]   ;;  %v11498_v60 = vld [vmem:[%s16456_s1 + $0x8a8] ss:$12 sps:$4 sm:$0xff]  }
  0xa2   : > { %3706 = vmatprep.mubr.bf16.mxu1 %v13212_v21  ;;  %10720 = vmatpush3.bf16.msra.mxu1 %v11447_v23  ;;  %v11491_v13 = vld [vmem:[%s16456_s1 + $0x890] ss:$12 sps:$4 sm:$0xff]  }
  0xa3   : > { %10721 = vmatprep.subr.bf16.mxu1 %v11450_v24  ;;  %v405_v24 = vld [vmem:[%s12746_s28 + $0x170] sm:$0xff] }
  0xa4   : > { %3109 = vmatpush1.bf16.msra.mxu0 %v11391_v9  ;;  %v13327_v9 = vcombine.low %v377_v57, %v384_v61  ;;  %v11526_v57 = vld [vmem:[%s16456_s1 + $0x908] ss:$12 sps:$4 sm:$0xff]  }
  0xa5   : > { %3110 = vmatprep.subr.bf16.mxu0 %v11398_v10  ;;  %3707 = vmatmul.mubr.bf16.gmra.mrb[56].mxu1 %v13233_v26  ;;  %v398_v10 = vld [vmem:[%s12746_s28 + $0x138] sm:$0xff] }
  0xa6   : > { %10722 = vmatpush3.bf16.msra.mxu1 %v11454_v31  ;;  %3714 = vmatprep.mubr.bf16.mxu1 %v13243_v32  ;;  %v13339_v55 = vcombine.high %v391_v48, %v398_v10  ;;  %v13361_v23 = vcombine.low %v391_v48, %v398_v10  ;;  %v11463_v31 = vld [vmem:[%s16456_s1 + $0x498] ss:$12 sps:$4 sm:$0xff]  }
  0xa7   : > { %3088 = vmatmul.mubr.bf16.gmra.mrb[12].mxu0 %v13001_v3  ;;  %v11417_v3 = vld [vmem:[%s16456_s1 + $0x3dc] ss:$12 sps:$4 sm:$0xff]   ;;  %v399_v48 = vld [vmem:[%s12746_s28 + $0x140] sm:$0xff] }
  0xa8   : > { %3111 = vmatpush1.bf16.msra.mxu0 %v11396_v15  ;;  %3130 = vmatprep.mubr.bf16.mxu0 %v13011_v8  ;;  %v11455_v8 = vld [vmem:[%s16456_s1 + $0x740] ss:$12 sps:$4 sm:$0xff]   ;;  %v11451_v15 = vld [vmem:[%s16456_s1 + $0x468] ss:$12 sps:$4 sm:$0xff]   ;;  %v11538_v10 = vld [vmem:[%s16456_s1 + $0x938] ss:$12 sps:$4 sm:$0xff]  }
  0xa9   : > { %3112 = vmatprep.subr.bf16.mxu0 %v11405_v17  ;;  %10723 = vmatprep.subr.bf16.mxu1 %v11455_v8  ;;  %v11495_v17 = vld [vmem:[%s16456_s1 + $0x7d0] ss:$12 sps:$4 sm:$0xff]   ;;  %v11470_v8 = vld [vmem:[%s16456_s1 + $0x4b4] ss:$12 sps:$4 sm:$0xff]  }
  0xaa   : > { %10724 = vmatpush3.bf16.msra.mxu1 %v11459_v35  ;;  %v11468_v35 = vld [vmem:[%s16456_s1 + $0x4b0] ss:$12 sps:$4 sm:$0xff]  }
  0xab   : > { %10725 = vmatprep.subr.bf16.mxu1 %v11462_v38  ;;  %v11477_v38 = vld [vmem:[%s16456_s1 + $0x4cc] ss:$12 sps:$4 sm:$0xff]  }
  0xac   : > { %3113 = vmatpush1.bf16.msra.mxu0 %v11403_v19  ;;  %v11456_v19 = vld [vmem:[%s16456_s1 + $0x480] ss:$12 sps:$4 sm:$0xff]  }
  0xad   : > { %3114 = vmatprep.subr.bf16.mxu0 %v11410_v22  ;;  %3715 = vmatmul.mubr.bf16.gmra.mrb[60].mxu1 %v13262_v40  ;;  %v11465_v22 = vld [vmem:[%s16456_s1 + $0x49c] ss:$12 sps:$4 sm:$0xff]  }
  0xae   : > { %10726 = vmatpush3.bf16.msra.mxu1 %v11466_v45  ;;  %3755 = vmatprep.mubr.bf16.mxu1 %v13278_v51 }
  0xaf   : > { %10727 = vmatprep.subr.bf16.mxu1 %v11467_v47  ;;  %v11482_v47 = vld [vmem:[%s16456_s1 + $0x4e4] ss:$12 sps:$4 sm:$0xff]  }
  0xb0   : > { %3115 = vmatpush1.bf16.msra.mxu0 %v11408_v25  ;;  %v412_v25 = vld [vmem:[%s12746_s28 + $0x1a8] sm:$0xff] }
  0xb1   : > { %3116 = vmatprep.subr.bf16.mxu0 %v11417_v3  ;;  %v11502_v3 = vld [vmem:[%s16456_s1 + $0x7e8] ss:$12 sps:$4 sm:$0xff]   ;;  %v13371_v29 = vcombine.high %v405_v24, %v412_v25 }
  0xb2   : > { %10728 = vmatpush3.bf16.msra.mxu1 %v11471_v30  ;;  %v11480_v30 = vld [vmem:[%s16456_s1 + $0x4e0] ss:$12 sps:$4 sm:$0xff]  }
  0xb3   : > { %10753 = vmatprep.subr.bf16.mxu1 %v11474_v54 }
  0xb4   : > { %3117 = vmatpush1.bf16.msra.mxu0 %v11415_v34  ;;  %v11507_v34 = vld [vmem:[%s16456_s1 + $0x800] ss:$12 sps:$4 sm:$0xff]  }
  0xb5   : > { %3118 = vmatprep.subr.bf16.mxu0 %v11422_v36  ;;  %3756 = vmatmul.mubr.bf16.vlgmr.msra.gmra.mrb[64].mxu1 %v13298_v37  ;;  %v364_v36 = vld [vmem:[%s12746_s28 + $0x28] sm:$0xff] }
  0xb6   : > { %10754 = vmatpush3.bf16.msra.mxu1 %v11478_v62  ;;  %3763 = vmatprep.mubr.bf16.mxu1 %v13307_v0  ;;  %v13405_v45 = vcombine.high %v364_v36, %v371_v41  ;;  %v13427_v54 = vcombine.low %v364_v36, %v371_v41  ;;  %v11487_v62 = vld [vmem:[%s16456_s1 + $0x4f8] ss:$12 sps:$4 sm:$0xff]   ;;  %v372_v36 = vld [vmem:[%s12746_s28 + $0x68] sm:$0xff] }
  0xb7   : > { %10755 = vmatprep.subr.bf16.mxu1 %v11479_v63  ;;  %v11531_v63 = vld [vmem:[%s16456_s1 + $0x920] ss:$12 sps:$4 sm:$0xff]   ;;  %v11562_v41 = vld [vmem:[%s16456_s1 + $0x998] ss:$12 sps:$4 sm:$0xff]  }
  0xb8   : > { %3119 = vmatpush1.bf16.msra.mxu0 %v11420_v39  ;;  %v13396_v39 = vcombine.low %v405_v24, %v412_v25  ;;  %v11513_v24 = vld [vmem:[%s16456_s1 + $0x55c] ss:$12 sps:$4 sm:$0xff]  }
  0xb9   : > { %3120 = vmatprep.subr.bf16.mxu0 %v11429_v46  ;;  %v11475_v46 = vld [vmem:[%s16456_s1 + $0x4c8] ss:$12 sps:$4 sm:$0xff]  }
  0xba   : > { %10756 = vmatpush3.bf16.msra.mxu1 %v11483_v2  ;;  %v11534_v2 = vld [vmem:[%s16456_s1 + $0x9f8] ss:$12 sps:$4 sm:$0xff]  }
  0xbb   : > { %10757 = vmatprep.subr.bf16.mxu1 %v11486_v5  ;;  %v11501_v5 = vld [vmem:[%s16456_s1 + $0x52c] ss:$12 sps:$4 sm:$0xff]  }
  0xbc   : > { %3121 = vmatpush1.bf16.msra.mxu0 %v11427_v50  ;;  %v11519_v50 = vld [vmem:[%s16456_s1 + $0x830] ss:$12 sps:$4 sm:$0xff]  }
  0xbd   : > { %3122 = vmatprep.subr.bf16.mxu0 %v11434_v52  ;;  %3764 = vmatmul.mubr.bf16.gmra.mrb[68].mxu1 %v13327_v9  ;;  %v11522_v52 = vld [vmem:[%s16456_s1 + $0x9c8] ss:$12 sps:$4 sm:$0xff]  }
  0xbe   : > { %10758 = vmatpush3.bf16.msra.mxu1 %v11490_v12  ;;  %3771 = vmatprep.mubr.bf16.mxu1 %v13339_v55  ;;  %v11499_v12 = vld [vmem:[%s16456_s1 + $0x528] ss:$12 sps:$4 sm:$0xff]  }
  0xbf   : > { %10759 = vmatprep.subr.bf16.mxu1 %v11491_v13  ;;  %v11543_v13 = vld [vmem:[%s16456_s1 + $0x950] ss:$12 sps:$4 sm:$0xff]  }
  0xc0   : > { %3123 = vmatpush1.bf16.msra.mxu0 %v11432_v56  ;;  %v385_v56 = vld [vmem:[%s12746_s28 + $0xd0] sm:$0xff] }
  0xc1   : > { %3124 = vmatprep.subr.bf16.mxu0 %v11441_v58  ;;  %v11489_v58 = vld [vmem:[%s16456_s1 + $0x4fc] ss:$12 sps:$4 sm:$0xff]  }
  0xc2   : > { %10760 = vmatpush3.bf16.msra.mxu1 %v11495_v17  ;;  %v11546_v17 = vld [vmem:[%s16456_s1 + $0xa28] ss:$12 sps:$4 sm:$0xff]  }
  0xc3   : > { %10761 = vmatprep.subr.bf16.mxu1 %v11498_v60  ;;  %v413_v60 = vld [vmem:[%s12746_s28 + $0x1b0] sm:$0xff] }
  0xc4   : > { %3125 = vmatpush1.bf16.msra.mxu0 %v11439_v44  ;;  %v11494_v44 = vld [vmem:[%s16456_s1 + $0x514] ss:$12 sps:$4 sm:$0xff]  }
  0xc5   : > { %3126 = vmatprep.subr.bf16.mxu0 %v11446_v4  ;;  %3772 = vmatmul.mubr.bf16.gmra.mrb[72].mxu1 %v13361_v23  ;;  %v392_v4 = vld [vmem:[%s12746_s28 + $0x108] sm:$0xff] }
  0xc6   : > { %10762 = vmatpush3.bf16.msra.mxu1 %v11502_v3  ;;  %3779 = vmatprep.mubr.bf16.mxu1 %v13371_v29  ;;  %v11511_v3 = vld [vmem:[%s16456_s1 + $0x558] ss:$12 sps:$4 sm:$0xff]  }
  0xc7   : > { %10763 = vmatprep.subr.bf16.mxu1 %v11503_v28  ;;  %v11518_v28 = vld [vmem:[%s16456_s1 + $0x574] ss:$12 sps:$4 sm:$0xff]  }
  0xc8   : > { %3127 = vmatpush1.bf16.msra.mxu0 %v11444_v6 }
  0xc9   : > { %3128 = vmatprep.subr.bf16.mxu0 %v11453_v11  ;;  %v13473_v11 = vcombine.high %v392_v4, %v399_v48 }
  0xca   : > { %10764 = vmatpush3.bf16.msra.mxu1 %v11507_v34  ;;  %v11516_v34 = vld [vmem:[%s16456_s1 + $0x570] ss:$12 sps:$4 sm:$0xff]  }
  0xcc   : > { %3129 = vmatpush1.bf16.msra.mxu0 %v11451_v15  ;;  %v11506_v15 = vld [vmem:[%s16456_s1 + $0x544] ss:$12 sps:$4 sm:$0xff]  }
  0xcd   : > { %3171 = vmatprep.subr.bf16.mxu0 %v11458_v18  ;;  %3780 = vmatmul.mubr.bf16.gmra.mrb[76].mxu1 %v13396_v39  ;;  %v406_v18 = vld [vmem:[%s12746_s28 + $0x178] sm:$0xff] }
  0xce   : > { %3820 = vmatprep.mubr.bf16.mxu1 %v13405_v45  ;;  %v13507_v25 = vcombine.high %v406_v18, %v413_v60 }
  0xcf   : > { %3131 = vmatmul.mubr.bf16.vlgmr.msra.gmra.mrb[0].mxu0 %v13034_v16  ;;  %v11510_v16 = vld [vmem:[%s16456_s1 + $0x8d8] ss:$12 sps:$4 sm:$0xff]  }
  0xd0   : > { %3172 = vmatpush1.bf16.msra.mxu0 %v11456_v19  ;;  %3140 = vmatprep.mubr.bf16.mxu0 %v13043_v20  ;;  %v11515_v20 = vld [vmem:[%s16456_s1 + $0x8f0] ss:$12 sps:$4 sm:$0xff]   ;;  %v11504_v19 = vld [vmem:[%s16456_s1 + $0x540] ss:$12 sps:$4 sm:$0xff]  }
  0xd1   : > { %3173 = vmatprep.subr.bf16.mxu0 %v11465_v22  ;;  %10765 = vmatprep.subr.bf16.mxu1 %v11510_v16  ;;  %v11550_v22 = vld [vmem:[%s16456_s1 + $0x968] ss:$12 sps:$4 sm:$0xff]   ;;  %v13526_v16 = vcombine.low %v406_v18, %v413_v60  ;;  %v11559_v60 = vld [vmem:[%s16456_s1 + $0x618] ss:$12 sps:$4 sm:$0xff]  }
  0xd2   : > { %10766 = vmatpush3.bf16.msra.mxu1 %v11514_v43  ;;  %v11563_v43 = vld [vmem:[%s16456_s1 + $0xa70] ss:$12 sps:$4 sm:$0xff]  }
  0xd3   : > { %10767 = vmatprep.subr.bf16.mxu1 %v11515_v20  ;;  %v11561_v18 = vld [vmem:[%s16456_s1 + $0x61c] ss:$12 sps:$4 sm:$0xff]  }
  0xd4   : > { %3174 = vmatpush1.bf16.msra.mxu0 %v11463_v31  ;;  %v11555_v31 = vld [vmem:[%s16456_s1 + $0x980] ss:$12 sps:$4 sm:$0xff]  }
  0xd5   : > { %3175 = vmatprep.subr.bf16.mxu0 %v11470_v8  ;;  %v11558_v8 = vld [vmem:[%s16456_s1 + $0xa58] ss:$12 sps:$4 sm:$0xff]  }
  0xd6   : > { %10768 = vmatpush3.bf16.msra.mxu1 %v11519_v50  ;;  %v11567_v50 = vld [vmem:[%s16456_s1 + $0x9b0] ss:$12 sps:$4 sm:$0xff]  }
  0xd7   : > { %3141 = vmatmul.mubr.bf16.gmra.mrb[4].mxu0 %v13063_v27  ;;  %v378_v27 = vld [vmem:[%s12746_s28 + $0x98] sm:$0xff]  ;;  %10793 = vmatprep.subr.bf16.mxu1 %v11522_v52  ;;  %v379_v52 = vld [vmem:[%s12746_s28 + $0xa0] sm:$0xff] }
  0xd8   : > { %3176 = vmatpush1.bf16.msra.mxu0 %v11468_v35  ;;  %3150 = vmatprep.mubr.bf16.mxu0 %v13075_v33  ;;  %v11527_v33 = vld [vmem:[%s16456_s1 + $0x9e0] ss:$12 sps:$4 sm:$0xff]   ;;  %v13439_v61 = vcombine.high %v378_v27, %v385_v56  ;;  %v13464_v6 = vcombine.low %v378_v27, %v385_v56  ;;  %v365_v35 = vld [vmem:[%s12746_s28 + $0x30] sm:$0xff] }
  0xd9   : > { %3177 = vmatprep.subr.bf16.mxu0 %v11477_v38  ;;  %3821 = vmatmul.mubr.bf16.vlgmr.msra.gmra.mrb[80].mxu1 %v13427_v54  ;;  %v11525_v38 = vld [vmem:[%s16456_s1 + $0x58c] ss:$12 sps:$4 sm:$0xff]   ;;  %v13539_v20 = vcombine.high %v365_v35, %v372_v36  ;;  %v13554_v27 = vcombine.low %v365_v35, %v372_v36  ;;  %v11575_v35 = vld [vmem:[%s16456_s1 + $0x664] ss:$12 sps:$4 sm:$0xff]  }
  0xda   : > { %10794 = vmatpush3.bf16.msra.mxu1 %v11526_v57  ;;  %3828 = vmatprep.mubr.bf16.mxu1 %v13439_v61  ;;  %v11528_v56 = vld [vmem:[%s16456_s1 + $0x5a0] ss:$12 sps:$4 sm:$0xff]  }
  0xdb   : > { %10795 = vmatprep.subr.bf16.mxu1 %v11527_v33  ;;  %v11535_v33 = vld [vmem:[%s16456_s1 + $0x5b8] ss:$12 sps:$4 sm:$0xff]  }
  0xdc   : > { %3178 = vmatpush1.bf16.msra.mxu0 %v11475_v46  ;;  %v11523_v46 = vld [vmem:[%s16456_s1 + $0x588] ss:$12 sps:$4 sm:$0xff]  }
  0xdd   : > { %3179 = vmatprep.subr.bf16.mxu0 %v11482_v47  ;;  %v11530_v47 = vld [vmem:[%s16456_s1 + $0x5a4] ss:$12 sps:$4 sm:$0xff]  }
  0xde   : > { %10796 = vmatpush3.bf16.msra.mxu1 %v11531_v63  ;;  %v393_v63 = vld [vmem:[%s12746_s28 + $0x110] sm:$0xff] }
  0xdf   : > { %3151 = vmatmul.mubr.bf16.gmra.mrb[8].mxu0 %v13098_v42  ;;  %v11492_v42 = vld [vmem:[%s16456_s1 + $0x510] ss:$12 sps:$4 sm:$0xff]   ;;  %10797 = vmatprep.subr.bf16.mxu1 %v11534_v2 }
  0xe0   : > { %3180 = vmatpush1.bf16.msra.mxu0 %v11480_v30  ;;  %3160 = vmatprep.mubr.bf16.mxu0 %v13110_v49  ;;  %v11539_v49 = vld [vmem:[%s16456_s1 + $0xa10] ss:$12 sps:$4 sm:$0xff]  }
  0xe1   : > { %3181 = vmatprep.subr.bf16.mxu0 %v11489_v58  ;;  %3829 = vmatmul.mubr.bf16.gmra.mrb[84].mxu1 %v13464_v6  ;;  %v386_v30 = vld [vmem:[%s12746_s28 + $0xd8] sm:$0xff] }
  0xe2   : > { %10798 = vmatpush3.bf16.msra.mxu1 %v11538_v10  ;;  %3836 = vmatprep.mubr.bf16.mxu1 %v13473_v11  ;;  %v13559_v57 = vcombine.high %v379_v52, %v386_v30  ;;  %v11537_v58 = vld [vmem:[%s16456_s1 + $0x5bc] ss:$12 sps:$4 sm:$0xff]   ;;  %v13574_v2 = vcombine.low %v379_v52, %v386_v30  ;;  %v11554_v10 = vld [vmem:[%s16456_s1 + $0x604] ss:$12 sps:$4 sm:$0xff]   ;;  %v11583_v52 = vld [vmem:[%s16456_s1 + $0x694] ss:$12 sps:$4 sm:$0xff]   ;;  %v865_v30 = vlaneseq }
  0xe3   : > { %10799 = vmatprep.subr.bf16.mxu1 %v11539_v49  ;;  %v407_v49 = vld [vmem:[%s12746_s28 + $0x180] sm:$0xff] }
  0xe4   : > { %3182 = vmatpush1.bf16.msra.mxu0 %v11487_v62  ;;  %v11542_v62 = vld [vmem:[%s16456_s1 + $0x5d4] ss:$12 sps:$4 sm:$0xff]  }
  0xe5   : > { %3183 = vmatprep.subr.bf16.mxu0 %v11494_v44  ;;  %v400_v44 = vld [vmem:[%s12746_s28 + $0x148] sm:$0xff] }
  0xe6   : > { %10800 = vmatpush3.bf16.msra.mxu1 %v11543_v13  ;;  %v13594_v13 = vcombine.low %v393_v63, %v400_v44 }
  0xe7   : > { %3161 = vmatmul.mubr.bf16.gmra.mrb[12].mxu0 %v13126_v53  ;;  %v13491_v53 = vcombine.low %v392_v4, %v399_v48  ;;  %10801 = vmatprep.subr.bf16.mxu1 %v11546_v17  ;;  %v13579_v4 = vcombine.high %v393_v63, %v400_v44  ;;  %v11547_v48 = vld [vmem:[%s16456_s1 + $0x5e8] ss:$12 sps:$4 sm:$0xff]  }
  0xe8   : > { %3184 = vmatpush1.bf16.msra.mxu0 %v11492_v42  ;;  %3203 = vmatprep.mubr.bf16.mxu0 %v13141_v59  ;;  %v11551_v59 = vld [vmem:[%s16456_s1 + $0xa40] ss:$12 sps:$4 sm:$0xff]   ;;  %v11540_v42 = vld [vmem:[%s16456_s1 + $0x5d0] ss:$12 sps:$4 sm:$0xff]  }
  0xe9   : > { %3185 = vmatprep.subr.bf16.mxu0 %v11501_v5  ;;  %3837 = vmatmul.mubr.bf16.gmra.mrb[88].mxu1 %v13491_v53  ;;  %v11549_v5 = vld [vmem:[%s16456_s1 + $0x5ec] ss:$12 sps:$4 sm:$0xff]  }
  0xea   : > { %10802 = vmatpush3.bf16.msra.mxu1 %v11550_v22  ;;  %3844 = vmatprep.mubr.bf16.mxu1 %v13507_v25 }
  0xeb   : > { %10803 = vmatprep.subr.bf16.mxu1 %v11551_v59  ;;  %v11564_v59 = vld [vmem:[%s16456_s1 + $0x630] ss:$12 sps:$4 sm:$0xff]  }
  0xec   : > { %3186 = vmatpush1.bf16.msra.mxu0 %v11499_v12  ;;  %v414_v12 = vld [vmem:[%s12746_s28 + $0x1b8] sm:$0xff] }
  0xed   : > { %3187 = vmatprep.subr.bf16.mxu0 %v11506_v15  ;;  %v11552_v15 = vld [vmem:[%s16456_s1 + $0x600] ss:$12 sps:$4 sm:$0xff]   ;;  %v13599_v17 = vcombine.high %v407_v49, %v414_v12 }
  0xee   : > { %10804 = vmatpush3.bf16.msra.mxu1 %v11555_v31 }
  0xef   : > { %10805 = vmatprep.subr.bf16.mxu1 %v11558_v8 }
  0xf0   : > { %3188 = vmatpush1.bf16.msra.mxu0 %v11504_v19  ;;  %v11566_v19 = vld [vmem:[%s16456_s1 + $0x634] ss:$12 sps:$4 sm:$0xff]  }
  0xf1   : > { %3189 = vmatprep.subr.bf16.mxu0 %v11513_v24  ;;  %3845 = vmatmul.mubr.bf16.gmra.mrb[92].mxu1 %v13526_v16  ;;  %v13614_v24 = vcombine.low %v407_v49, %v414_v12 }
  0xf2   : > { %10806 = vmatpush3.bf16.msra.mxu1 %v11562_v41  ;;  %3885 = vmatprep.mubr.bf16.mxu1 %v13539_v20  ;;  %v11573_v41 = vld [vmem:[%s16456_s1 + $0x660] ss:$12 sps:$4 sm:$0xff]  }
  0xf3   : > { %10807 = vmatprep.subr.bf16.mxu1 %v11563_v43 }
  0xf4   : > { %3190 = vmatpush1.bf16.msra.mxu0 %v11511_v3  ;;  %v11572_v3 = vld [vmem:[%s16456_s1 + $0x64c] ss:$12 sps:$4 sm:$0xff]  }
  0xf5   : > { %3191 = vmatprep.subr.bf16.mxu0 %v11518_v28 }
  0xf6   : > { %10808 = vmatpush3.bf16.msra.mxu1 %v11567_v50 }
  0xf8   : > { %3192 = vmatpush1.bf16.msra.mxu0 %v11516_v34 }
  0xf9   : > { %3193 = vmatprep.subr.bf16.mxu0 %v11525_v38  ;;  %3886 = vmatmul.mubr.bf16.vlgmr.msra.gmra.mrb[96].mxu1 %v13554_v27 }
  0xfa   : > { %3893 = vmatprep.mubr.bf16.mxu1 %v13559_v57 }
  0xfc   : > { %3194 = vmatpush1.bf16.msra.mxu0 %v11523_v46 }
  0xfd   : > { %3195 = vmatprep.subr.bf16.mxu0 %v11530_v47 }
 0x100   : > { %3196 = vmatpush1.bf16.msra.mxu0 %v11528_v56 }
 0x101   : > { %3197 = vmatprep.subr.bf16.mxu0 %v11537_v58  ;;  %3894 = vmatmul.mubr.bf16.gmra.mrb[100].mxu1 %v13574_v2 }
 0x102   : > { %3901 = vmatprep.mubr.bf16.mxu1 %v13579_v4 }
 0x104   : > { %3198 = vmatpush1.bf16.msra.mxu0 %v11535_v33  ;;  %v11588_v33 = vld [vmem:[%s16456_s1 + $0x6ac] ss:$12 sps:$4 sm:$0xff]  }
 0x105   : > { %3199 = vmatprep.subr.bf16.mxu0 %v11542_v62 }
 0x106   : > { %v10569_v22 = vpop.f32.mrb[0].mxu1 }
 0x108   : > { %3200 = vmatpush1.bf16.msra.mxu0 %v11540_v42  ;;  %v13661_v42 = vshrl.u32 %v865_v30, 7 }
 0x109   : > { %3201 = vmatprep.subr.bf16.mxu0 %v11549_v5  ;;  %3902 = vmatmul.mubr.bf16.gmra.mrb[104].mxu1 %v13594_v13  ;;  %v11586_v5 = vld [vmem:[%s16456_s1 + $0x6a8] ss:$12 sps:$4 sm:$0xff]  }
 0x10a   : > { %3909 = vmatprep.mubr.bf16.mxu1 %v13599_v17  ;;  %v13677_v49 = vsub.s32 2, %v13661_v42 }
 0x10c   : > { %3202 = vmatpush1.bf16.msra.mxu0 %v11547_v48  ;;  %v11591_v48 = vld [vmem:[%s16456_s1 + $0x6c4] ss:$12 sps:$4 sm:$0xff]  }
 0x10d   : > { %3244 = vmatprep.subr.bf16.mxu0 %v11554_v10  ;;  %v863_v10 = vld [vmem:[%s16457_s2] sm:$0x7] }
 0x10f   : > { %3204 = vmatmul.mubr.bf16.vlgmr.msra.gmra.mrb[0].mxu0 %v13162_v1  ;;  %v10570_v1 = vpop.f32.mrb[1].mxu1 }
 0x110   : > { %3245 = vmatpush1.bf16.msra.mxu0 %v11552_v15  ;;  %3213 = vmatprep.mubr.bf16.mxu0 %v13175_v7  ;;  %v13622_v28 = vadd.f32 %v10570_v1, %v10569_v22  ;;  %v10572_v31 = vpop.f32.mrb[2].mxu1  ;;  %v11570_v7 = vld [vmem:[%s16456_s1 + $0x648] ss:$12 sps:$4 sm:$0xff]   ;;  %v11589_v15 = vld [vmem:[%s16456_s1 + $0x6c0] ss:$12 sps:$4 sm:$0xff]   ;;  %v13688_v22 = vrot.slane %v863_v10, %v13677_v49 }
 0x111   : > { %3246 = vmatprep.subr.bf16.mxu0 %v11561_v18  ;;  %v10573_v8 = vpop.f32.mrb[3].mxu1  ;;  %3910 = vmatmul.mubr.bf16.gmra.mrb[108].mxu1 %v13614_v24  ;;  %v11596_v18 = vld [vmem:[%s16456_s1 + $0x6dc] ss:$12 sps:$4 sm:$0xff]  }
 0x112   : > { %v13624_v34 = vadd.f32 %v10573_v8, %v10572_v31  ;;  %v10575_v36 = vpop.f32.mrb[4].mxu1  ;;  %v3498_v31 = vadd.f32 %v13622_v28, %v13688_v22 }
 0x113   : > { %v10576_v38 = vpop.f32.mrb[5].mxu1 }
 0x114   : > { %3247 = vmatpush1.bf16.msra.mxu0 %v11559_v60  ;;  %v13641_v43 = vadd.f32 %v10576_v38, %v10575_v36  ;;  %v10578_v46 = vpop.f32.mrb[6].mxu1  ;;  %v11602_v36 = vld [vmem:[%s16456_s1 + $0x70c] ss:$12 sps:$4 sm:$0xff]   ;;  %v3501_v38 = vadd.f32 %v13624_v34, %v13688_v22 }
 0x115   : > { %3248 = vmatprep.subr.bf16.mxu0 %v11566_v19  ;;  %v10579_v47 = vpop.f32.mrb[7].mxu1 }
 0x116   : > { %v13643_v50 = vadd.f32 %v10579_v47, %v10578_v46  ;;  %v10581_v56 = vpop.f32.mrb[8].mxu1  ;;  %v3506_v34 = vadd.f32 %v13641_v43, %v13688_v22 }
 0x117   : > { %3214 = vmatmul.mubr.bf16.gmra.mrb[4].mxu0 %v13194_v14  ;;  %v11580_v14 = vld [vmem:[%s16456_s1 + $0x67c] ss:$12 sps:$4 sm:$0xff]   ;;  %v10582_v58 = vpop.f32.mrb[9].mxu1 }
 0x118   : > { %3249 = vmatpush1.bf16.msra.mxu0 %v11564_v59  ;;  %3223 = vmatprep.mubr.bf16.mxu0 %v13212_v21  ;;  %v11578_v21 = vld [vmem:[%s16456_s1 + $0x678] ss:$12 sps:$4 sm:$0xff]   ;;  %v13659_v62 = vadd.f32 %v10582_v58, %v10581_v56  ;;  %v10584_v63 = vpop.f32.mrb[10].mxu1 }
 0x119   : > { %3250 = vmatprep.subr.bf16.mxu0 %v11572_v3  ;;  %v10585_v44 = vpop.f32.mrb[11].mxu1  ;;  %v11594_v59 = vld [vmem:[%s16456_s1 + $0x6d8] ss:$12 sps:$4 sm:$0xff]   ;;  %v11599_v3 = vld [vmem:[%s16456_s1 + $0x6f4] ss:$12 sps:$4 sm:$0xff]  }
 0x11c   : > { %3251 = vmatpush1.bf16.msra.mxu0 %v11570_v7 }
 0x11d   : > { %3252 = vmatprep.subr.bf16.mxu0 %v11575_v35  ;;  %v11597_v35 = vld [vmem:[%s16456_s1 + $0x6f0] ss:$12 sps:$4 sm:$0xff]  }
 0x11f   : > { %3224 = vmatmul.mubr.bf16.gmra.mrb[8].mxu0 %v13233_v26  ;;  %v11581_v26 = vld [vmem:[%s16456_s1 + $0x690] ss:$12 sps:$4 sm:$0xff]  }
 0x120   : > { %3253 = vmatpush1.bf16.msra.mxu0 %v11573_v41  ;;  %3233 = vmatprep.mubr.bf16.mxu0 %v13243_v32  ;;  %v13663_v32 = vadd.f32 %v10585_v44, %v10584_v63  ;;  %v3509_v63 = vadd.f32 %v13643_v50, %v13688_v22  ;;  %v3514_v50 = vadd.f32 %v13659_v62, %v13688_v22 }
 0x121   : > { %3254 = vmatprep.subr.bf16.mxu0 %v11580_v14 }
 0x124   : > { %3255 = vmatpush1.bf16.msra.mxu0 %v11578_v21  ;;  %v11600_v21 = vld [vmem:[%s16456_s1 + $0x708] ss:$12 sps:$4 sm:$0xff]  }
 0x125   : > { %3256 = vmatprep.subr.bf16.mxu0 %v11583_v52  ;;  %v11605_v52 = vld [vmem:[%s16456_s1 + $0x724] ss:$12 sps:$4 sm:$0xff]  }
 0x127   : > { %3234 = vmatmul.mubr.bf16.gmra.mrb[12].mxu0 %v13262_v40  ;;  %v10587_v40 = vpop.f32.mrb[12].mxu1 }
 0x128   : > { %3257 = vmatpush1.bf16.msra.mxu0 %v11581_v26  ;;  %3276 = vmatprep.mubr.bf16.mxu0 %v13278_v51  ;;  %v10588_v12 = vpop.f32.mrb[13].mxu1  ;;  %v11603_v26 = vld [vmem:[%s16456_s1 + $0x720] ss:$12 sps:$4 sm:$0xff]  }
 0x129   : > { %3258 = vmatprep.subr.bf16.mxu0 %v11588_v33  ;;  %v13685_v51 = vadd.f32 %v10588_v12, %v10587_v40  ;;  %v10590_v60 = vpop.f32.mrb[14].mxu1  ;;  %v11608_v33 = vld [vmem:[%s16456_s1 + $0x73c] ss:$12 sps:$4 sm:$0xff]   ;;  %v11606_v40 = vld [vmem:[%s16456_s1 + $0x738] ss:$12 sps:$4 sm:$0xff]  }
 0x12a   : > { %v10591_v19 = vpop.f32.mrb[15].mxu1  ;;  %v11611_v12 = vld [vmem:[%s16456_s1 + $0x754] ss:$12 sps:$4 sm:$0xff]  }
 0x12b   : > { %v13690_v1 = vadd.f32 %v10591_v19, %v10590_v60  ;;  %v10609_v8 = vpop.f32.mrb[16].mxu1  ;;  %v11609_v19 = vld [vmem:[%s16456_s1 + $0x750] ss:$12 sps:$4 sm:$0xff]  }
 0x12c   : > { %3259 = vmatpush1.bf16.msra.mxu0 %v11586_v5  ;;  %v10610_v7 = vpop.f32.mrb[17].mxu1 }
 0x12d   : > { %3260 = vmatprep.subr.bf16.mxu0 %v11591_v48  ;;  %v10611_v41 = vadd.f32 %v10610_v7, %v10609_v8  ;;  %v10612_v14 = vpop.f32.mrb[18].mxu1 }
 0x12e   : > { %v10613_v46 = vpop.f32.mrb[19].mxu1 }
 0x12f   : > { %v13708_v47 = vadd.f32 %v10611_v41, %v3498_v31  ;;  %v10614_v28 = vadd.f32 %v10613_v46, %v10612_v14  ;;  %v10615_v56 = vpop.f32.mrb[20].mxu1  ;;  %v3522_v14 = vadd.f32 %v13685_v51, %v13688_v22 }
 0x130   : > { %3261 = vmatpush1.bf16.msra.mxu0 %v11589_v15  ;;  %v10616_v58 = vpop.f32.mrb[21].mxu1 }
 0x131   : > { %3262 = vmatprep.subr.bf16.mxu0 %v11596_v18  ;;  %v13716_v30 = vadd.f32 %v10614_v28, %v3501_v38  ;;  %v10617_v44 = vadd.f32 %v10616_v58, %v10615_v56  ;;  %v10618_v5 = vpop.f32.mrb[22].mxu1  ;;  %v11617_v38 = vld [vmem:[%s16456_s1 + $0x784] ss:$12 sps:$4 sm:$0xff]   ;;  %v11620_v28 = vld [vmem:[%s16456_s1 + $0x79c] ss:$12 sps:$4 sm:$0xff]  }
 0x132   : > { %v10619_v48 = vpop.f32.mrb[23].mxu1 }
 0x133   : > { %v13728_v10 = vadd.f32 %v10617_v44, %v3506_v34  ;;  %v10620_v43 = vadd.f32 %v10619_v48, %v10618_v5  ;;  %v11626_v5 = vld [vmem:[%s16456_s1 + $0x7cc] ss:$12 sps:$4 sm:$0xff]  }
 0x134   : > { %3263 = vmatpush1.bf16.msra.mxu0 %v11594_v59  ;;  %v11614_v59 = vld [vmem:[%s16456_s1 + $0x76c] ss:$12 sps:$4 sm:$0xff]  }
 0x135   : > { %3264 = vmatprep.subr.bf16.mxu0 %v11599_v3  ;;  %v13736_v15 = vadd.f32 %v10620_v43, %v3509_v63  ;;  %v3517_v3 = vadd.f32 %v13663_v32, %v13688_v22  ;;  %v11615_v32 = vld [vmem:[%s16456_s1 + $0x780] ss:$12 sps:$4 sm:$0xff]  }
 0x136   : > { %v11623_v63 = vld [vmem:[%s16456_s1 + $0x7b4] ss:$12 sps:$4 sm:$0xff]  }
 0x137   : > { %v10621_v18 = vpop.f32.mrb[24].mxu1 }
 0x138   : > { %3265 = vmatpush1.bf16.msra.mxu0 %v11597_v35  ;;  %v10622_v60 = vpop.f32.mrb[25].mxu1 }
 0x139   : > { %3266 = vmatprep.subr.bf16.mxu0 %v11602_v36  ;;  %v10623_v31 = vadd.f32 %v10622_v60, %v10621_v18  ;;  %v10624_v8 = vpop.f32.mrb[26].mxu1  ;;  %v11612_v36 = vld [vmem:[%s16456_s1 + $0x768] ss:$12 sps:$4 sm:$0xff]   ;;  %v11629_v18 = vld [vmem:[%s16456_s1 + $0x7e4] ss:$12 sps:$4 sm:$0xff]  }
 0x13a   : > { %v10625_v7 = vpop.f32.mrb[27].mxu1 }
 0x13b   : > { %v13748_v35 = vadd.f32 %v10623_v31, %v3514_v50  ;;  %v10626_v62 = vadd.f32 %v10625_v7, %v10624_v8 }
 0x13c   : > { %3267 = vmatpush1.bf16.msra.mxu0 %v11600_v21 }
 0x13d   : > { %3268 = vmatprep.subr.bf16.mxu0 %v11605_v52  ;;  %v13756_v41 = vadd.f32 %v10626_v62, %v3517_v3  ;;  %v3525_v52 = vadd.f32 %v13690_v1, %v13688_v22  ;;  %v11621_v1 = vld [vmem:[%s16456_s1 + $0x7b0] ss:$12 sps:$4 sm:$0xff]   ;;  %v11635_v62 = vld [vmem:[%s16456_s1 + $0x814] ss:$12 sps:$4 sm:$0xff]  }
 0x13f   : > { %v10627_v46 = vpop.f32.mrb[28].mxu1 }
 0x140   : > { %3269 = vmatpush1.bf16.msra.mxu0 %v11603_v26  ;;  %v10628_v21 = vpop.f32.mrb[29].mxu1  ;;  %v11618_v26 = vld [vmem:[%s16456_s1 + $0x798] ss:$12 sps:$4 sm:$0xff]  }
 0x141   : > { %3270 = vmatprep.subr.bf16.mxu0 %v11608_v33  ;;  %v10629_v34 = vadd.f32 %v10628_v21, %v10627_v46  ;;  %v10630_v56 = vpop.f32.mrb[30].mxu1 }
 0x142   : > { %v10631_v58 = vpop.f32.mrb[31].mxu1 }
 0x143   : > { %v13771_v33 = vadd.f32 %v10629_v34, %v3522_v14  ;;  %v10632_v51 = vadd.f32 %v10631_v58, %v10630_v56  ;;  %v11639_v56 = vld [vmem:[%s16456_s1 + $0x840] ss:$12 sps:$4 sm:$0xff]   ;;  %v11644_v58 = vld [vmem:[%s16456_s1 + $0x85c] ss:$12 sps:$4 sm:$0xff]  }
 0x144   : > { %3271 = vmatpush1.bf16.msra.mxu0 %v11606_v40 }
 0x145   : > { %3272 = vmatprep.subr.bf16.mxu0 %v11611_v12  ;;  %v13778_v22 = vadd.f32 %v10632_v51, %v3525_v52  ;;  %v11641_v52 = vld [vmem:[%s16456_s1 + $0x844] ss:$12 sps:$4 sm:$0xff]  }
 0x147   : > { %v10649_v44 = vpop.f32.mrb[32].mxu1 }
 0x148   : > { %3273 = vmatpush1.bf16.msra.mxu0 %v11609_v19  ;;  %v11627_v19 = vld [vmem:[%s16456_s1 + $0x7e0] ss:$12 sps:$4 sm:$0xff]  }
 0x149   : > { %3274 = vmatprep.subr.bf16.mxu0 %v11614_v59  ;;  %v11632_v59 = vld [vmem:[%s16456_s1 + $0x7fc] ss:$12 sps:$4 sm:$0xff]  }
 0x14c   : > { %3275 = vmatpush1.bf16.msra.mxu0 %v11612_v36 }
 0x14d   : > { %3317 = vmatprep.subr.bf16.mxu0 %v11617_v38  ;;  %v11633_v38 = vld [vmem:[%s16456_s1 + $0x810] ss:$12 sps:$4 sm:$0xff]  }
 0x14f   : > { %3277 = vmatmul.mubr.bf16.vlgmr.msra.gmra.mrb[0].mxu0 %v13298_v37  ;;  %v10650_v37 = vpop.f32.mrb[33].mxu1 }
 0x150   : > { %3318 = vmatpush1.bf16.msra.mxu0 %v11615_v32  ;;  %3286 = vmatprep.mubr.bf16.mxu0 %v13307_v0  ;;  %v10651_v48 = vadd.f32 %v10650_v37, %v10649_v44  ;;  %v10652_v43 = vpop.f32.mrb[34].mxu1  ;;  %v11624_v0 = vld [vmem:[%s16456_s1 + $0x7c8] ss:$12 sps:$4 sm:$0xff]   ;;  %v11638_v32 = vld [vmem:[%s16456_s1 + $0x82c] ss:$12 sps:$4 sm:$0xff]  }
 0x151   : > { %3319 = vmatprep.subr.bf16.mxu0 %v11620_v28  ;;  %v10653_v40 = vpop.f32.mrb[35].mxu1  ;;  %v11647_v44 = vld [vmem:[%s16456_s1 + $0x874] ss:$12 sps:$4 sm:$0xff]   ;;  %v11645_v37 = vld [vmem:[%s16456_s1 + $0x870] ss:$12 sps:$4 sm:$0xff]  }
 0x152   : > { %v13790_v12 = vadd.f32 %v10651_v48, %v13708_v47  ;;  %v10654_v50 = vadd.f32 %v10653_v40, %v10652_v43  ;;  %v10655_v47 = vpop.f32.mrb[36].mxu1 }
 0x153   : > { %v10656_v3 = vpop.f32.mrb[37].mxu1 }
 0x154   : > { %3320 = vmatpush1.bf16.msra.mxu0 %v11618_v26  ;;  %v13798_v60 = vadd.f32 %v10654_v50, %v13716_v30  ;;  %v10657_v31 = vadd.f32 %v10656_v3, %v10655_v47  ;;  %v11653_v47 = vld [vmem:[%s16456_s1 + $0x8a4] ss:$12 sps:$4 sm:$0xff]   ;;  %v11651_v3 = vld [vmem:[%s16456_s1 + $0x8a0] ss:$12 sps:$4 sm:$0xff]  }
 0x155   : > { %3321 = vmatprep.subr.bf16.mxu0 %v11623_v63 }
 0x156   : > { %v13810_v30 = vadd.f32 %v10657_v31, %v13728_v10 }
 0x157   : > { %3287 = vmatmul.mubr.bf16.gmra.mrb[4].mxu0 %v13327_v9  ;;  %v10658_v9 = vpop.f32.mrb[38].mxu1 }
 0x158   : > { %3322 = vmatpush1.bf16.msra.mxu0 %v11621_v1  ;;  %3296 = vmatprep.mubr.bf16.mxu0 %v13339_v55  ;;  %v10659_v8 = vpop.f32.mrb[39].mxu1  ;;  %v11630_v55 = vld [vmem:[%s16456_s1 + $0x7f8] ss:$12 sps:$4 sm:$0xff]  }
 0x159   : > { %3323 = vmatprep.subr.bf16.mxu0 %v11626_v5  ;;  %v10660_v7 = vadd.f32 %v10659_v8, %v10658_v9  ;;  %v10661_v10 = vpop.f32.mrb[40].mxu1 }
 0x15a   : > { %v10662_v14 = vpop.f32.mrb[41].mxu1 }
 0x15b   : > { %v13818_v36 = vadd.f32 %v10660_v7, %v13736_v15  ;;  %v10663_v46 = vadd.f32 %v10662_v14, %v10661_v10  ;;  %v11659_v10 = vld [vmem:[%s16456_s1 + $0x8d4] ss:$12 sps:$4 sm:$0xff]   ;;  %v11657_v14 = vld [vmem:[%s16456_s1 + $0x8d0] ss:$12 sps:$4 sm:$0xff]  }
 0x15c   : > { %3324 = vmatpush1.bf16.msra.mxu0 %v11624_v0 }
 0x15d   : > { %3325 = vmatprep.subr.bf16.mxu0 %v11629_v18  ;;  %v13830_v15 = vadd.f32 %v10663_v46, %v13748_v35 }
 0x15f   : > { %3297 = vmatmul.mubr.bf16.gmra.mrb[8].mxu0 %v13361_v23  ;;  %v10664_v23 = vpop.f32.mrb[42].mxu1 }
 0x160   : > { %3326 = vmatpush1.bf16.msra.mxu0 %v11627_v19  ;;  %3306 = vmatprep.mubr.bf16.mxu0 %v13371_v29  ;;  %v10665_v28 = vpop.f32.mrb[43].mxu1  ;;  %v11636_v29 = vld [vmem:[%s16456_s1 + $0x828] ss:$12 sps:$4 sm:$0xff]  }
 0x161   : > { %3327 = vmatprep.subr.bf16.mxu0 %v11632_v59  ;;  %v10666_v21 = vadd.f32 %v10665_v28, %v10664_v23  ;;  %v10667_v35 = vpop.f32.mrb[44].mxu1 }
 0x162   : > { %v10668_v26 = vpop.f32.mrb[45].mxu1 }
 0x163   : > { %v13838_v34 = vadd.f32 %v10666_v21, %v13756_v41  ;;  %v10669_v51 = vadd.f32 %v10668_v26, %v10667_v35  ;;  %v11665_v35 = vld [vmem:[%s16456_s1 + $0x904] ss:$12 sps:$4 sm:$0xff]   ;;  %v11663_v26 = vld [vmem:[%s16456_s1 + $0x900] ss:$12 sps:$4 sm:$0xff]  }
 0x164   : > { %3328 = vmatpush1.bf16.msra.mxu0 %v11630_v55 }
 0x165   : > { %3329 = vmatprep.subr.bf16.mxu0 %v11635_v62  ;;  %v13850_v41 = vadd.f32 %v10669_v51, %v13771_v33  ;;  %v11650_v33 = vld [vmem:[%s16456_s1 + $0x88c] ss:$12 sps:$4 sm:$0xff]  }
 0x167   : > { %3307 = vmatmul.mubr.bf16.gmra.mrb[12].mxu0 %v13396_v39  ;;  %v10670_v39 = vpop.f32.mrb[46].mxu1 }
 0x168   : > { %3330 = vmatpush1.bf16.msra.mxu0 %v11633_v38  ;;  %3349 = vmatprep.mubr.bf16.mxu0 %v13405_v45  ;;  %v10671_v63 = vpop.f32.mrb[47].mxu1  ;;  %v11642_v45 = vld [vmem:[%s16456_s1 + $0x858] ss:$12 sps:$4 sm:$0xff]  }
 0x169   : > { %3331 = vmatprep.subr.bf16.mxu0 %v11638_v32  ;;  %v10672_v1 = vadd.f32 %v10671_v63, %v10670_v39  ;;  %v10689_v48 = vpop.f32.mrb[48].mxu1 }
 0x16a   : > { %v10690_v43 = vpop.f32.mrb[49].mxu1 }
 0x16b   : > { %v13856_v5 = vadd.f32 %v10672_v1, %v13778_v22  ;;  %v10691_v40 = vadd.f32 %v10690_v43, %v10689_v48  ;;  %v10692_v0 = vpop.f32.mrb[50].mxu1  ;;  %v11648_v22 = vld [vmem:[%s16456_s1 + $0x888] ss:$12 sps:$4 sm:$0xff]   ;;  %v11669_v43 = vld [vmem:[%s16456_s1 + $0x930] ss:$12 sps:$4 sm:$0xff]  }
 0x16c   : > { %3332 = vmatpush1.bf16.msra.mxu0 %v11636_v29  ;;  %v10693_v50 = vpop.f32.mrb[51].mxu1  ;;  %v11671_v48 = vld [vmem:[%s16456_s1 + $0x934] ss:$12 sps:$4 sm:$0xff]  }
 0x16d   : > { %3333 = vmatprep.subr.bf16.mxu0 %v11641_v52  ;;  %v13868_v18 = vadd.f32 %v10691_v40, %v13790_v12  ;;  %v10694_v19 = vadd.f32 %v10693_v50, %v10692_v0  ;;  %v11656_v12 = vld [vmem:[%s16456_s1 + $0x8bc] ss:$12 sps:$4 sm:$0xff]  }
 0x16f   : > { %v13874_v59 = vadd.f32 %v10694_v19, %v13798_v60  ;;  %v11654_v60 = vld [vmem:[%s16456_s1 + $0x8b8] ss:$12 sps:$4 sm:$0xff]  }
 0x170   : > { %3334 = vmatpush1.bf16.msra.mxu0 %v11639_v56  ;;  %v10695_v31 = vpop.f32.mrb[52].mxu1 }
 0x171   : > { %3335 = vmatprep.subr.bf16.mxu0 %v11644_v58  ;;  %v10696_v9 = vpop.f32.mrb[53].mxu1 }
 0x172   : > { %v10697_v8 = vadd.f32 %v10696_v9, %v10695_v31  ;;  %v10698_v55 = vpop.f32.mrb[54].mxu1  ;;  %v11675_v31 = vld [vmem:[%s16456_s1 + $0x960] ss:$12 sps:$4 sm:$0xff]  }
 0x173   : > { %v10699_v7 = vpop.f32.mrb[55].mxu1 }
 0x174   : > { %3336 = vmatpush1.bf16.msra.mxu0 %v11642_v45  ;;  %v13886_v62 = vadd.f32 %v10697_v8, %v13810_v30  ;;  %v10700_v38 = vadd.f32 %v10699_v7, %v10698_v55  ;;  %v11662_v30 = vld [vmem:[%s16456_s1 + $0x8ec] ss:$12 sps:$4 sm:$0xff]  }
 0x175   : > { %3337 = vmatprep.subr.bf16.mxu0 %v11647_v44 }
 0x176   : > { %v13892_v32 = vadd.f32 %v10700_v38, %v13818_v36  ;;  %v11660_v36 = vld [vmem:[%s16456_s1 + $0x8e8] ss:$12 sps:$4 sm:$0xff]  }
 0x178   : > { %3338 = vmatpush1.bf16.msra.mxu0 %v11645_v37  ;;  %v10701_v46 = vpop.f32.mrb[56].mxu1 }
 0x179   : > { %3339 = vmatprep.subr.bf16.mxu0 %v11650_v33  ;;  %v10702_v23 = vpop.f32.mrb[57].mxu1 }
 0x17a   : > { %v10703_v28 = vadd.f32 %v10702_v23, %v10701_v46  ;;  %v10704_v29 = vpop.f32.mrb[58].mxu1 }
 0x17b   : > { %v10705_v21 = vpop.f32.mrb[59].mxu1 }
 0x17c   : > { %3340 = vmatpush1.bf16.msra.mxu0 %v11648_v22  ;;  %v13904_v52 = vadd.f32 %v10703_v28, %v13830_v15  ;;  %v10706_v56 = vadd.f32 %v10705_v21, %v10704_v29  ;;  %v11668_v15 = vld [vmem:[%s16456_s1 + $0x91c] ss:$12 sps:$4 sm:$0xff]   ;;  %v11689_v29 = vld [vmem:[%s16456_s1 + $0x9c4] ss:$12 sps:$4 sm:$0xff]  }
 0x17d   : > { %3341 = vmatprep.subr.bf16.mxu0 %v11653_v47  ;;  %v11677_v47 = vld [vmem:[%s16456_s1 + $0x964] ss:$12 sps:$4 sm:$0xff]  }
 0x17e   : > { %v13910_v58 = vadd.f32 %v10706_v56, %v13838_v34  ;;  %v11666_v34 = vld [vmem:[%s16456_s1 + $0x918] ss:$12 sps:$4 sm:$0xff]   ;;  %v11692_v56 = vld [vmem:[%s16456_s1 + $0x9dc] ss:$12 sps:$4 sm:$0xff]  }
 0x180   : > { %3342 = vmatpush1.bf16.msra.mxu0 %v11651_v3  ;;  %v10707_v51 = vpop.f32.mrb[60].mxu1 }
 0x181   : > { %3343 = vmatprep.subr.bf16.mxu0 %v11656_v12  ;;  %v10708_v39 = vpop.f32.mrb[61].mxu1  ;;  %v11680_v12 = vld [vmem:[%s16456_s1 + $0x97c] ss:$12 sps:$4 sm:$0xff]  }
 0x182   : > { %v10709_v63 = vadd.f32 %v10708_v39, %v10707_v51  ;;  %v10710_v45 = vpop.f32.mrb[62].mxu1  ;;  %v11695_v39 = vld [vmem:[%s16456_s1 + $0x9f4] ss:$12 sps:$4 sm:$0xff]  }
 0x183   : > { %v10711_v1 = vpop.f32.mrb[63].mxu1 }
 0x184   : > { %3344 = vmatpush1.bf16.msra.mxu0 %v11654_v60  ;;  %v13922_v44 = vadd.f32 %v10709_v63, %v13850_v41  ;;  %v10712_v37 = vadd.f32 %v10711_v1, %v10710_v45  ;;  %v11683_v60 = vld [vmem:[%s16456_s1 + $0x994] ss:$12 sps:$4 sm:$0xff]   ;;  %v11693_v45 = vld [vmem:[%s16456_s1 + $0x9f0] ss:$12 sps:$4 sm:$0xff]  }
 0x185   : > { %3345 = vmatprep.subr.bf16.mxu0 %v11659_v10  ;;  %v11681_v10 = vld [vmem:[%s16456_s1 + $0x990] ss:$12 sps:$4 sm:$0xff]  }
 0x186   : > { %v13930_v33 = vadd.f32 %v10712_v37, %v13856_v5 }
 0x188   : > { %3346 = vmatpush1.bf16.msra.mxu0 %v11657_v14  ;;  %v10729_v41 = vpop.f32.mrb[64].mxu1  ;;  %v11686_v14 = vld [vmem:[%s16456_s1 + $0x9ac] ss:$12 sps:$4 sm:$0xff]  }
 0x189   : > { %3347 = vmatprep.subr.bf16.mxu0 %v11662_v30  ;;  %v10730_v40 = vpop.f32.mrb[65].mxu1 }
 0x18a   : > { %v10731_v0 = vadd.f32 %v10730_v40, %v10729_v41  ;;  %v10732_v50 = vpop.f32.mrb[66].mxu1  ;;  %v11701_v40 = vld [vmem:[%s16456_s1 + $0xa24] ss:$12 sps:$4 sm:$0xff]  }
 0x18b   : > { %v10733_v22 = vpop.f32.mrb[67].mxu1 }
 0x18c   : > { %3348 = vmatpush1.bf16.msra.mxu0 %v11660_v36  ;;  %v13942_v5 = vadd.f32 %v10731_v0, %v13868_v18  ;;  %v10734_v19 = vadd.f32 %v10733_v22, %v10732_v50  ;;  %v11687_v36 = vld [vmem:[%s16456_s1 + $0x9c0] ss:$12 sps:$4 sm:$0xff]  }
 0x18d   : > { %3390 = vmatprep.subr.bf16.mxu0 %v11665_v35  ;;  %v11699_v50 = vld [vmem:[%s16456_s1 + $0xa20] ss:$12 sps:$4 sm:$0xff]  }
 0x18e   : > { %v13950_v3 = vadd.f32 %v10734_v19, %v13874_v59 }
 0x18f   : > { %3350 = vmatmul.mubr.bf16.vlgmr.msra.gmra.mrb[0].mxu0 %v13427_v54  ;;  %v11674_v54 = vld [vmem:[%s16456_s1 + $0x94c] ss:$12 sps:$4 sm:$0xff]  }
 0x190   : > { %3391 = vmatpush1.bf16.msra.mxu0 %v11663_v26  ;;  %3359 = vmatprep.mubr.bf16.mxu0 %v13439_v61  ;;  %v11672_v61 = vld [vmem:[%s16456_s1 + $0x948] ss:$12 sps:$4 sm:$0xff]   ;;  %v10735_v18 = vpop.f32.mrb[68].mxu1 }
 0x191   : > { %3392 = vmatprep.subr.bf16.mxu0 %v11668_v15  ;;  %v10736_v9 = vpop.f32.mrb[69].mxu1 }
 0x192   : > { %v10737_v8 = vadd.f32 %v10736_v9, %v10735_v18  ;;  %v11707_v9 = vld [vmem:[%s16456_s1 + $0xa54] ss:$12 sps:$4 sm:$0xff]  }
 0x194   : > { %3393 = vmatpush1.bf16.msra.mxu0 %v11666_v34  ;;  %v13962_v59 = vadd.f32 %v10737_v8, %v13886_v62  ;;  %v11698_v34 = vld [vmem:[%s16456_s1 + $0xa0c] ss:$12 sps:$4 sm:$0xff]  }
 0x195   : > { %3394 = vmatprep.subr.bf16.mxu0 %v11671_v48 }
 0x197   : > { %3360 = vmatmul.mubr.bf16.gmra.mrb[4].mxu0 %v13464_v6  ;;  %v10738_v6 = vpop.f32.mrb[70].mxu1 }
 0x198   : > { %3395 = vmatpush1.bf16.msra.mxu0 %v11669_v43  ;;  %3369 = vmatprep.mubr.bf16.mxu0 %v13473_v11  ;;  %v10739_v55 = vpop.f32.mrb[71].mxu1  ;;  %v11678_v11 = vld [vmem:[%s16456_s1 + $0x978] ss:$12 sps:$4 sm:$0xff]  }
 0x199   : > { %3396 = vmatprep.subr.bf16.mxu0 %v11674_v54  ;;  %v10740_v7 = vadd.f32 %v10739_v55, %v10738_v6  ;;  %v10741_v62 = vpop.f32.mrb[72].mxu1  ;;  %v11705_v6 = vld [vmem:[%s16456_s1 + $0xa50] ss:$12 sps:$4 sm:$0xff]  }
 0x19a   : > { %v10742_v46 = vpop.f32.mrb[73].mxu1 }
 0x19b   : > { %v13970_v38 = vadd.f32 %v10740_v7, %v13892_v32  ;;  %v10743_v30 = vadd.f32 %v10742_v46, %v10741_v62 }
 0x19c   : > { %3397 = vmatpush1.bf16.msra.mxu0 %v11672_v61  ;;  %v11704_v61 = vld [vmem:[%s16456_s1 + $0xa3c] ss:$12 sps:$4 sm:$0xff]  }
 0x19d   : > { %3398 = vmatprep.subr.bf16.mxu0 %v11677_v47  ;;  %v13982_v32 = vadd.f32 %v10743_v30, %v13904_v52 }
 0x19f   : > { %3370 = vmatmul.mubr.bf16.gmra.mrb[8].mxu0 %v13491_v53  ;;  %v10744_v53 = vpop.f32.mrb[74].mxu1 }
 0x1a0   : > { %3399 = vmatpush1.bf16.msra.mxu0 %v11675_v31  ;;  %3379 = vmatprep.mubr.bf16.mxu0 %v13507_v25  ;;  %v10745_v23 = vpop.f32.mrb[75].mxu1  ;;  %v11684_v25 = vld [vmem:[%s16456_s1 + $0x9a8] ss:$12 sps:$4 sm:$0xff]  }
 0x1a1   : > { %3400 = vmatprep.subr.bf16.mxu0 %v11680_v12  ;;  %v10746_v28 = vadd.f32 %v10745_v23, %v10744_v53  ;;  %v10747_v52 = vpop.f32.mrb[76].mxu1 }
 0x1a2   : > { %v10748_v35 = vpop.f32.mrb[77].mxu1 }
 0x1a3   : > { %v13990_v21 = vadd.f32 %v10746_v28, %v13910_v58  ;;  %v10749_v26 = vadd.f32 %v10748_v35, %v10747_v52 }
 0x1a4   : > { %3401 = vmatpush1.bf16.msra.mxu0 %v11678_v11 }
 0x1a5   : > { %3402 = vmatprep.subr.bf16.mxu0 %v11683_v60  ;;  %v3782_v58 = vadd.f32 %v10749_v26, %v13922_v44 }
 0x1a7   : > { %3380 = vmatmul.mubr.bf16.gmra.mrb[12].mxu0 %v13526_v16  ;;  %v10750_v16 = vpop.f32.mrb[78].mxu1 }
 0x1a8   : > { %3403 = vmatpush1.bf16.msra.mxu0 %v11681_v10  ;;  %3422 = vmatprep.mubr.bf16.mxu0 %v13539_v20  ;;  %v10751_v51 = vpop.f32.mrb[79].mxu1  ;;  %v11690_v20 = vld [vmem:[%s16456_s1 + $0x9d8] ss:$12 sps:$4 sm:$0xff]  }
 0x1a9   : > { %3404 = vmatprep.subr.bf16.mxu0 %v11686_v14  ;;  %v10752_v15 = vadd.f32 %v10751_v51, %v10750_v16 }
 0x1ab   : > { %v3785_v63 = vadd.f32 %v10752_v15, %v13930_v33  ;;  %v11696_v33 = vld [vmem:[%s16456_s1 + $0xa08] ss:$12 sps:$4 sm:$0xff]  }
 0x1ac   : > { %3405 = vmatpush1.bf16.msra.mxu0 %v11684_v25  ;;  %v10769_v1 = vpop.f32.mrb[80].mxu1 }
 0x1ad   : > { %3406 = vmatprep.subr.bf16.mxu0 %v11689_v29  ;;  %v10770_v37 = vpop.f32.mrb[81].mxu1 }
 0x1ae   : > { %v10771_v44 = vadd.f32 %v10770_v37, %v10769_v1  ;;  %v10772_v48 = vpop.f32.mrb[82].mxu1 }
 0x1af   : > { %v10773_v43 = vpop.f32.mrb[83].mxu1 }
 0x1b0   : > { %3407 = vmatpush1.bf16.msra.mxu0 %v11687_v36  ;;  %v3823_v41 = vadd.f32 %v10771_v44, %v13942_v5  ;;  %v10774_v54 = vadd.f32 %v10773_v43, %v10772_v48 }
 0x1b1   : > { %3408 = vmatprep.subr.bf16.mxu0 %v11692_v56 }
 0x1b2   : > { %v3826_v0 = vadd.f32 %v10774_v54, %v13950_v3  ;;  %v11702_v3 = vld [vmem:[%s16456_s1 + $0xa38] ss:$12 sps:$4 sm:$0xff]  }
 0x1b4   : > { %3409 = vmatpush1.bf16.msra.mxu0 %v11690_v20  ;;  %v10775_v22 = vpop.f32.mrb[84].mxu1 }
 0x1b5   : > { %3410 = vmatprep.subr.bf16.mxu0 %v11695_v39  ;;  %v10776_v19 = vpop.f32.mrb[85].mxu1 }
 0x1b6   : > { %v10777_v5 = vadd.f32 %v10776_v19, %v10775_v22  ;;  %v10778_v47 = vpop.f32.mrb[86].mxu1 }
 0x1b7   : > { %v10779_v31 = vpop.f32.mrb[87].mxu1 }
 0x1b8   : > { %3411 = vmatpush1.bf16.msra.mxu0 %v11693_v45  ;;  %v3831_v18 = vadd.f32 %v10777_v5, %v13962_v59  ;;  %v10780_v12 = vadd.f32 %v10779_v31, %v10778_v47  ;;  %v11710_v59 = vld [vmem:[%s16456_s1 + $0xa6c] ss:$12 sps:$4 sm:$0xff]  }
 0x1b9   : > { %3412 = vmatprep.subr.bf16.mxu0 %v11698_v34 }
 0x1ba   : > { %v3834_v8 = vadd.f32 %v10780_v12, %v13970_v38  ;;  %v11708_v38 = vld [vmem:[%s16456_s1 + $0xa68] ss:$12 sps:$4 sm:$0xff]  }
 0x1bc   : > { %3413 = vmatpush1.bf16.msra.mxu0 %v11696_v33  ;;  %v10781_v55 = vpop.f32.mrb[88].mxu1 }
 0x1bd   : > { %3414 = vmatprep.subr.bf16.mxu0 %v11701_v40  ;;  %v10782_v11 = vpop.f32.mrb[89].mxu1 }
 0x1be   : > { %v10783_v7 = vadd.f32 %v10782_v11, %v10781_v55  ;;  %v10784_v60 = vpop.f32.mrb[90].mxu1 }
 0x1bf   : > { %v10785_v10 = vpop.f32.mrb[91].mxu1 }
 0x1c0   : > { %3415 = vmatpush1.bf16.msra.mxu0 %v11699_v50  ;;  %v3839_v62 = vadd.f32 %v10783_v7, %v13982_v32  ;;  %v10786_v14 = vadd.f32 %v10785_v10, %v10784_v60 }
 0x1c1   : > { %3416 = vmatprep.subr.bf16.mxu0 %v11704_v61 }
 0x1c2   : > { %v14045_v46 = vadd.f32 %v10786_v14, %v13990_v21 }
 0x1c4   : > { %3417 = vmatpush1.bf16.msra.mxu0 %v11702_v3  ;;  %v10787_v30 = vpop.f32.mrb[92].mxu1 }
 0x1c5   : > { %3418 = vmatprep.subr.bf16.mxu0 %v11707_v9  ;;  %v10788_v53 = vpop.f32.mrb[93].mxu1 }
 0x1c6   : > { %v10789_v23 = vadd.f32 %v10788_v53, %v10787_v30  ;;  %v10790_v25 = vpop.f32.mrb[94].mxu1 }
 0x1c7   : > { %v10791_v28 = vpop.f32.mrb[95].mxu1 }
 0x1c8   : > { %3419 = vmatpush1.bf16.msra.mxu0 %v11705_v6  ;;  %v14047_v29 = vadd.f32 %v10789_v23, %v3782_v58  ;;  %v10792_v36 = vadd.f32 %v10791_v28, %v10790_v25 }
 0x1c9   : > { %3420 = vmatprep.subr.bf16.mxu0 %v11710_v59 }
 0x1ca   : > { %v14051_v32 = vadd.f32 %v10792_v36, %v3785_v63 }
 0x1cc   : > { %3421 = vmatpush1.bf16.msra.mxu0 %v11708_v38  ;;  %v10809_v52 = vpop.f32.mrb[96].mxu1 }
 0x1cd   : > { %v10810_v56 = vpop.f32.mrb[97].mxu1 }
 0x1ce   : > { %v10811_v21 = vadd.f32 %v10810_v56, %v10809_v52  ;;  %v10812_v35 = vpop.f32.mrb[98].mxu1 }
 0x1cf   : > { %3423 = vmatmul.mubr.bf16.vlgmr.msra.gmra.mrb[0].mxu0 %v13554_v27  ;;  %v10813_v26 = vpop.f32.mrb[99].mxu1 }
 0x1d0   : > { %3432 = vmatprep.mubr.bf16.mxu0 %v13559_v57  ;;  %v3888_v16 = vadd.f32 %v10811_v21, %v3823_v41  ;;  %v10814_v51 = vadd.f32 %v10813_v26, %v10812_v35 }
 0x1d2   : > { %v14055_v20 = vmax.f32 %v3888_v16, 0.0  ;;  %v3891_v58 = vadd.f32 %v10814_v51, %v3826_v0 }
 0x1d4   : > { %v14057_v15 = vmax.f32 %v3891_v58, 0.0  ;;  %v10815_v27 = vpop.f32.mrb[100].mxu1  ;;  %v3967_v57 = vrot.slane %v14055_v20, 7  ;;  %v4057_v39 = vrot.slane %v14055_v20, 1 }
 0x1d5   : > { %v10816_v63 = vpop.f32.mrb[101].mxu1 }
 0x1d6   : > { %v10817_v45 = vadd.f32 %v10816_v63, %v10815_v27  ;;  %v10818_v1 = vpop.f32.mrb[102].mxu1  ;;  %v4137_v34 = vpack.c.bf16 %v14057_v15, %v14055_v20  ;;  %v14066_v44 = vsel %vm4088_vm0, %v4057_v39, 0.0 }
 0x1d7   : > { %3433 = vmatmul.mubr.bf16.gmra.mrb[4].mxu0 %v13574_v2  ;;  %v3969_v2 = vrot.slane %v14057_v15, 7  ;;  %v10819_v37 = vpop.f32.mrb[103].mxu1 }
 0x1d8   : > { %3442 = vmatprep.mubr.bf16.mxu0 %v13579_v4  ;;  %v4059_v4 = vrot.slane %v14057_v15, 1  ;;  %v3896_v48 = vadd.f32 %v10817_v45, %v3831_v18  ;;  %v10820_v43 = vadd.f32 %v10819_v37, %v10818_v1  ;;  %v11716_v37 = vld [vmem:[%s16458_s3 + $0xd4] ss:$8 sps:$4 sm:$0xff]  }
 0x1d9   : > { %v14068_v33 = vpack.i.bf16 %v3969_v2, %v3967_v57  ;;  %v11711_v2 = vld [vmem:[%s16458_s3 + $0xc0] ss:$8 sps:$4 sm:$0xff]  }
 0x1da   : > { %v14071_v41 = vsel %vm4088_vm0, %v4059_v4, 0.0  ;;  %v14077_v40 = vmax.f32 %v3896_v48, 0.0  ;;  %v3899_v0 = vadd.f32 %v10820_v43, %v3834_v8  ;;  %v11713_v4 = vld [vmem:[%s16458_s3 + $0xc4] ss:$8 sps:$4 sm:$0xff]   ;;  %v11714_v48 = vld [vmem:[%s16458_s3 + $0xd0] ss:$8 sps:$4 sm:$0xff]  }
 0x1db   : > { %v4610_v54 = vpack.c.bf16 %v14071_v41, %v14066_v44  ;;  %4331 = vmatprep.subr.bf16.mxu1 %v11713_v4  ;;  %v11719_v43 = vld [vmem:[%s16458_s3 + $0xe4] ss:$8 sps:$4 sm:$0xff]  }
 0x1dc   : > { %v14079_v50 = vmax.f32 %v3899_v0, 0.0  ;;  %v10821_v22 = vpop.f32.mrb[104].mxu1  ;;  %v3971_v61 = vrot.slane %v14077_v40, 7  ;;  %v4061_v19 = vrot.slane %v14077_v40, 1  ;;  %4332 = vmatpush1.bf16.msra.mxu1 %v11711_v2  ;;  %v11717_v0 = vld [vmem:[%s16458_s3 + $0xe0] ss:$8 sps:$4 sm:$0xff]  }
 0x1dd   : > { %v10822_v5 = vpop.f32.mrb[105].mxu1  ;;  %4333 = vmatprep.subr.bf16.mxu1 %v11716_v37 }
 0x1de   : > { %v10823_v47 = vadd.f32 %v10822_v5, %v10821_v22  ;;  %v10824_v31 = vpop.f32.mrb[106].mxu1  ;;  %v3973_v3 = vrot.slane %v14079_v50, 7  ;;  %v14088_v12 = vsel %vm4088_vm0, %v4061_v19, 0.0  ;;  %v11722_v22 = vld [vmem:[%s16458_s3 + $0xf4] ss:$8 sps:$4 sm:$0xff]  }
 0x1df   : > { %3443 = vmatmul.mubr.bf16.gmra.mrb[8].mxu0 %v13594_v13  ;;  %v4138_v13 = vpack.c.bf16 %v14079_v50, %v14077_v40  ;;  %v10825_v18 = vpop.f32.mrb[107].mxu1  ;;  %v11725_v19 = vld [vmem:[%s16458_s3 + $0x104] ss:$8 sps:$4 sm:$0xff]   ;;  %v11723_v5 = vld [vmem:[%s16458_s3 + $0x100] ss:$8 sps:$4 sm:$0xff]  }
 0x1e0   : > { %3452 = vmatprep.mubr.bf16.mxu0 %v13599_v17  ;;  %v4063_v17 = vrot.slane %v14079_v50, 1  ;;  %v3904_v9 = vadd.f32 %v10823_v47, %v3839_v62  ;;  %v10826_v8 = vadd.f32 %v10825_v18, %v10824_v31  ;;  %v14090_v6 = vpack.i.bf16 %v3973_v3, %v3971_v61  ;;  %4334 = vmatpush1.bf16.msra.mxu1 %v11714_v48  ;;  %v11720_v61 = vld [vmem:[%s16458_s3 + $0xf0] ss:$8 sps:$4 sm:$0xff]   ;;  %v11728_v47 = vld [vmem:[%s16458_s3 + $0x114] ss:$8 sps:$4 sm:$0xff]  }
 0x1e1   : > { %4335 = vmatprep.subr.bf16.mxu1 %v11719_v43  ;;  %v11726_v31 = vld [vmem:[%s16458_s3 + $0x110] ss:$8 sps:$4 sm:$0xff]   ;;  %v11731_v3 = vld [vmem:[%s16458_s3 + $0x124] ss:$8 sps:$4 sm:$0xff]   ;;  %v11734_v18 = vld [vmem:[%s16458_s3 + $0x134] ss:$8 sps:$4 sm:$0xff]  }
 0x1e2   : > { %v14093_v55 = vsel %vm4088_vm0, %v4063_v17, 0.0  ;;  %v14098_v7 = vmax.f32 %v3904_v9, 0.0  ;;  %v3907_v60 = vadd.f32 %v10826_v8, %v14045_v46  ;;  %v11729_v17 = vld [vmem:[%s16458_s3 + $0x120] ss:$8 sps:$4 sm:$0xff]   ;;  %v11732_v9 = vld [vmem:[%s16458_s3 + $0x130] ss:$8 sps:$4 sm:$0xff]  }
 0x1e3   : > { %v4612_v11 = vpack.c.bf16 %v14093_v55, %v14088_v12  ;;  %v11737_v8 = vld [vmem:[%s16458_s3 + $0x144] ss:$8 sps:$4 sm:$0xff]  }
 0x1e4   : > { %v14101_v59 = vmax.f32 %v3907_v60, 0.0  ;;  %v10827_v10 = vpop.f32.mrb[108].mxu1  ;;  %v3975_v62 = vrot.slane %v14098_v7, 7  ;;  %v4065_v14 = vrot.slane %v14098_v7, 1  ;;  %4336 = vmatpush1.bf16.msra.mxu1 %v11717_v0  ;;  %v11735_v60 = vld [vmem:[%s16458_s3 + $0x140] ss:$8 sps:$4 sm:$0xff]  }
 0x1e5   : > { %v10828_v38 = vpop.f32.mrb[109].mxu1  ;;  %4337 = vmatprep.subr.bf16.mxu1 %v11722_v22 }
 0x1e6   : > { %v10829_v30 = vadd.f32 %v10828_v38, %v10827_v10  ;;  %v10830_v53 = vpop.f32.mrb[110].mxu1  ;;  %v3977_v23 = vrot.slane %v14101_v59, 7  ;;  %v4067_v25 = vrot.slane %v14101_v59, 1  ;;  %v14110_v46 = vsel %vm4088_vm0, %v4065_v14, 0.0  ;;  %v11740_v10 = vld [vmem:[%s16458_s3 + $0x154] ss:$8 sps:$4 sm:$0xff]  }
 0x1e7   : > { %3453 = vmatmul.mubr.bf16.gmra.mrb[12].mxu0 %v13614_v24  ;;  %v4139_v24 = vpack.c.bf16 %v14101_v59, %v14098_v7  ;;  %v10831_v28 = vpop.f32.mrb[111].mxu1  ;;  %v11743_v14 = vld [vmem:[%s16458_s3 + $0x164] ss:$8 sps:$4 sm:$0xff]   ;;  %v11741_v38 = vld [vmem:[%s16458_s3 + $0x160] ss:$8 sps:$4 sm:$0xff]  }
 0x1e8   : > { %v3912_v36 = vadd.f32 %v10829_v30, %v14047_v29  ;;  %v10832_v52 = vadd.f32 %v10831_v28, %v10830_v53  ;;  %v14113_v56 = vpack.i.bf16 %v3977_v23, %v3975_v62  ;;  %v14116_v21 = vsel %vm4088_vm0, %v4067_v25, 0.0  ;;  %4338 = vmatpush1.bf16.msra.mxu1 %v11720_v61  ;;  %v11738_v62 = vld [vmem:[%s16458_s3 + $0x150] ss:$8 sps:$4 sm:$0xff]   ;;  %v11746_v23 = vld [vmem:[%s16458_s3 + $0x174] ss:$8 sps:$4 sm:$0xff]  }
 0x1e9   : > { %v4614_v35 = vpack.c.bf16 %v14116_v21, %v14110_v46  ;;  %4339 = vmatprep.subr.bf16.mxu1 %v11725_v19  ;;  %v14208_v30 = vsub.s32 0, %v13661_v42  ;;  %v14211_v53 = vsub.s32 1, %v13661_v42  ;;  %v11744_v25 = vld [vmem:[%s16458_s3 + $0x170] ss:$8 sps:$4 sm:$0xff]   ;;  %v12431_v28 = vld [vmem:[%s16457_s2] sm:$0x7] }
 0x1ea   : > { %v14120_v26 = vmax.f32 %v3912_v36, 0.0  ;;  %v3915_v16 = vadd.f32 %v10832_v52, %v14051_v32  ;;  %v11753_v46 = vld [vmem:[%s16458_s3 + $0x20] ss:$8 sps:$4 sm:$0xff]   ;;  %v11758_v21 = vld [vmem:[%s16458_s3 + $0x34] ss:$8 sps:$4 sm:$0xff]  }
 0x1eb   : > { %v14223_v36 = vrot.slane %v12431_v28, %v14208_v30  ;;  %v14226_v52 = vrot.slane %v12431_v28, %v14211_v53 }
 0x1ec   : > { %v14123_v51 = vmax.f32 %v3915_v16, 0.0  ;;  %v3979_v58 = vrot.slane %v14120_v26, 7  ;;  %v4069_v27 = vrot.slane %v14120_v26, 1  ;;  %4340 = vmatpush1.bf16.msra.mxu1 %v11723_v5  ;;  %v11749_v16 = vld [vmem:[%s16458_s3 + $0x4] ss:$8 sps:$4 sm:$0xff]  }
 0x1ed   : > { %4341 = vmatprep.subr.bf16.mxu1 %v11728_v47 }
 0x1ee   : > { %v4140_v29 = vpack.c.bf16 %v14123_v51, %v14120_v26  ;;  %v3981_v57 = vrot.slane %v14123_v51, 7  ;;  %v4071_v39 = vrot.slane %v14123_v51, 1  ;;  %v14132_v63 = vsel %vm4088_vm0, %v4069_v27, 0.0  ;;  %v11756_v51 = vld [vmem:[%s16458_s3 + $0x30] ss:$8 sps:$4 sm:$0xff]  }
 0x1f0   : > { %v14134_v45 = vpack.i.bf16 %v3981_v57, %v3979_v58  ;;  %v14137_v32 = vsel %vm4088_vm0, %v4071_v39, 0.0  ;;  %4342 = vmatpush1.bf16.msra.mxu1 %v11726_v31 }
 0x1f1   : > { %v4616_v1 = vpack.c.bf16 %v14137_v32, %v14132_v63  ;;  %4343 = vmatprep.subr.bf16.mxu1 %v11731_v3  ;;  %v11761_v63 = vld [vmem:[%s16458_s3 + $0x44] ss:$8 sps:$4 sm:$0xff]   ;;  %v11759_v32 = vld [vmem:[%s16458_s3 + $0x40] ss:$8 sps:$4 sm:$0xff]  }
 0x1f4   : > { %4344 = vmatpush1.bf16.msra.mxu1 %v11729_v17 }
 0x1f5   : > { %4345 = vmatprep.subr.bf16.mxu1 %v11734_v18 }
 0x1f8   : > { %4346 = vmatpush1.bf16.msra.mxu1 %v11732_v9 }
 0x1f9   : > { %4347 = vmatprep.subr.bf16.mxu1 %v11737_v8 }
 0x1fc   : > { %4348 = vmatpush1.bf16.msra.mxu1 %v11735_v60 }
 0x1fd   : > { %4349 = vmatprep.subr.bf16.mxu1 %v11740_v10 }
 0x200   : > { %4350 = vmatpush1.bf16.msra.mxu1 %v11738_v62 }
 0x201   : > { %4351 = vmatprep.subr.bf16.mxu1 %v11743_v14 }
 0x204   : > { %4352 = vmatpush1.bf16.msra.mxu1 %v11741_v38 }
 0x205   : > { %4353 = vmatprep.subr.bf16.mxu1 %v11746_v23 }
 0x208   : > { %4354 = vmatpush1.bf16.msra.mxu1 %v11744_v25 }
 0x209   : > { %4536 = vmatprep.subr.bf16.mxu1 %v11749_v16 }
 0x2a2   : > { %v3424_v58 = vpop.f32.mrb[0].mxu0 }
 0x2a3   : > { %v10833_v27 = vadd.f32 %v3424_v58, %v14223_v36  ;;  %v3426_v57 = vpop.f32.mrb[1].mxu0 }
 0x2a4   : > { %v10834_v39 = vadd.f32 %v3426_v57, %v14226_v52  ;;  %v3428_v2 = vpop.f32.mrb[2].mxu0 }
 0x2a5   : > { %v10835_v4 = vadd.f32 %v3428_v2, %v14223_v36  ;;  %v3430_v37 = vpop.f32.mrb[3].mxu0  ;;  %v3918_v0 = vmax.f32 %v10833_v27, 0.0 }
 0x2a6   : > { %v3919_v48 = vmax.f32 %v10834_v39, 0.0  ;;  %v10836_v43 = vadd.f32 %v3430_v37, %v14226_v52 }
 0x2a7   : > { %v3921_v22 = vmax.f32 %v10835_v4, 0.0 }
 0x2a8   : > { %v4056_v61 = vrot.slane %v3919_v48, 1  ;;  %v3922_v19 = vmax.f32 %v10836_v43, 0.0  ;;  %v3966_v47 = vrot.slane %v3919_v48, 7 }
 0x2a9   : > { %v14235_v5 = vpack.c.bf16 %v3921_v22, %v3918_v0 }
 0x2aa   : > { %v14237_v31 = vpack.c.bf16 %v3922_v19, %v3919_v48  ;;  %v3968_v3 = vrot.slane %v3922_v19, 7  ;;  %v4058_v17 = vrot.slane %v3922_v19, 1  ;;  %v3434_v18 = vpop.f32.mrb[4].mxu0  ;;  %v14246_v14 = vsel %vm4088_vm0, %v4056_v61, 0.0 }
 0x2ab   : > { %v10837_v9 = vadd.f32 %v3434_v18, %v14223_v36  ;;  %v3436_v8 = vpop.f32.mrb[5].mxu0 }
 0x2ac   : > { %v10838_v60 = vadd.f32 %v3436_v8, %v14226_v52  ;;  %v3438_v10 = vpop.f32.mrb[6].mxu0  ;;  %4174 = vrot.lane.b32.xlu0 %v14237_v31, %s12552_s30  ;;  %v14243_v62 = vpack.i.bf16 %v3968_v3, %v3966_v47  ;;  %v14249_v38 = vsel %vm4088_vm0, %v4058_v17, 0.0 }
 0x2ad   : > { %v10839_v23 = vadd.f32 %v3438_v10, %v14223_v36  ;;  %v3440_v25 = vpop.f32.mrb[7].mxu0  ;;  %v4609_v28 = vpack.c.bf16 %v14249_v38, %v14246_v14  ;;  %v3924_v27 = vmax.f32 %v10837_v9, 0.0  ;;  %v11762_v38 = vld [vmem:[%s16458_s3 + $0x50] ss:$8 sps:$4 sm:$0xff]  }
 0x2ae   : > { %v3925_v16 = vmax.f32 %v10838_v60, 0.0  ;;  %v10840_v58 = vadd.f32 %v3440_v25, %v14226_v52 }
 0x2af   : > { %v3927_v57 = vmax.f32 %v10839_v23, 0.0 }
 0x2b0   : > { %v4060_v39 = vrot.slane %v3925_v16, 1  ;;  %v3928_v2 = vmax.f32 %v10840_v58, 0.0  ;;  %4176 = vrot.lane.b32.xlu0 %v4137_v34, %s12552_s30  ;;  %v3970_v37 = vrot.slane %v3925_v16, 7 }
 0x2b1   : > { %v14259_v4 = vpack.c.bf16 %v3927_v57, %v3924_v27 }
 0x2b2   : > { %v14261_v48 = vpack.c.bf16 %v3928_v2, %v3925_v16  ;;  %v3972_v43 = vrot.slane %v3928_v2, 7  ;;  %v4062_v0 = vrot.slane %v3928_v2, 1  ;;  %v3444_v22 = vpop.f32.mrb[8].mxu0  ;;  %v4093_v20 = vsel %vm4088_vm0, %v4060_v39, 0.0 }
 0x2b3   : > { %v10841_v61 = vadd.f32 %v3444_v22, %v14223_v36  ;;  %v3446_v19 = vpop.f32.mrb[9].mxu0 }
 0x2b4   : > { %v10842_v47 = vadd.f32 %v3446_v19, %v14226_v52  ;;  %v3448_v3 = vpop.f32.mrb[10].mxu0  ;;  %4178 = vrot.lane.b32.xlu1 %v14261_v48, %s12552_s30  ;;  %v11182_v17 = vpack.i.bf16 %v3972_v43, %v3970_v37  ;;  %v4095_v15 = vsel %vm4088_vm0, %v4062_v0, 0.0 }
 0x2b5   : > { %v10843_v34 = vadd.f32 %v3448_v3, %v14223_v36  ;;  %v3450_v18 = vpop.f32.mrb[11].mxu0  ;;  %v4611_v9 = vpack.c.bf16 %v4095_v15, %v4093_v20  ;;  %v3930_v10 = vmax.f32 %v10841_v61, 0.0 }
 0x2b6   : > { %v3931_v8 = vmax.f32 %v10842_v47, 0.0  ;;  %v10844_v60 = vadd.f32 %v3450_v18, %v14226_v52 }
 0x2b7   : > { %v3933_v23 = vmax.f32 %v10843_v34, 0.0 }
 0x2b8   : > { %v4064_v25 = vrot.slane %v3931_v8, 1  ;;  %v3934_v16 = vmax.f32 %v10844_v60, 0.0  ;;  %4180 = vrot.lane.b32.xlu1 %v4138_v13, %s12552_s30  ;;  %v3974_v27 = vrot.slane %v3931_v8, 7 }
 0x2b9   : > { %v14275_v58 = vpack.c.bf16 %v3933_v23, %v3930_v10 }
 0x2ba   : > { %v14277_v57 = vpack.c.bf16 %v3934_v16, %v3931_v8  ;;  %v3976_v39 = vrot.slane %v3934_v16, 7  ;;  %v4066_v2 = vrot.slane %v3934_v16, 1  ;;  %v3454_v37 = vpop.f32.mrb[12].mxu0  ;;  %v4097_v50 = vsel %vm4088_vm0, %v4064_v25, 0.0 }
 0x2bb   : > { %v10845_v43 = vadd.f32 %v3454_v37, %v14223_v36  ;;  %v3456_v0 = vpop.f32.mrb[13].mxu0 }
 0x2bc   : > { %v10846_v22 = vadd.f32 %v3456_v0, %v14226_v52  ;;  %v3458_v61 = vpop.f32.mrb[14].mxu0  ;;  %4184 = vrot.lane.b32.xlu1 %v4139_v24, %s12552_s30  ;;  %4182 = vrot.lane.b32.xlu0 %v14277_v57, %s12552_s30  ;;  %v11192_v40 = vpack.i.bf16 %v3976_v39, %v3974_v27  ;;  %v4099_v13 = vsel %vm4088_vm0, %v4066_v2, 0.0  ;;  %v11770_v27 = vld [vmem:[%s16458_s3 + $0x74] ss:$8 sps:$4 sm:$0xff]  }
 0x2bd   : > { %v10847_v19 = vadd.f32 %v3458_v61, %v14223_v36  ;;  %v3460_v47 = vpop.f32.mrb[15].mxu0  ;;  %v4613_v3 = vpack.c.bf16 %v4099_v13, %v4097_v50  ;;  %v3936_v34 = vmax.f32 %v10845_v43, 0.0  ;;  %v11771_v50 = vld [vmem:[%s16458_s3 + $0x80] ss:$8 sps:$4 sm:$0xff]   ;;  %v11776_v13 = vld [vmem:[%s16458_s3 + $0x94] ss:$8 sps:$4 sm:$0xff]  }
 0x2be   : > { %v3937_v20 = vmax.f32 %v10846_v22, 0.0  ;;  %v10848_v15 = vadd.f32 %v3460_v47, %v14226_v52  ;;  %v11768_v22 = vld [vmem:[%s16458_s3 + $0x70] ss:$8 sps:$4 sm:$0xff]   ;;  %v11779_v47 = vld [vmem:[%s16458_s3 + $0xa4] ss:$8 sps:$4 sm:$0xff]  }
 0x2bf   : > { %v3939_v18 = vmax.f32 %v10847_v19, 0.0  ;;  %v11774_v19 = vld [vmem:[%s16458_s3 + $0x90] ss:$8 sps:$4 sm:$0xff]  }
 0x2c0   : > { %v4068_v8 = vrot.slane %v3937_v20, 1  ;;  %v3940_v7 = vmax.f32 %v10848_v15, 0.0  ;;  %4188 = vrot.lane.b32.xlu1 %v4140_v29, %s12552_s30  ;;  %v3978_v24 = vrot.slane %v3937_v20, 7 }
 0x2c1   : > { %v14295_v59 = vpack.c.bf16 %v3939_v18, %v3936_v34  ;;  %v11782_v34 = vld [vmem:[%s16458_s3 + $0xb4] ss:$8 sps:$4 sm:$0xff]  }
 0x2c2   : > { %v14297_v60 = vpack.c.bf16 %v3940_v7, %v3937_v20  ;;  %v3980_v36 = vrot.slane %v3940_v7, 7  ;;  %v4070_v10 = vrot.slane %v3940_v7, 1  ;;  %v4101_v23 = vsel %vm4088_vm0, %v4068_v8, 0.0  ;;  %v11777_v20 = vld [vmem:[%s16458_s3 + $0xa0] ss:$8 sps:$4 sm:$0xff]  }
 0x2c4   : > { %11173 = vrot.lane.b32.xlu1 %v14243_v62, %s12552_s30  ;;  %4186 = vrot.lane.b32.xlu0 %v14297_v60, %s12552_s30  ;;  %v11202_v52 = vpack.i.bf16 %v3980_v36, %v3978_v24  ;;  %v4103_v25 = vsel %vm4088_vm0, %v4070_v10, 0.0  ;;  %v11780_v36 = vld [vmem:[%s16458_s3 + $0xb0] ss:$8 sps:$4 sm:$0xff]   ;;  %v11785_v10 = vld [vmem:[%s16458_s3 + $0x184] ss:$8 sps:$4 sm:$0xff]  }
 0x2c5   : > { %v4615_v26 = vpack.c.bf16 %v4103_v25, %v4101_v23 }
 0x2c8   : > { %11183 = vrot.lane.b32.xlu1 %v11182_v17, %s12552_s30  ;;  %11168 = vrot.lane.b32.xlu0 %v14068_v33, %s12552_s30  ;;  %v11747_v33 = vld [vmem:[%s16458_s3] ss:$8 sps:$4 sm:$0xff]   ;;  %v11767_v17 = vld [vmem:[%s16458_s3 + $0x64] ss:$8 sps:$4 sm:$0xff]  }
 0x2cc   : > { %11193 = vrot.lane.b32.xlu1 %v11192_v40, %s12552_s30  ;;  %11178 = vrot.lane.b32.xlu0 %v14090_v6, %s12552_s30  ;;  %v11750_v6 = vld [vmem:[%s16458_s3 + $0x10] ss:$8 sps:$4 sm:$0xff]   ;;  %v11773_v40 = vld [vmem:[%s16458_s3 + $0x84] ss:$8 sps:$4 sm:$0xff]  }
 0x2d0   : > { %11203 = vrot.lane.b32.xlu1 %v11202_v52, %s12552_s30  ;;  %11188 = vrot.lane.b32.xlu0 %v14113_v56, %s12552_s30 }
 0x2d4   : > { %4652 = vrot.lane.b32.xlu1 %v4610_v54, %s12552_s30  ;;  %11198 = vrot.lane.b32.xlu0 %v14134_v45, %s12552_s30  ;;  %v11752_v54 = vld [vmem:[%s16458_s3 + $0x14] ss:$8 sps:$4 sm:$0xff]  }
 0x2d8   : > { %4656 = vrot.lane.b32.xlu1 %v4612_v11, %s12552_s30  ;;  %4650 = vrot.lane.b32.xlu0 %v4609_v28, %s12552_s30  ;;  %v11755_v11 = vld [vmem:[%s16458_s3 + $0x24] ss:$8 sps:$4 sm:$0xff]  }
 0x2dc   : > { %4660 = vrot.lane.b32.xlu1 %v4614_v35, %s12552_s30  ;;  %4654 = vrot.lane.b32.xlu0 %v4611_v9, %s12552_s30  ;;  %v11765_v9 = vld [vmem:[%s16458_s3 + $0x60] ss:$8 sps:$4 sm:$0xff]  }
 0x2e0   : > { %4664 = vrot.lane.b32.xlu1 %v4616_v1, %s12552_s30  ;;  %4658 = vrot.lane.b32.xlu0 %v4613_v3, %s12552_s30  ;;  %v11764_v1 = vld [vmem:[%s16458_s3 + $0x54] ss:$8 sps:$4 sm:$0xff]  }
 0x2e4   : > { %4662 = vrot.lane.b32.xlu0 %v4615_v26, %s12552_s30 }
 0x31e   : > { %v4175_v44 = vpop.permute.xlu0 %4174 }
 0x322   : > { %v4177_v41 = vpop.permute.xlu0 %4176 }
 0x323   : > { %v4191_v12 = vsel %vm4014_vm1, %v4175_v44, %v4177_v41  ;;  %9922 = vmatprep.mubr.msk.bf16.mxu1 %vm4014_vm1, %v4177_v41  ;;  %v11783_v41 = vld [vmem:[%s16458_s3 + $0x180] ss:$8 sps:$4 sm:$0xff]  }
 0x324   : > { %4364 = vmatmul.mubr.bf16.vlgmr.msra.gmra.mrb[112].mxu1 %v4191_v12 }
 0x325   : > { %4537 = vmatpush1.bf16.msra.mxu1 %v11747_v33  ;;  %v11815_v33 = vld [vmem:[%s16458_s3 + $0x224] ss:$8 sps:$4 sm:$0xff]  }
 0x326   : > { %v4179_v55 = vpop.permute.xlu1 %4178  ;;  %4538 = vmatprep.subr.bf16.mxu1 %v11752_v54 }
 0x329   : > { %4539 = vmatpush1.bf16.msra.mxu1 %v11750_v6  ;;  %v11788_v6 = vld [vmem:[%s16458_s3 + $0x194] ss:$8 sps:$4 sm:$0xff]  }
 0x32a   : > { %v4181_v56 = vpop.permute.xlu1 %4180  ;;  %4540 = vmatprep.subr.bf16.mxu1 %v11755_v11 }
 0x32b   : > { %9923 = vmatprep.mubr.msk.bf16.mxu1 %vm4014_vm1, %v4181_v56  ;;  %v4192_v35 = vsel %vm4014_vm1, %v4179_v55, %v4181_v56 }
 0x32c   : > { %4374 = vmatmul.mubr.bf16.gmra.mrb[116].mxu1 %v4192_v35  ;;  %v11786_v35 = vld [vmem:[%s16458_s3 + $0x190] ss:$8 sps:$4 sm:$0xff]  }
 0x32d   : > { %4541 = vmatpush1.bf16.msra.mxu1 %v11753_v46 }
 0x32e   : > { %v4185_v29 = vpop.permute.xlu1 %4184  ;;  %4542 = vmatprep.subr.bf16.mxu1 %v11758_v21  ;;  %v4183_v45 = vpop.permute.xlu0 %4182 }
 0x32f   : > { %9924 = vmatprep.mubr.msk.bf16.mxu1 %vm4014_vm1, %v4185_v29  ;;  %v4193_v62 = vsel %vm4014_vm1, %v4183_v45, %v4185_v29 }
 0x331   : > { %4543 = vmatpush1.bf16.msra.mxu1 %v11756_v51  ;;  %v11791_v51 = vld [vmem:[%s16458_s3 + $0x1a4] ss:$8 sps:$4 sm:$0xff]  }
 0x332   : > { %4544 = vmatprep.subr.bf16.mxu1 %v11761_v63  ;;  %v4189_v14 = vpop.permute.xlu1 %4188 }
 0x334   : > { %4384 = vmatmul.mubr.bf16.gmra.mrb[120].mxu1 %v4193_v62  ;;  %v11789_v62 = vld [vmem:[%s16458_s3 + $0x1a0] ss:$8 sps:$4 sm:$0xff]  }
 0x335   : > { %4545 = vmatpush1.bf16.msra.mxu1 %v11759_v32  ;;  %9925 = vmatprep.mubr.msk.bf16.mxu1 %vm4014_vm1, %v4189_v14 }
 0x336   : > { %v4187_v28 = vpop.permute.xlu0 %4186  ;;  %4546 = vmatprep.subr.bf16.mxu1 %v11764_v1  ;;  %v11174_v15 = vpop.permute.xlu1 %11173 }
 0x337   : > { %v4194_v37 = vsel %vm4014_vm1, %v4187_v28, %v4189_v14  ;;  %v11176_v7 = vunpack.i.h.bf16 %v11174_v15  ;;  %v11175_v24 = vunpack.i.l.bf16 %v11174_v15  ;;  %v11794_v28 = vld [vmem:[%s16458_s3 + $0x1b4] ss:$8 sps:$4 sm:$0xff]   ;;  %v11798_v15 = vld [vmem:[%s16458_s3 + $0x1d0] ss:$8 sps:$4 sm:$0xff]  }
 0x339   : > { %4547 = vmatpush1.bf16.msra.mxu1 %v11762_v38 }
 0x33a   : > { %v11169_v16 = vpop.permute.xlu0 %11168  ;;  %4548 = vmatprep.subr.bf16.mxu1 %v11767_v17  ;;  %v11184_v54 = vpop.permute.xlu1 %11183 }
 0x33b   : > { %v11171_v39 = vunpack.i.h.bf16 %v11169_v16  ;;  %v11170_v2 = vunpack.i.l.bf16 %v11169_v16  ;;  %v11186_v56 = vunpack.i.h.bf16 %v11184_v54  ;;  %v11185_v21 = vunpack.i.l.bf16 %v11184_v54  ;;  %v11818_v54 = vld [vmem:[%s16458_s3 + $0x234] ss:$8 sps:$4 sm:$0xff]  }
 0x33c   : > { %4394 = vmatmul.mubr.bf16.gmra.mrb[124].mxu1 %v4194_v37  ;;  %v11797_v37 = vld [vmem:[%s16458_s3 + $0x1c4] ss:$8 sps:$4 sm:$0xff]  }
 0x33d   : > { %v4043_v43 = vsel %vm4039_vm2, 0.0, %v11171_v39  ;;  %v4041_v0 = vsel %vm4039_vm2, 0.0, %v11170_v2  ;;  %4549 = vmatpush1.bf16.msra.mxu1 %v11765_v9  ;;  %v4016_v52 = vsel %vm4014_vm1, %v11176_v7, %v11171_v39  ;;  %v4015_v23 = vsel %vm4014_vm1, %v11175_v24, %v11170_v2  ;;  %v11792_v2 = vld [vmem:[%s16458_s3 + $0x1b0] ss:$8 sps:$4 sm:$0xff]   ;;  %v11801_v7 = vld [vmem:[%s16458_s3 + $0x1e0] ss:$8 sps:$4 sm:$0xff]  }
 0x33e   : > { %v4106_v61 = vpack.c.bf16 %v4043_v43, %v4041_v0  ;;  %4550 = vmatprep.subr.bf16.mxu1 %v11770_v27  ;;  %v11179_v3 = vpop.permute.xlu0 %11178  ;;  %v9954_v12 = vpack.c.bf16 %v4016_v52, %v4015_v23  ;;  %v11194_v14 = vpop.permute.xlu1 %11193  ;;  %v11804_v52 = vld [vmem:[%s16458_s3 + $0x1f0] ss:$8 sps:$4 sm:$0xff]   ;;  %v11809_v23 = vld [vmem:[%s16458_s3 + $0x204] ss:$8 sps:$4 sm:$0xff]  }
 0x33f   : > { %v11181_v18 = vunpack.i.h.bf16 %v11179_v3  ;;  %v11180_v8 = vunpack.i.l.bf16 %v11179_v3  ;;  %v11196_v27 = vunpack.i.h.bf16 %v11194_v14  ;;  %v11195_v39 = vunpack.i.l.bf16 %v11194_v14  ;;  %v11833_v14 = vld [vmem:[%s16460_s5 + $0x104] ss:$8 sps:$4 sm:$0xff]  }
 0x340   : > { %9950 = vmatprep.mubr.msk.bf16.mxu1 %vm4014_vm1, %v4106_v61 }
 0x341   : > { %4551 = vmatpush1.bf16.msra.mxu1 %v11768_v22  ;;  %v4047_v25 = vsel %vm4039_vm2, 0.0, %v11181_v18  ;;  %v4045_v26 = vsel %vm4039_vm2, 0.0, %v11180_v8  ;;  %v4018_v29 = vsel %vm4014_vm1, %v11186_v56, %v11181_v18  ;;  %v4017_v63 = vsel %vm4014_vm1, %v11185_v21, %v11180_v8 }
 0x342   : > { %4552 = vmatprep.subr.bf16.mxu1 %v11773_v40  ;;  %v11189_v44 = vpop.permute.xlu0 %11188  ;;  %v4108_v55 = vpack.c.bf16 %v4047_v25, %v4045_v26  ;;  %v9960_v38 = vpack.c.bf16 %v4018_v29, %v4017_v63  ;;  %v11795_v40 = vld [vmem:[%s16458_s3 + $0x1c0] ss:$8 sps:$4 sm:$0xff]   ;;  %v11812_v26 = vld [vmem:[%s16458_s3 + $0x214] ss:$8 sps:$4 sm:$0xff]  }
 0x343   : > { %v11191_v11 = vunpack.i.h.bf16 %v11189_v44  ;;  %v11190_v46 = vunpack.i.l.bf16 %v11189_v44  ;;  %v11807_v25 = vld [vmem:[%s16458_s3 + $0x200] ss:$8 sps:$4 sm:$0xff]   ;;  %v11810_v44 = vld [vmem:[%s16458_s3 + $0x210] ss:$8 sps:$4 sm:$0xff]  }
 0x344   : > { %v11825_v63 = vld [vmem:[%s16460_s5 + $0xe0] ss:$8 sps:$4 sm:$0xff]  }
 0x345   : > { %4553 = vmatpush1.bf16.msra.mxu1 %v11771_v50  ;;  %v4051_v45 = vsel %vm4039_vm2, 0.0, %v11191_v11  ;;  %v4049_v32 = vsel %vm4039_vm2, 0.0, %v11190_v46  ;;  %v4020_v43 = vsel %vm4014_vm1, %v11196_v27, %v11191_v11  ;;  %v4019_v0 = vsel %vm4014_vm1, %v11195_v39, %v11190_v46  ;;  %v11204_v50 = vpop.permute.xlu1 %11203  ;;  %v11819_v11 = vld [vmem:[%s16460_s5 + $0xc0] ss:$8 sps:$4 sm:$0xff]   ;;  %v11824_v46 = vld [vmem:[%s16460_s5 + $0xd4] ss:$8 sps:$4 sm:$0xff]  }
 0x346   : > { %4554 = vmatprep.subr.bf16.mxu1 %v11776_v13  ;;  %v11199_v1 = vpop.permute.xlu0 %11198  ;;  %v4110_v17 = vpack.c.bf16 %v4051_v45, %v4049_v32  ;;  %v9966_v13 = vpack.c.bf16 %v4020_v43, %v4019_v0  ;;  %v11206_v3 = vunpack.i.h.bf16 %v11204_v50  ;;  %v11830_v45 = vld [vmem:[%s16460_s5 + $0xf4] ss:$8 sps:$4 sm:$0xff]   ;;  %v11834_v27 = vld [vmem:[%s16460_s5 + $0x110] ss:$8 sps:$4 sm:$0xff]   ;;  %v11839_v39 = vld [vmem:[%s16460_s5 + $0x124] ss:$8 sps:$4 sm:$0xff]  }
 0x347   : > { %v11201_v9 = vunpack.i.h.bf16 %v11199_v1  ;;  %v11200_v16 = vunpack.i.l.bf16 %v11199_v1  ;;  %v11842_v43 = vld [vmem:[%s16460_s5 + $0x134] ss:$8 sps:$4 sm:$0xff]  }
 0x349   : > { %4555 = vmatpush1.bf16.msra.mxu1 %v11774_v19  ;;  %v4055_v22 = vsel %vm4039_vm2, 0.0, %v11201_v9  ;;  %v4053_v61 = vsel %vm4039_vm2, 0.0, %v11200_v16  ;;  %v11800_v19 = vld [vmem:[%s16458_s3 + $0x1d4] ss:$8 sps:$4 sm:$0xff]   ;;  %v4022_v18 = vsel %vm4014_vm1, %v11206_v3, %v11201_v9 }
 0x34a   : > { %4556 = vmatprep.subr.bf16.mxu1 %v11779_v47  ;;  %v4112_v47 = vpack.c.bf16 %v4055_v22, %v4053_v61  ;;  %v11840_v22 = vld [vmem:[%s16460_s5 + $0x130] ss:$8 sps:$4 sm:$0xff]   ;;  %v11845_v61 = vld [vmem:[%s16460_s5 + $0x144] ss:$8 sps:$4 sm:$0xff]   ;;  %v11854_v3 = vld [vmem:[%s16460_s5 + $0x174] ss:$8 sps:$4 sm:$0xff]  }
 0x34d   : > { %4557 = vmatpush1.bf16.msra.mxu1 %v11777_v20  ;;  %v11205_v20 = vunpack.i.l.bf16 %v11204_v50  ;;  %v11848_v50 = vld [vmem:[%s16460_s5 + $0x154] ss:$8 sps:$4 sm:$0xff]  }
 0x34e   : > { %4558 = vmatprep.subr.bf16.mxu1 %v11782_v34  ;;  %v11803_v34 = vld [vmem:[%s16458_s3 + $0x1e4] ss:$8 sps:$4 sm:$0xff]  }
 0x34f   : > { %v4021_v8 = vsel %vm4014_vm1, %v11205_v20, %v11200_v16  ;;  %v11852_v20 = vld [vmem:[%s16460_s5 + $0x170] ss:$8 sps:$4 sm:$0xff]  }
 0x350   : > { %v9972_v24 = vpack.c.bf16 %v4022_v18, %v4021_v8 }
 0x351   : > { %4559 = vmatpush1.bf16.msra.mxu1 %v11780_v36  ;;  %v11806_v36 = vld [vmem:[%s16458_s3 + $0x1f4] ss:$8 sps:$4 sm:$0xff]  }
 0x352   : > { %4806 = vmatprep.subr.bf16.mxu1 %v11785_v10  ;;  %v4653_v10 = vpop.permute.xlu1 %4652 }
 0x354   : > { %9955 = vmatmul.mubr.msk.bf16.vlgmr.msra.gmra.mrb[112].mxu1 %vm14427_vm4, %v9954_v12  ;;  %v11816_v12 = vld [vmem:[%s16458_s3 + $0x230] ss:$8 sps:$4 sm:$0xff]  }
 0x355   : > { %9956 = vmatprep.mubr.msk.bf16.mxu1 %vm4014_vm1, %v4108_v55  ;;  %4807 = vmatpush1.bf16.msra.mxu1 %v11783_v41  ;;  %v11813_v41 = vld [vmem:[%s16458_s3 + $0x220] ss:$8 sps:$4 sm:$0xff]   ;;  %v4651_v55 = vpop.permute.xlu0 %4650 }
 0x356   : > { %4808 = vmatprep.subr.bf16.mxu1 %v11788_v6  ;;  %v11821_v6 = vld [vmem:[%s16460_s5 + $0xc4] ss:$8 sps:$4 sm:$0xff]   ;;  %v4666_v56 = vsel %vm4014_vm1, %v4651_v55, %v4653_v10  ;;  %v4657_v21 = vpop.permute.xlu1 %4656 }
 0x359   : > { %4809 = vmatpush1.bf16.msra.mxu1 %v11786_v35  ;;  %v11822_v35 = vld [vmem:[%s16460_s5 + $0xd0] ss:$8 sps:$4 sm:$0xff]   ;;  %v4655_v29 = vpop.permute.xlu0 %4654 }
 0x35a   : > { %4810 = vmatprep.subr.bf16.mxu1 %v11791_v51  ;;  %v11827_v51 = vld [vmem:[%s16460_s5 + $0xe4] ss:$8 sps:$4 sm:$0xff]   ;;  %v4667_v32 = vsel %vm4014_vm1, %v4655_v29, %v4657_v21  ;;  %v4661_v1 = vpop.permute.xlu1 %4660 }
 0x35c   : > { %9961 = vmatmul.mubr.msk.bf16.gmra.mrb[116].mxu1 %vm14427_vm4, %v9960_v38 }
 0x35d   : > { %9962 = vmatprep.mubr.msk.bf16.mxu1 %vm4014_vm1, %v4110_v17  ;;  %4811 = vmatpush1.bf16.msra.mxu1 %v11789_v62  ;;  %v11828_v62 = vld [vmem:[%s16460_s5 + $0xf0] ss:$8 sps:$4 sm:$0xff]   ;;  %v4659_v38 = vpop.permute.xlu0 %4658  ;;  %v11836_v17 = vld [vmem:[%s16460_s5 + $0x114] ss:$8 sps:$4 sm:$0xff]  }
 0x35e   : > { %4812 = vmatprep.subr.bf16.mxu1 %v11794_v28  ;;  %v11831_v28 = vld [vmem:[%s16460_s5 + $0x100] ss:$8 sps:$4 sm:$0xff]   ;;  %v4668_v9 = vsel %vm4014_vm1, %v4659_v38, %v4661_v1  ;;  %v4665_v16 = vpop.permute.xlu1 %4664 }
 0x361   : > { %4813 = vmatpush1.bf16.msra.mxu1 %v11792_v2  ;;  %v4663_v2 = vpop.permute.xlu0 %4662 }
 0x362   : > { %4814 = vmatprep.subr.bf16.mxu1 %v11797_v37  ;;  %v11837_v37 = vld [vmem:[%s16460_s5 + $0x120] ss:$8 sps:$4 sm:$0xff]   ;;  %v4669_v0 = vsel %vm4014_vm1, %v4663_v2, %v4665_v16 }
 0x364   : > { %9967 = vmatmul.mubr.msk.bf16.gmra.mrb[120].mxu1 %vm14427_vm4, %v9966_v13  ;;  %v11846_v13 = vld [vmem:[%s16460_s5 + $0x150] ss:$8 sps:$4 sm:$0xff]  }
 0x365   : > { %9968 = vmatprep.mubr.msk.bf16.mxu1 %vm4014_vm1, %v4112_v47  ;;  %4815 = vmatpush1.bf16.msra.mxu1 %v11795_v40  ;;  %v11843_v40 = vld [vmem:[%s16460_s5 + $0x140] ss:$8 sps:$4 sm:$0xff]  }
 0x366   : > { %4816 = vmatprep.subr.bf16.mxu1 %v11800_v19  ;;  %v11851_v19 = vld [vmem:[%s16460_s5 + $0x164] ss:$8 sps:$4 sm:$0xff]   ;;  %v11849_v47 = vld [vmem:[%s16460_s5 + $0x160] ss:$8 sps:$4 sm:$0xff]  }
 0x369   : > { %4817 = vmatpush1.bf16.msra.mxu1 %v11798_v15  ;;  %v11857_v15 = vld [vmem:[%s16460_s5 + $0x4] ss:$8 sps:$4 sm:$0xff]  }
 0x36a   : > { %4818 = vmatprep.subr.bf16.mxu1 %v11803_v34  ;;  %v4895_v34 = vld [vmem:[%s16459_s4] sm:$0x3] }
 0x36b   : > { %v14608_v18 = vrot.slane %v4895_v34, %v14208_v30  ;;  %v14611_v8 = vrot.slane %v4895_v34, %v14211_v53 }
 0x36c   : > { %9973 = vmatmul.mubr.msk.bf16.gmra.mrb[124].mxu1 %vm14427_vm4, %v9972_v24 }
 0x36d   : > { %4819 = vmatpush1.bf16.msra.mxu1 %v11801_v7  ;;  %10022 = vmatprep.mubr.msk.bf16.mxu1 %vm4014_vm1, %v4653_v10 }
 0x36e   : > { %4820 = vmatprep.subr.bf16.mxu1 %v11806_v36 }
 0x371   : > { %4821 = vmatpush1.bf16.msra.mxu1 %v11804_v52 }
 0x372   : > { %4822 = vmatprep.subr.bf16.mxu1 %v11809_v23 }
 0x375   : > { %4823 = vmatpush1.bf16.msra.mxu1 %v11807_v25 }
 0x376   : > { %4824 = vmatprep.subr.bf16.mxu1 %v11812_v26  ;;  %v11927_v26 = vld [vmem:[%s16463_s8] ss:$56 sps:$4 sm:$0xff]  }
 0x379   : > { %4825 = vmatpush1.bf16.msra.mxu1 %v11810_v44  ;;  %v11929_v44 = vld [vmem:[%s16463_s8 + $0x4] ss:$56 sps:$4 sm:$0xff]  }
 0x37a   : > { %4826 = vmatprep.subr.bf16.mxu1 %v11815_v33  ;;  %6893 = vmatprep.subr.bf16.mxu0 %v11929_v44 }
 0x37b   : > { %6894 = vmatpush1.bf16.msra.mxu0 %v11927_v26 }
 0x37d   : > { %4827 = vmatpush1.bf16.msra.mxu1 %v11813_v41 }
 0x37e   : > { %4828 = vmatprep.subr.bf16.mxu1 %v11818_v54 }
 0x381   : > { %4829 = vmatpush1.bf16.msra.mxu1 %v11816_v12  ;;  %v11935_v12 = vld [vmem:[%s16463_s8 + $0x74] ss:$56 sps:$4 sm:$0xff]  }
 0x382   : > { %5136 = vmatprep.subr.bf16.mxu1 %v11821_v6  ;;  %6895 = vmatprep.subr.bf16.mxu0 %v11935_v12 }
 0x384   : > { %4839 = vmatmul.mubr.bf16.vlgmr.msra.gmra.mrb[112].mxu1 %v4666_v56  ;;  %v11941_v56 = vld [vmem:[%s16463_s8 + $0xe4] ss:$56 sps:$4 sm:$0xff]  }
 0x385   : > { %10023 = vmatprep.mubr.msk.bf16.mxu1 %vm4014_vm1, %v4657_v21  ;;  %5137 = vmatpush1.bf16.msra.mxu1 %v11819_v11  ;;  %v11933_v11 = vld [vmem:[%s16463_s8 + $0x70] ss:$56 sps:$4 sm:$0xff]  }
 0x386   : > { %5138 = vmatprep.subr.bf16.mxu1 %v11824_v46  ;;  %6896 = vmatpush1.bf16.msra.mxu0 %v11933_v11 }
 0x387   : > { %6897 = vmatprep.subr.bf16.mxu0 %v11941_v56  ;;  %v11957_v56 = vld [vmem:[%s16463_s8 + $0x230] ss:$56 sps:$4 sm:$0xff]  }
 0x389   : > { %5139 = vmatpush1.bf16.msra.mxu1 %v11822_v35 }
 0x38a   : > { %5140 = vmatprep.subr.bf16.mxu1 %v11827_v51  ;;  %v11855_v51 = vld [vmem:[%s16460_s5] ss:$8 sps:$4 sm:$0xff]  }
 0x38c   : > { %4849 = vmatmul.mubr.bf16.gmra.mrb[116].mxu1 %v4667_v32 }
 0x38d   : > { %10024 = vmatprep.mubr.msk.bf16.mxu1 %vm4014_vm1, %v4661_v1  ;;  %5141 = vmatpush1.bf16.msra.mxu1 %v11825_v63 }
 0x38e   : > { %5142 = vmatprep.subr.bf16.mxu1 %v11830_v45  ;;  %v11860_v45 = vld [vmem:[%s16460_s5 + $0x14] ss:$8 sps:$4 sm:$0xff]  }
 0x391   : > { %5143 = vmatpush1.bf16.msra.mxu1 %v11828_v62  ;;  %v11939_v62 = vld [vmem:[%s16463_s8 + $0xe0] ss:$56 sps:$4 sm:$0xff]  }
 0x392   : > { %5144 = vmatprep.subr.bf16.mxu1 %v11833_v14  ;;  %6898 = vmatpush1.bf16.msra.mxu0 %v11939_v62 }
 0x394   : > { %4859 = vmatmul.mubr.bf16.gmra.mrb[120].mxu1 %v4668_v9 }
 0x395   : > { %10025 = vmatprep.mubr.msk.bf16.mxu1 %vm4014_vm1, %v4665_v16  ;;  %5145 = vmatpush1.bf16.msra.mxu1 %v11831_v28 }
 0x396   : > { %5146 = vmatprep.subr.bf16.mxu1 %v11836_v17  ;;  %v11947_v17 = vld [vmem:[%s16463_s8 + $0x154] ss:$56 sps:$4 sm:$0xff]  }
 0x397   : > { %6899 = vmatprep.subr.bf16.mxu0 %v11947_v17 }
 0x399   : > { %5147 = vmatpush1.bf16.msra.mxu1 %v11834_v27  ;;  %v11858_v27 = vld [vmem:[%s16460_s5 + $0x10] ss:$8 sps:$4 sm:$0xff]  }
 0x39a   : > { %5148 = vmatprep.subr.bf16.mxu1 %v11839_v39 }
 0x39c   : > { %4869 = vmatmul.mubr.bf16.gmra.mrb[124].mxu1 %v4669_v0 }
 0x39d   : > { %5149 = vmatpush1.bf16.msra.mxu1 %v11837_v37  ;;  %v11863_v37 = vld [vmem:[%s16460_s5 + $0x24] ss:$8 sps:$4 sm:$0xff]  }
 0x39e   : > { %5150 = vmatprep.subr.bf16.mxu1 %v11842_v43 }
 0x3a1   : > { %5151 = vmatpush1.bf16.msra.mxu1 %v11840_v22  ;;  %v11945_v22 = vld [vmem:[%s16463_s8 + $0x150] ss:$56 sps:$4 sm:$0xff]  }
 0x3a2   : > { %5152 = vmatprep.subr.bf16.mxu1 %v11845_v61  ;;  %6900 = vmatpush1.bf16.msra.mxu0 %v11945_v22 }
 0x3a5   : > { %5153 = vmatpush1.bf16.msra.mxu1 %v11843_v40  ;;  %v11953_v40 = vld [vmem:[%s16463_s8 + $0x1c4] ss:$56 sps:$4 sm:$0xff]  }
 0x3a6   : > { %5154 = vmatprep.subr.bf16.mxu1 %v11848_v50  ;;  %6901 = vmatprep.subr.bf16.mxu0 %v11953_v40 }
 0x3a9   : > { %5155 = vmatpush1.bf16.msra.mxu1 %v11846_v13 }
 0x3aa   : > { %5156 = vmatprep.subr.bf16.mxu1 %v11851_v19  ;;  %v11861_v19 = vld [vmem:[%s16460_s5 + $0x20] ss:$8 sps:$4 sm:$0xff]  }
 0x3ad   : > { %5157 = vmatpush1.bf16.msra.mxu1 %v11849_v47 }
 0x3ae   : > { %5158 = vmatprep.subr.bf16.mxu1 %v11854_v3 }
 0x3b1   : > { %5159 = vmatpush1.bf16.msra.mxu1 %v11852_v20  ;;  %v11866_v20 = vld [vmem:[%s16460_s5 + $0x34] ss:$8 sps:$4 sm:$0xff]  }
 0x3b2   : > { %5341 = vmatprep.subr.bf16.mxu1 %v11857_v15 }
 0x457   : > { %v4840_v7 = vpop.f32.mrb[112].mxu1 }
 0x458   : > { %v14614_v24 = vadd.f32 %v14608_v18, %v4840_v7  ;;  %v4842_v36 = vpop.f32.mrb[113].mxu1  ;;  %v11951_v7 = vld [vmem:[%s16463_s8 + $0x1c0] ss:$56 sps:$4 sm:$0xff]  }
 0x459   : > { %v14617_v10 = vadd.f32 %v14611_v8, %v4842_v36  ;;  %v4844_v52 = vpop.f32.mrb[114].mxu1  ;;  %6902 = vmatpush1.bf16.msra.mxu0 %v11951_v7 }
 0x45a   : > { %v4909_v23 = vadd.f32 %v14608_v18, %v4844_v52  ;;  %v4846_v25 = vpop.f32.mrb[115].mxu1  ;;  %v4923_v41 = vmax.f32 %v14614_v24, 0.0  ;;  %v11899_v24 = vld [vmem:[%s16460_s5 + $0x1a4] ss:$8 sps:$4 sm:$0xff]  }
 0x45b   : > { %v4910_v33 = vadd.f32 %v14611_v8, %v4846_v25  ;;  %v4924_v6 = vmax.f32 %v14617_v10, 0.0  ;;  %v11959_v25 = vld [vmem:[%s16463_s8 + $0x234] ss:$56 sps:$4 sm:$0xff]   ;;  %v11876_v10 = vld [vmem:[%s16460_s5 + $0x70] ss:$8 sps:$4 sm:$0xff]  }
 0x45c   : > { %v4925_v54 = vmax.f32 %v4909_v23, 0.0  ;;  %6903 = vmatprep.subr.bf16.mxu0 %v11959_v25  ;;  %v11879_v25 = vld [vmem:[%s16460_s5 + $0x80] ss:$8 sps:$4 sm:$0xff]  }
 0x45d   : > { %v4926_v55 = vmax.f32 %v4910_v33, 0.0  ;;  %v11864_v33 = vld [vmem:[%s16460_s5 + $0x30] ss:$8 sps:$4 sm:$0xff]   ;;  %6904 = vmatpush1.bf16.msra.mxu0 %v11957_v56  ;;  %v11893_v56 = vld [vmem:[%s16460_s5 + $0x184] ss:$8 sps:$4 sm:$0xff]  }
 0x45e   : > { %v4971_v46 = vpack.c.bf16 %v4925_v54, %v4923_v41 }
 0x45f   : > { %v4972_v21 = vpack.c.bf16 %v4926_v55, %v4924_v6  ;;  %v4850_v35 = vpop.f32.mrb[116].mxu1 }
 0x460   : > { %v4911_v29 = vadd.f32 %v14608_v18, %v4850_v35  ;;  %v4852_v63 = vpop.f32.mrb[117].mxu1  ;;  %v11965_v35 = vld [vmem:[%s16463_s8 + $0x2a4] ss:$56 sps:$4 sm:$0xff]  }
 0x461   : > { %v4912_v32 = vadd.f32 %v14611_v8, %v4852_v63  ;;  %v4854_v1 = vpop.f32.mrb[118].mxu1  ;;  %10074 = vmatprep.mubr.msk.bf16.mxu1 %vm4014_vm1, %v4972_v21  ;;  %v11867_v63 = vld [vmem:[%s16460_s5 + $0x40] ss:$8 sps:$4 sm:$0xff]   ;;  %6905 = vmatprep.subr.bf16.mxu0 %v11965_v35 }
 0x462   : > { %v4927_v14 = vmax.f32 %v4911_v29, 0.0  ;;  %v4913_v38 = vadd.f32 %v14608_v18, %v4854_v1  ;;  %v4856_v28 = vpop.f32.mrb[119].mxu1  ;;  %5169 = vmatmul.mubr.bf16.vlgmr.msra.gmra.mrb[128].mxu1 %v4971_v46  ;;  %v11872_v1 = vld [vmem:[%s16460_s5 + $0x54] ss:$8 sps:$4 sm:$0xff]  }
 0x463   : > { %v4928_v9 = vmax.f32 %v4912_v32, 0.0  ;;  %v4914_v16 = vadd.f32 %v14611_v8, %v4856_v28  ;;  %5342 = vmatpush1.bf16.msra.mxu1 %v11855_v51 }
 0x464   : > { %v14662_v39 = vpack.c.bf16 %v4927_v14, %v4925_v54  ;;  %v4929_v2 = vmax.f32 %v4913_v38, 0.0  ;;  %5343 = vmatprep.subr.bf16.mxu1 %v11860_v45  ;;  %v11963_v38 = vld [vmem:[%s16463_s8 + $0x2a0] ss:$56 sps:$4 sm:$0xff]  }
 0x465   : > { %v14667_v43 = vpack.c.bf16 %v4928_v9, %v4926_v55  ;;  %v4930_v0 = vmax.f32 %v4914_v16, 0.0  ;;  %v11869_v55 = vld [vmem:[%s16460_s5 + $0x44] ss:$8 sps:$4 sm:$0xff]   ;;  %6906 = vmatpush1.bf16.msra.mxu0 %v11963_v38 }
 0x466   : > { %v4973_v61 = vpack.c.bf16 %v4929_v2, %v4927_v14  ;;  %v11971_v16 = vld [vmem:[%s16463_s8 + $0x314] ss:$56 sps:$4 sm:$0xff]  }
 0x467   : > { %v4974_v50 = vpack.c.bf16 %v4930_v0, %v4928_v9  ;;  %5344 = vmatpush1.bf16.msra.mxu1 %v11858_v27  ;;  %v4860_v13 = vpop.f32.mrb[120].mxu1  ;;  %6907 = vmatprep.subr.bf16.mxu0 %v11971_v16  ;;  %v11911_v38 = vld [vmem:[%s16460_s5 + $0x1e4] ss:$8 sps:$4 sm:$0xff]  }
 0x468   : > { %v4915_v47 = vadd.f32 %v14608_v18, %v4860_v13  ;;  %v4862_v3 = vpop.f32.mrb[121].mxu1  ;;  %5345 = vmatprep.subr.bf16.mxu1 %v11863_v37  ;;  %v11870_v37 = vld [vmem:[%s16460_s5 + $0x50] ss:$8 sps:$4 sm:$0xff]   ;;  %v12553_v13 = vmov 0.0   ;;  %v11917_v16 = vld [vmem:[%s16460_s5 + $0x204] ss:$8 sps:$4 sm:$0xff]  }
 0x469   : > { %v4916_v15 = vadd.f32 %v14611_v8, %v4862_v3  ;;  %v4864_v34 = vpop.f32.mrb[122].mxu1  ;;  %10075 = vmatprep.mubr.msk.bf16.mxu1 %vm4014_vm1, %v4974_v50  ;;  %v4940_v7 = vpack.c.bf16 %v4924_v6, %v12553_v13  ;;  %v11881_v6 = vld [vmem:[%s16460_s5 + $0x84] ss:$8 sps:$4 sm:$0xff]   ;;  %v4939_v35 = vpack.c.bf16 %v4923_v41, %v12553_v13  ;;  %v11897_v41 = vld [vmem:[%s16460_s5 + $0x1a0] ss:$8 sps:$4 sm:$0xff]  }
 0x46a   : > { %v4931_v36 = vmax.f32 %v4915_v47, 0.0  ;;  %v4917_v52 = vadd.f32 %v14608_v18, %v4864_v34  ;;  %v4866_v23 = vpop.f32.mrb[123].mxu1  ;;  %5179 = vmatmul.mubr.bf16.gmra.mrb[132].mxu1 %v4973_v61  ;;  %v11977_v47 = vld [vmem:[%s16463_s8 + $0x384] ss:$56 sps:$4 sm:$0xff]  }
 0x46b   : > { %v4932_v26 = vmax.f32 %v4916_v15, 0.0  ;;  %v4918_v44 = vadd.f32 %v14611_v8, %v4866_v23  ;;  %5346 = vmatpush1.bf16.msra.mxu1 %v11861_v19  ;;  %v11873_v15 = vld [vmem:[%s16460_s5 + $0x60] ss:$8 sps:$4 sm:$0xff]   ;;  %v11878_v34 = vld [vmem:[%s16460_s5 + $0x74] ss:$8 sps:$4 sm:$0xff]  }
 0x46c   : > { %v14695_v54 = vpack.c.bf16 %v4931_v36, %v4929_v2  ;;  %v4933_v12 = vmax.f32 %v4917_v52, 0.0  ;;  %5347 = vmatprep.subr.bf16.mxu1 %v11866_v20  ;;  %v11983_v52 = vld [vmem:[%s16463_s8 + $0x3f4] ss:$56 sps:$4 sm:$0xff]   ;;  %v11981_v23 = vld [vmem:[%s16463_s8 + $0x3f0] ss:$56 sps:$4 sm:$0xff]  }
 0x46d   : > { %v14700_v11 = vpack.c.bf16 %v4932_v26, %v4930_v0  ;;  %v4934_v46 = vmax.f32 %v4918_v44, 0.0  ;;  %v11882_v44 = vld [vmem:[%s16460_s5 + $0x90] ss:$8 sps:$4 sm:$0xff]  }
 0x46e   : > { %v4975_v21 = vpack.c.bf16 %v4933_v12, %v4931_v36  ;;  %v11975_v36 = vld [vmem:[%s16463_s8 + $0x380] ss:$56 sps:$4 sm:$0xff]  }
 0x46f   : > { %v4976_v51 = vpack.c.bf16 %v4934_v46, %v4932_v26  ;;  %5348 = vmatpush1.bf16.msra.mxu1 %v11864_v33  ;;  %v4870_v29 = vpop.f32.mrb[124].mxu1  ;;  %v11884_v26 = vld [vmem:[%s16460_s5 + $0x94] ss:$8 sps:$4 sm:$0xff]   ;;  %v11887_v33 = vld [vmem:[%s16460_s5 + $0xa4] ss:$8 sps:$4 sm:$0xff]  }
 0x470   : > { %v4919_v45 = vadd.f32 %v14608_v18, %v4870_v29  ;;  %v4872_v32 = vpop.f32.mrb[125].mxu1  ;;  %5349 = vmatprep.subr.bf16.mxu1 %v11869_v55  ;;  %v11890_v55 = vld [vmem:[%s16460_s5 + $0xb4] ss:$8 sps:$4 sm:$0xff]   ;;  %v11894_v29 = vld [vmem:[%s16460_s5 + $0x190] ss:$8 sps:$4 sm:$0xff]  }
 0x471   : > { %v4920_v62 = vadd.f32 %v14611_v8, %v4872_v32  ;;  %v4874_v14 = vpop.f32.mrb[126].mxu1  ;;  %10076 = vmatprep.mubr.msk.bf16.mxu1 %vm4014_vm1, %v4976_v51  ;;  %v11896_v51 = vld [vmem:[%s16460_s5 + $0x194] ss:$8 sps:$4 sm:$0xff]   ;;  %v11905_v32 = vld [vmem:[%s16460_s5 + $0x1c4] ss:$8 sps:$4 sm:$0xff]  }
 0x472   : > { %v4935_v28 = vmax.f32 %v4919_v45, 0.0  ;;  %v4921_v17 = vadd.f32 %v14608_v18, %v4874_v14  ;;  %v4876_v9 = vpop.f32.mrb[127].mxu1  ;;  %5189 = vmatmul.mubr.bf16.gmra.mrb[136].mxu1 %v4975_v21  ;;  %v11875_v18 = vld [vmem:[%s16460_s5 + $0x64] ss:$8 sps:$4 sm:$0xff]   ;;  %v11891_v21 = vld [vmem:[%s16460_s5 + $0x180] ss:$8 sps:$4 sm:$0xff]  }
 0x473   : > { %v4936_v27 = vmax.f32 %v4920_v62, 0.0  ;;  %v4922_v2 = vadd.f32 %v14611_v8, %v4876_v9  ;;  %5350 = vmatpush1.bf16.msra.mxu1 %v11867_v63  ;;  %v11969_v8 = vld [vmem:[%s16463_s8 + $0x310] ss:$56 sps:$4 sm:$0xff]   ;;  %v11902_v63 = vld [vmem:[%s16460_s5 + $0x1b4] ss:$8 sps:$4 sm:$0xff]  }
 0x474   : > { %v14728_v0 = vpack.c.bf16 %v4935_v28, %v4933_v12  ;;  %v4937_v22 = vmax.f32 %v4921_v17, 0.0  ;;  %5351 = vmatprep.subr.bf16.mxu1 %v11872_v1  ;;  %6908 = vmatpush1.bf16.msra.mxu0 %v11969_v8  ;;  %v11885_v12 = vld [vmem:[%s16460_s5 + $0xa0] ss:$8 sps:$4 sm:$0xff]   ;;  %v11900_v45 = vld [vmem:[%s16460_s5 + $0x1b0] ss:$8 sps:$4 sm:$0xff]  }
 0x475   : > { %v14733_v61 = vpack.c.bf16 %v4936_v27, %v4934_v46  ;;  %v4938_v40 = vmax.f32 %v4922_v2, 0.0  ;;  %6909 = vmatprep.subr.bf16.mxu0 %v11977_v47  ;;  %v11888_v46 = vld [vmem:[%s16460_s5 + $0xb0] ss:$8 sps:$4 sm:$0xff]   ;;  %v11903_v1 = vld [vmem:[%s16460_s5 + $0x1c0] ss:$8 sps:$4 sm:$0xff]  }
 0x476   : > { %v4977_v50 = vpack.c.bf16 %v4937_v22, %v4935_v28  ;;  %v14738_v19 = vpack.c.bf16 %v12553_v13, %v4937_v22  ;;  %v11908_v62 = vld [vmem:[%s16460_s5 + $0x1d4] ss:$8 sps:$4 sm:$0xff]   ;;  %v11906_v14 = vld [vmem:[%s16460_s5 + $0x1d0] ss:$8 sps:$4 sm:$0xff]   ;;  %v11909_v28 = vld [vmem:[%s16460_s5 + $0x1e0] ss:$8 sps:$4 sm:$0xff]  }
 0x477   : > { %v4978_v3 = vpack.c.bf16 %v4938_v40, %v4936_v27  ;;  %v14743_v20 = vpack.c.bf16 %v12553_v13, %v4938_v40  ;;  %5352 = vmatpush1.bf16.msra.mxu1 %v11870_v37  ;;  %v11914_v17 = vld [vmem:[%s16460_s5 + $0x1f4] ss:$8 sps:$4 sm:$0xff]   ;;  %v11912_v9 = vld [vmem:[%s16460_s5 + $0x1f0] ss:$8 sps:$4 sm:$0xff]   ;;  %v11915_v27 = vld [vmem:[%s16460_s5 + $0x200] ss:$8 sps:$4 sm:$0xff]  }
 0x478   : > { %5353 = vmatprep.subr.bf16.mxu1 %v11875_v18  ;;  %6910 = vmatpush1.bf16.msra.mxu0 %v11975_v36  ;;  %v11920_v2 = vld [vmem:[%s16460_s5 + $0x214] ss:$8 sps:$4 sm:$0xff]   ;;  %v11923_v37 = vld [vmem:[%s16460_s5 + $0x224] ss:$8 sps:$4 sm:$0xff]   ;;  %v11921_v22 = vld [vmem:[%s16460_s5 + $0x220] ss:$8 sps:$4 sm:$0xff]  }
 0x479   : > { %10077 = vmatprep.mubr.msk.bf16.mxu1 %vm4014_vm1, %v4978_v3  ;;  %6911 = vmatprep.subr.bf16.mxu0 %v11983_v52  ;;  %v11926_v18 = vld [vmem:[%s16460_s5 + $0x234] ss:$8 sps:$4 sm:$0xff]   ;;  %v11924_v40 = vld [vmem:[%s16460_s5 + $0x230] ss:$8 sps:$4 sm:$0xff]  }
 0x47a   : > { %5199 = vmatmul.mubr.bf16.gmra.mrb[140].mxu1 %v4977_v50  ;;  %v11932_v8 = vld [vmem:[%s16463_s8 + $0x14] ss:$56 sps:$4 sm:$0xff]   ;;  %v11930_v50 = vld [vmem:[%s16463_s8 + $0x10] ss:$56 sps:$4 sm:$0xff]   ;;  %v11938_v13 = vld [vmem:[%s16463_s8 + $0x84] ss:$56 sps:$4 sm:$0xff]  }
 0x47b   : > { %5354 = vmatpush1.bf16.msra.mxu1 %v11873_v15  ;;  %10102 = vmatprep.mubr.msk.bf16.mxu1 %vm4014_vm1, %v4940_v7  ;;  %v11936_v47 = vld [vmem:[%s16463_s8 + $0x80] ss:$56 sps:$4 sm:$0xff]   ;;  %v11944_v3 = vld [vmem:[%s16463_s8 + $0xf4] ss:$56 sps:$4 sm:$0xff]   ;;  %v11942_v15 = vld [vmem:[%s16463_s8 + $0xf0] ss:$56 sps:$4 sm:$0xff]  }
 0x47c   : > { %5355 = vmatprep.subr.bf16.mxu1 %v11878_v34  ;;  %6912 = vmatpush1.bf16.msra.mxu0 %v11981_v23  ;;  %v11956_v34 = vld [vmem:[%s16463_s8 + $0x1d4] ss:$56 sps:$4 sm:$0xff]   ;;  %v11954_v7 = vld [vmem:[%s16463_s8 + $0x1d0] ss:$56 sps:$4 sm:$0xff]   ;;  %v11984_v23 = vld [vmem:[%s16463_s8 + $0x400] ss:$56 sps:$4 sm:$0xff]  }
 0x47d   : > { %v11968_v36 = vld [vmem:[%s16463_s8 + $0x2b4] ss:$56 sps:$4 sm:$0xff]   ;;  %v11966_v52 = vld [vmem:[%s16463_s8 + $0x2b0] ss:$56 sps:$4 sm:$0xff]  }
 0x47f   : > { %5356 = vmatpush1.bf16.msra.mxu1 %v11876_v10  ;;  %v11980_v10 = vld [vmem:[%s16463_s8 + $0x394] ss:$56 sps:$4 sm:$0xff]  }
 0x480   : > { %5357 = vmatprep.subr.bf16.mxu1 %v11881_v6  ;;  %v11978_v6 = vld [vmem:[%s16463_s8 + $0x390] ss:$56 sps:$4 sm:$0xff]  }
 0x483   : > { %5358 = vmatpush1.bf16.msra.mxu1 %v11879_v25  ;;  %v11989_v25 = vld [vmem:[%s16463_s8 + $0x464] ss:$56 sps:$4 sm:$0xff]  }
 0x484   : > { %5359 = vmatprep.subr.bf16.mxu1 %v11884_v26  ;;  %v11992_v26 = vld [vmem:[%s16463_s8 + $0x474] ss:$56 sps:$4 sm:$0xff]   ;;  %6913 = vmatprep.subr.bf16.mxu0 %v11989_v25 }
 0x487   : > { %5360 = vmatpush1.bf16.msra.mxu1 %v11882_v44  ;;  %v11987_v44 = vld [vmem:[%s16463_s8 + $0x460] ss:$56 sps:$4 sm:$0xff]  }
 0x488   : > { %5361 = vmatprep.subr.bf16.mxu1 %v11887_v33  ;;  %v11990_v33 = vld [vmem:[%s16463_s8 + $0x470] ss:$56 sps:$4 sm:$0xff]   ;;  %6914 = vmatpush1.bf16.msra.mxu0 %v11987_v44  ;;  %v12019_v44 = vld [vmem:[%s16463_s8 + $0x15c] ss:$56 sps:$4 sm:$0xff]  }
 0x48b   : > { %5362 = vmatpush1.bf16.msra.mxu1 %v11885_v12  ;;  %v11995_v12 = vld [vmem:[%s16463_s8 + $0x4d4] ss:$56 sps:$4 sm:$0xff]  }
 0x48c   : > { %5363 = vmatprep.subr.bf16.mxu1 %v11890_v55  ;;  %v11998_v55 = vld [vmem:[%s16463_s8 + $0x4e4] ss:$56 sps:$4 sm:$0xff]   ;;  %6915 = vmatprep.subr.bf16.mxu0 %v11995_v12 }
 0x48f   : > { %5364 = vmatpush1.bf16.msra.mxu1 %v11888_v46  ;;  %v11993_v46 = vld [vmem:[%s16463_s8 + $0x4d0] ss:$56 sps:$4 sm:$0xff]  }
 0x490   : > { %5564 = vmatprep.subr.bf16.mxu1 %v11893_v56  ;;  %v11996_v56 = vld [vmem:[%s16463_s8 + $0x4e0] ss:$56 sps:$4 sm:$0xff]   ;;  %6916 = vmatpush1.bf16.msra.mxu0 %v11993_v46 }
 0x492   : > { %5374 = vmatmul.mubr.bf16.vlgmr.msra.gmra.mrb[128].mxu1 %v4939_v35  ;;  %v12004_v35 = vld [vmem:[%s16463_s8 + $0x24] ss:$56 sps:$4 sm:$0xff]  }
 0x493   : > { %10103 = vmatprep.mubr.msk.bf16.mxu1 %vm4014_vm1, %v14667_v43  ;;  %5565 = vmatpush1.bf16.msra.mxu1 %v11891_v21  ;;  %v12001_v21 = vld [vmem:[%s16463_s8 + $0xc] ss:$56 sps:$4 sm:$0xff]  }
 0x494   : > { %5566 = vmatprep.subr.bf16.mxu1 %v11896_v51  ;;  %6966 = vmatprep.subr.bf16.mxu0 %v12001_v21  ;;  %v5653_v51 = vld [vmem:[%s16461_s6] sm:$0x3] }
 0x497   : > { %5567 = vmatpush1.bf16.msra.mxu1 %v11894_v29  ;;  %v14980_v29 = vrot.slane %v5653_v51, %v14208_v30 }
 0x498   : > { %5568 = vmatprep.subr.bf16.mxu1 %v11899_v24  ;;  %v14983_v24 = vrot.slane %v5653_v51, %v14211_v53  ;;  %v12020_v51 = vld [vmem:[%s16463_s8 + $0x170] ss:$56 sps:$4 sm:$0xff]  }
 0x49a   : > { %5384 = vmatmul.mubr.bf16.gmra.mrb[132].mxu1 %v14662_v39 }
 0x49b   : > { %10104 = vmatprep.mubr.msk.bf16.mxu1 %vm4014_vm1, %v14700_v11  ;;  %5569 = vmatpush1.bf16.msra.mxu1 %v11897_v41 }
 0x49c   : > { %5570 = vmatprep.subr.bf16.mxu1 %v11902_v63 }
 0x49f   : > { %5571 = vmatpush1.bf16.msra.mxu1 %v11900_v45 }
 0x4a0   : > { %5572 = vmatprep.subr.bf16.mxu1 %v11905_v32 }
 0x4a2   : > { %5394 = vmatmul.mubr.bf16.gmra.mrb[136].mxu1 %v14695_v54 }
 0x4a3   : > { %10105 = vmatprep.mubr.msk.bf16.mxu1 %vm4014_vm1, %v14733_v61  ;;  %5573 = vmatpush1.bf16.msra.mxu1 %v11903_v1 }
 0x4a4   : > { %5574 = vmatprep.subr.bf16.mxu1 %v11908_v62 }
 0x4a7   : > { %5575 = vmatpush1.bf16.msra.mxu1 %v11906_v14 }
 0x4a8   : > { %5576 = vmatprep.subr.bf16.mxu1 %v11911_v38 }
 0x4aa   : > { %5404 = vmatmul.mubr.bf16.gmra.mrb[140].mxu1 %v14728_v0 }
 0x4ab   : > { %5577 = vmatpush1.bf16.msra.mxu1 %v11909_v28  ;;  %10154 = vmatprep.mubr.msk.bf16.mxu1 %vm4014_vm1, %v14667_v43  ;;  %v11918_v43 = vld [vmem:[%s16460_s5 + $0x210] ss:$8 sps:$4 sm:$0xff]  }
 0x4ac   : > { %5578 = vmatprep.subr.bf16.mxu1 %v11914_v17 }
 0x4af   : > { %5579 = vmatpush1.bf16.msra.mxu1 %v11912_v9 }
 0x4b0   : > { %5580 = vmatprep.subr.bf16.mxu1 %v11917_v16 }
 0x4b3   : > { %5581 = vmatpush1.bf16.msra.mxu1 %v11915_v27 }
 0x4b4   : > { %5582 = vmatprep.subr.bf16.mxu1 %v11920_v2 }
 0x4b7   : > { %5583 = vmatpush1.bf16.msra.mxu1 %v11918_v43 }
 0x4b8   : > { %5584 = vmatprep.subr.bf16.mxu1 %v11923_v37  ;;  %v11999_v37 = vld [vmem:[%s16463_s8 + $0x8] ss:$56 sps:$4 sm:$0xff]  }
 0x4bb   : > { %5585 = vmatpush1.bf16.msra.mxu1 %v11921_v22  ;;  %v12002_v22 = vld [vmem:[%s16463_s8 + $0x20] ss:$56 sps:$4 sm:$0xff]  }
 0x4bc   : > { %5586 = vmatprep.subr.bf16.mxu1 %v11926_v18 }
 0x4bf   : > { %5587 = vmatpush1.bf16.msra.mxu1 %v11924_v40 }
 0x4c0   : > { %7039 = vmatprep.subr.bf16.mxu1 %v11932_v8  ;;  %v12007_v8 = vld [vmem:[%s16463_s8 + $0x7c] ss:$56 sps:$4 sm:$0xff]  }
 0x4c2   : > { %5597 = vmatmul.mubr.bf16.vlgmr.msra.gmra.mrb[128].mxu1 %v14662_v39  ;;  %v11950_v39 = vld [vmem:[%s16463_s8 + $0x164] ss:$56 sps:$4 sm:$0xff]  }
 0x4c3   : > { %10155 = vmatprep.mubr.msk.bf16.mxu1 %vm4014_vm1, %v14700_v11  ;;  %7040 = vmatpush1.bf16.msra.mxu1 %v11930_v50  ;;  %v11948_v11 = vld [vmem:[%s16463_s8 + $0x160] ss:$56 sps:$4 sm:$0xff]   ;;  %v12010_v50 = vld [vmem:[%s16463_s8 + $0x94] ss:$56 sps:$4 sm:$0xff]  }
 0x4c4   : > { %7041 = vmatprep.subr.bf16.mxu1 %v11938_v13 }
 0x4c7   : > { %7042 = vmatpush1.bf16.msra.mxu1 %v11936_v47 }
 0x4c8   : > { %7043 = vmatprep.subr.bf16.mxu1 %v11944_v3 }
 0x4ca   : > { %5607 = vmatmul.mubr.bf16.gmra.mrb[132].mxu1 %v14695_v54  ;;  %v11962_v54 = vld [vmem:[%s16463_s8 + $0x244] ss:$56 sps:$4 sm:$0xff]  }
 0x4cb   : > { %10156 = vmatprep.mubr.msk.bf16.mxu1 %vm4014_vm1, %v14733_v61  ;;  %7044 = vmatpush1.bf16.msra.mxu1 %v11942_v15  ;;  %v11960_v61 = vld [vmem:[%s16463_s8 + $0x240] ss:$56 sps:$4 sm:$0xff]  }
 0x4cc   : > { %7045 = vmatprep.subr.bf16.mxu1 %v11950_v39 }
 0x4cf   : > { %7046 = vmatpush1.bf16.msra.mxu1 %v11948_v11  ;;  %v12005_v11 = vld [vmem:[%s16463_s8 + $0x78] ss:$56 sps:$4 sm:$0xff]  }
 0x4d0   : > { %7047 = vmatprep.subr.bf16.mxu1 %v11956_v34  ;;  %v12008_v34 = vld [vmem:[%s16463_s8 + $0x90] ss:$56 sps:$4 sm:$0xff]  }
 0x4d2   : > { %5617 = vmatmul.mubr.bf16.gmra.mrb[136].mxu1 %v14728_v0  ;;  %v11974_v0 = vld [vmem:[%s16463_s8 + $0x324] ss:$56 sps:$4 sm:$0xff]  }
 0x4d3   : > { %10157 = vmatprep.mubr.msk.bf16.mxu1 %vm4014_vm1, %v14743_v20  ;;  %7048 = vmatpush1.bf16.msra.mxu1 %v11954_v7  ;;  %v11972_v20 = vld [vmem:[%s16463_s8 + $0x320] ss:$56 sps:$4 sm:$0xff]  }
 0x4d4   : > { %7049 = vmatprep.subr.bf16.mxu1 %v11962_v54 }
 0x4d7   : > { %7050 = vmatpush1.bf16.msra.mxu1 %v11960_v61  ;;  %v12013_v61 = vld [vmem:[%s16463_s8 + $0xec] ss:$56 sps:$4 sm:$0xff]  }
 0x4d8   : > { %7051 = vmatprep.subr.bf16.mxu1 %v11968_v36  ;;  %v12016_v36 = vld [vmem:[%s16463_s8 + $0x104] ss:$56 sps:$4 sm:$0xff]  }
 0x4da   : > { %5627 = vmatmul.mubr.bf16.gmra.mrb[140].mxu1 %v14738_v19  ;;  %v11986_v19 = vld [vmem:[%s16463_s8 + $0x404] ss:$56 sps:$4 sm:$0xff]  }
 0x4db   : > { %7052 = vmatpush1.bf16.msra.mxu1 %v11966_v52 }
 0x4dc   : > { %7053 = vmatprep.subr.bf16.mxu1 %v11974_v0 }
 0x4df   : > { %7054 = vmatpush1.bf16.msra.mxu1 %v11972_v20 }
 0x4e0   : > { %7055 = vmatprep.subr.bf16.mxu1 %v11980_v10 }
 0x4e3   : > { %7056 = vmatpush1.bf16.msra.mxu1 %v11978_v6 }
 0x4e4   : > { %7057 = vmatprep.subr.bf16.mxu1 %v11986_v19  ;;  %v12011_v19 = vld [vmem:[%s16463_s8 + $0xe8] ss:$56 sps:$4 sm:$0xff]  }
 0x4e7   : > { %7058 = vmatpush1.bf16.msra.mxu1 %v11984_v23  ;;  %v12014_v23 = vld [vmem:[%s16463_s8 + $0x100] ss:$56 sps:$4 sm:$0xff]  }
 0x4e8   : > { %7059 = vmatprep.subr.bf16.mxu1 %v11992_v26 }
 0x4eb   : > { %7060 = vmatpush1.bf16.msra.mxu1 %v11990_v33  ;;  %v12022_v33 = vld [vmem:[%s16463_s8 + $0x174] ss:$56 sps:$4 sm:$0xff]  }
 0x4ec   : > { %7061 = vmatprep.subr.bf16.mxu1 %v11998_v55 }
 0x4ef   : > { %7062 = vmatpush1.bf16.msra.mxu1 %v11996_v56 }
 0x4f0   : > { %7185 = vmatprep.subr.bf16.mxu1 %v12004_v35  ;;  %v12017_v35 = vld [vmem:[%s16463_s8 + $0x158] ss:$56 sps:$4 sm:$0xff]  }
 0x595   : > { %v5598_v41 = vpop.f32.mrb[128].mxu1 }
 0x596   : > { %v5665_v63 = vadd.f32 %v14980_v29, %v5598_v41  ;;  %v5600_v45 = vpop.f32.mrb[129].mxu1 }
 0x597   : > { %v5666_v32 = vadd.f32 %v14983_v24, %v5600_v45  ;;  %v5602_v1 = vpop.f32.mrb[130].mxu1  ;;  %v12025_v45 = vld [vmem:[%s16463_s8 + $0x1cc] ss:$56 sps:$4 sm:$0xff]  }
 0x598   : > { %v5667_v62 = vadd.f32 %v14980_v29, %v5602_v1  ;;  %v5604_v14 = vpop.f32.mrb[131].mxu1  ;;  %v5681_v28 = vmax.f32 %v5665_v63, 0.0 }
 0x599   : > { %v5668_v38 = vadd.f32 %v14983_v24, %v5604_v14  ;;  %v5682_v9 = vmax.f32 %v5666_v32, 0.0  ;;  %v12028_v32 = vld [vmem:[%s16463_s8 + $0x1e4] ss:$56 sps:$4 sm:$0xff]  }
 0x59a   : > { %v5683_v17 = vmax.f32 %v5667_v62, 0.0 }
 0x59b   : > { %v5684_v16 = vmax.f32 %v5668_v38, 0.0 }
 0x59c   : > { %v14989_v27 = vpack.c.bf16 %v5683_v17, %v5681_v28  ;;  %v12023_v17 = vld [vmem:[%s16463_s8 + $0x1c8] ss:$56 sps:$4 sm:$0xff]  }
 0x59d   : > { %v14991_v2 = vpack.c.bf16 %v5684_v16, %v5682_v9  ;;  %v5608_v43 = vpop.f32.mrb[132].mxu1  ;;  %v12026_v9 = vld [vmem:[%s16463_s8 + $0x1e0] ss:$56 sps:$4 sm:$0xff]  }
 0x59e   : > { %v5669_v18 = vadd.f32 %v14980_v29, %v5608_v43  ;;  %v5610_v40 = vpop.f32.mrb[133].mxu1 }
 0x59f   : > { %v5670_v13 = vadd.f32 %v14983_v24, %v5610_v40  ;;  %v5612_v47 = vpop.f32.mrb[134].mxu1  ;;  %10326 = vmatprep.mubr.msk.bf16.mxu0 %vm4014_vm1, %v14991_v2  ;;  %10334 = vmatprep.mubr.msk.bf16.mxu1 %vm4014_vm1, %v14991_v2 }
 0x5a0   : > { %v5671_v3 = vadd.f32 %v14980_v29, %v5612_v47  ;;  %v5614_v15 = vpop.f32.mrb[135].mxu1  ;;  %6926 = vmatmul.mubr.bf16.vlgmr.msra.gmra.mrb[16].mxu0 %v14989_v27  ;;  %7072 = vmatmul.mubr.bf16.vlgmr.msra.gmra.mrb[144].mxu1 %v14989_v27  ;;  %v5685_v7 = vmax.f32 %v5669_v18, 0.0  ;;  %v12029_v47 = vld [vmem:[%s16463_s8 + $0x238] ss:$56 sps:$4 sm:$0xff]  }
 0x5a1   : > { %v5672_v39 = vadd.f32 %v14983_v24, %v5614_v15  ;;  %6967 = vmatpush1.bf16.msra.mxu0 %v11999_v37  ;;  %7186 = vmatpush1.bf16.msra.mxu1 %v12002_v22  ;;  %v5686_v52 = vmax.f32 %v5670_v13, 0.0  ;;  %v12031_v37 = vld [vmem:[%s16463_s8 + $0x23c] ss:$56 sps:$4 sm:$0xff]  }
 0x5a2   : > { %v5687_v54 = vmax.f32 %v5671_v3, 0.0  ;;  %6968 = vmatprep.subr.bf16.mxu0 %v12007_v8  ;;  %7187 = vmatprep.subr.bf16.mxu1 %v12010_v50  ;;  %v12034_v22 = vld [vmem:[%s16463_s8 + $0x254] ss:$56 sps:$4 sm:$0xff]   ;;  %v12032_v3 = vld [vmem:[%s16463_s8 + $0x250] ss:$56 sps:$4 sm:$0xff]  }
 0x5a3   : > { %v5688_v0 = vmax.f32 %v5672_v39, 0.0 }
 0x5a4   : > { %v15027_v20 = vpack.c.bf16 %v5687_v54, %v5685_v7 }
 0x5a5   : > { %v15029_v10 = vpack.c.bf16 %v5688_v0, %v5686_v52  ;;  %6969 = vmatpush1.bf16.msra.mxu0 %v12005_v11  ;;  %7188 = vmatpush1.bf16.msra.mxu1 %v12008_v34  ;;  %v5618_v6 = vpop.f32.mrb[136].mxu1  ;;  %v12043_v52 = vld [vmem:[%s16463_s8 + $0x31c] ss:$56 sps:$4 sm:$0xff]  }
 0x5a6   : > { %v5673_v25 = vadd.f32 %v14980_v29, %v5618_v6  ;;  %v5620_v26 = vpop.f32.mrb[137].mxu1  ;;  %6970 = vmatprep.subr.bf16.mxu0 %v12013_v61  ;;  %7189 = vmatprep.subr.bf16.mxu1 %v12016_v36  ;;  %v12035_v61 = vld [vmem:[%s16463_s8 + $0x2a8] ss:$56 sps:$4 sm:$0xff]   ;;  %v12046_v0 = vld [vmem:[%s16463_s8 + $0x334] ss:$56 sps:$4 sm:$0xff]  }
 0x5a7   : > { %v5674_v12 = vadd.f32 %v14983_v24, %v5620_v26  ;;  %v5622_v55 = vpop.f32.mrb[138].mxu1  ;;  %10327 = vmatprep.mubr.msk.bf16.mxu0 %vm4014_vm1, %v15029_v10  ;;  %10335 = vmatprep.mubr.msk.bf16.mxu1 %vm4014_vm1, %v15029_v10  ;;  %v12038_v36 = vld [vmem:[%s16463_s8 + $0x2c0] ss:$56 sps:$4 sm:$0xff]  }
 0x5a8   : > { %v5675_v46 = vadd.f32 %v14980_v29, %v5622_v55  ;;  %v5624_v56 = vpop.f32.mrb[139].mxu1  ;;  %6936 = vmatmul.mubr.bf16.gmra.mrb[20].mxu0 %v15027_v20  ;;  %7082 = vmatmul.mubr.bf16.gmra.mrb[148].mxu1 %v15027_v20  ;;  %v5689_v41 = vmax.f32 %v5673_v25, 0.0  ;;  %v12041_v6 = vld [vmem:[%s16463_s8 + $0x318] ss:$56 sps:$4 sm:$0xff]   ;;  %v12052_v25 = vld [vmem:[%s16463_s8 + $0x3a4] ss:$56 sps:$4 sm:$0xff]  }
 0x5a9   : > { %v5676_v21 = vadd.f32 %v14983_v24, %v5624_v56  ;;  %6971 = vmatpush1.bf16.msra.mxu0 %v12011_v19  ;;  %7190 = vmatpush1.bf16.msra.mxu1 %v12014_v23  ;;  %v5690_v1 = vmax.f32 %v5674_v12, 0.0  ;;  %v12044_v19 = vld [vmem:[%s16463_s8 + $0x330] ss:$56 sps:$4 sm:$0xff]   ;;  %v12049_v23 = vld [vmem:[%s16463_s8 + $0x38c] ss:$56 sps:$4 sm:$0xff]  }
 0x5aa   : > { %v5691_v63 = vmax.f32 %v5675_v46, 0.0  ;;  %6972 = vmatprep.subr.bf16.mxu0 %v12019_v44  ;;  %7191 = vmatprep.subr.bf16.mxu1 %v12022_v33  ;;  %v12047_v26 = vld [vmem:[%s16463_s8 + $0x388] ss:$56 sps:$4 sm:$0xff]   ;;  %v12055_v33 = vld [vmem:[%s16463_s8 + $0x3fc] ss:$56 sps:$4 sm:$0xff]  }
 0x5ab   : > { %v5692_v62 = vmax.f32 %v5676_v21, 0.0  ;;  %v12050_v44 = vld [vmem:[%s16463_s8 + $0x3a0] ss:$56 sps:$4 sm:$0xff]   ;;  %v12058_v12 = vld [vmem:[%s16463_s8 + $0x414] ss:$56 sps:$4 sm:$0xff]  }
 0x5ac   : > { %v15065_v14 = vpack.c.bf16 %v5691_v63, %v5689_v41  ;;  %v12053_v55 = vld [vmem:[%s16463_s8 + $0x3f8] ss:$56 sps:$4 sm:$0xff]   ;;  %v12061_v56 = vld [vmem:[%s16463_s8 + $0x46c] ss:$56 sps:$4 sm:$0xff]   ;;  %v12067_v41 = vld [vmem:[%s16463_s8 + $0x4dc] ss:$56 sps:$4 sm:$0xff]  }
 0x5ad   : > { %v15067_v38 = vpack.c.bf16 %v5692_v62, %v5690_v1  ;;  %6973 = vmatpush1.bf16.msra.mxu0 %v12017_v35  ;;  %7192 = vmatpush1.bf16.msra.mxu1 %v12020_v51  ;;  %v5628_v28 = vpop.f32.mrb[140].mxu1  ;;  %v12056_v46 = vld [vmem:[%s16463_s8 + $0x410] ss:$56 sps:$4 sm:$0xff]   ;;  %v12064_v21 = vld [vmem:[%s16463_s8 + $0x484] ss:$56 sps:$4 sm:$0xff]  }
 0x5ae   : > { %v5677_v16 = vadd.f32 %v14980_v29, %v5628_v28  ;;  %v5630_v43 = vpop.f32.mrb[141].mxu1  ;;  %6974 = vmatprep.subr.bf16.mxu0 %v12025_v45  ;;  %7193 = vmatprep.subr.bf16.mxu1 %v12028_v32  ;;  %v12059_v35 = vld [vmem:[%s16463_s8 + $0x468] ss:$56 sps:$4 sm:$0xff]   ;;  %v12070_v63 = vld [vmem:[%s16463_s8 + $0x4f4] ss:$56 sps:$4 sm:$0xff]  }
 0x5af   : > { %v5678_v18 = vadd.f32 %v14983_v24, %v5630_v43  ;;  %v5632_v40 = vpop.f32.mrb[142].mxu1  ;;  %10328 = vmatprep.mubr.msk.bf16.mxu0 %vm4014_vm1, %v15067_v38  ;;  %10336 = vmatprep.mubr.msk.bf16.mxu1 %vm4014_vm1, %v15067_v38  ;;  %v12062_v51 = vld [vmem:[%s16463_s8 + $0x480] ss:$56 sps:$4 sm:$0xff]   ;;  %v12068_v32 = vld [vmem:[%s16463_s8 + $0x4f0] ss:$56 sps:$4 sm:$0xff]  }
 0x5b0   : > { %v5679_v8 = vadd.f32 %v14980_v29, %v5632_v40  ;;  %v5634_v50 = vpop.f32.mrb[143].mxu1  ;;  %6946 = vmatmul.mubr.bf16.gmra.mrb[24].mxu0 %v15065_v14  ;;  %7092 = vmatmul.mubr.bf16.gmra.mrb[152].mxu1 %v15065_v14  ;;  %v5693_v15 = vmax.f32 %v5677_v16, 0.0  ;;  %v12037_v29 = vld [vmem:[%s16463_s8 + $0x2ac] ss:$56 sps:$4 sm:$0xff]   ;;  %v12065_v45 = vld [vmem:[%s16463_s8 + $0x4d8] ss:$56 sps:$4 sm:$0xff]  }
 0x5b1   : > { %v5680_v13 = vadd.f32 %v14983_v24, %v5634_v50  ;;  %6975 = vmatpush1.bf16.msra.mxu0 %v12023_v17  ;;  %7194 = vmatpush1.bf16.msra.mxu1 %v12026_v9  ;;  %v12040_v24 = vld [vmem:[%s16463_s8 + $0x2c4] ss:$56 sps:$4 sm:$0xff]   ;;  %v5694_v11 = vmax.f32 %v5678_v18, 0.0  ;;  %v12076_v62 = vld [vmem:[%s16463_s8 + $0x34] ss:$56 sps:$4 sm:$0xff]  }
 0x5b2   : > { %v5695_v39 = vmax.f32 %v5679_v8, 0.0  ;;  %6976 = vmatprep.subr.bf16.mxu0 %v12031_v37  ;;  %7195 = vmatprep.subr.bf16.mxu1 %v12034_v22  ;;  %v12073_v1 = vld [vmem:[%s16463_s8 + $0x1c] ss:$56 sps:$4 sm:$0xff]   ;;  %v12071_v28 = vld [vmem:[%s16463_s8 + $0x18] ss:$56 sps:$4 sm:$0xff]  }
 0x5b3   : > { %v5696_v34 = vmax.f32 %v5680_v13, 0.0  ;;  %v12074_v17 = vld [vmem:[%s16463_s8 + $0x30] ss:$56 sps:$4 sm:$0xff]   ;;  %v12079_v9 = vld [vmem:[%s16463_s8 + $0x8c] ss:$56 sps:$4 sm:$0xff]  }
 0x5b4   : > { %v15103_v7 = vpack.c.bf16 %v5695_v39, %v5693_v15  ;;  %v12082_v16 = vld [vmem:[%s16463_s8 + $0xa4] ss:$56 sps:$4 sm:$0xff]   ;;  %v12077_v43 = vld [vmem:[%s16463_s8 + $0x88] ss:$56 sps:$4 sm:$0xff]   ;;  %v12088_v18 = vld [vmem:[%s16463_s8 + $0x114] ss:$56 sps:$4 sm:$0xff]  }
 0x5b5   : > { %v15105_v54 = vpack.c.bf16 %v5696_v34, %v5694_v11  ;;  %6977 = vmatpush1.bf16.msra.mxu0 %v12029_v47  ;;  %7196 = vmatpush1.bf16.msra.mxu1 %v12032_v3  ;;  %v12080_v37 = vld [vmem:[%s16463_s8 + $0xa0] ss:$56 sps:$4 sm:$0xff]   ;;  %v12085_v22 = vld [vmem:[%s16463_s8 + $0xfc] ss:$56 sps:$4 sm:$0xff]   ;;  %v12086_v8 = vld [vmem:[%s16463_s8 + $0x110] ss:$56 sps:$4 sm:$0xff]  }
 0x5b6   : > { %6978 = vmatprep.subr.bf16.mxu0 %v12037_v29  ;;  %7197 = vmatprep.subr.bf16.mxu1 %v12040_v24  ;;  %v12083_v40 = vld [vmem:[%s16463_s8 + $0xf8] ss:$56 sps:$4 sm:$0xff]   ;;  %v12091_v50 = vld [vmem:[%s16463_s8 + $0x16c] ss:$56 sps:$4 sm:$0xff]   ;;  %v12089_v47 = vld [vmem:[%s16463_s8 + $0x168] ss:$56 sps:$4 sm:$0xff]  }
 0x5b7   : > { %10329 = vmatprep.mubr.msk.bf16.mxu0 %vm4014_vm1, %v15105_v54  ;;  %10337 = vmatprep.mubr.msk.bf16.mxu1 %vm4014_vm1, %v15105_v54  ;;  %v12094_v13 = vld [vmem:[%s16463_s8 + $0x184] ss:$56 sps:$4 sm:$0xff]   ;;  %v12092_v3 = vld [vmem:[%s16463_s8 + $0x180] ss:$56 sps:$4 sm:$0xff]   ;;  %v12100_v39 = vld [vmem:[%s16463_s8 + $0x1f4] ss:$56 sps:$4 sm:$0xff]  }
 0x5b8   : > { %6956 = vmatmul.mubr.bf16.gmra.mrb[28].mxu0 %v15103_v7  ;;  %7102 = vmatmul.mubr.bf16.gmra.mrb[156].mxu1 %v15103_v7  ;;  %v12097_v15 = vld [vmem:[%s16463_s8 + $0x1dc] ss:$56 sps:$4 sm:$0xff]   ;;  %v12095_v29 = vld [vmem:[%s16463_s8 + $0x1d8] ss:$56 sps:$4 sm:$0xff]   ;;  %v12103_v11 = vld [vmem:[%s16463_s8 + $0x24c] ss:$56 sps:$4 sm:$0xff]  }
 0x5b9   : > { %6979 = vmatpush1.bf16.msra.mxu0 %v12035_v61  ;;  %7198 = vmatpush1.bf16.msra.mxu1 %v12038_v36  ;;  %v12098_v24 = vld [vmem:[%s16463_s8 + $0x1f0] ss:$56 sps:$4 sm:$0xff]   ;;  %v12106_v34 = vld [vmem:[%s16463_s8 + $0x264] ss:$56 sps:$4 sm:$0xff]   ;;  %v12104_v36 = vld [vmem:[%s16463_s8 + $0x260] ss:$56 sps:$4 sm:$0xff]  }
 0x5ba   : > { %10330 = vmatprep.mubr.msk.bf16.mxu0 %vm4014_vm1, %v14991_v2  ;;  %10342 = vmatprep.mubr.msk.bf16.mxu1 %vm4014_vm1, %v14991_v2  ;;  %v12101_v61 = vld [vmem:[%s16463_s8 + $0x248] ss:$56 sps:$4 sm:$0xff]  }
 0x5bb   : > { %6980 = vmatprep.subr.bf16.mxu0 %v12043_v52  ;;  %7199 = vmatprep.subr.bf16.mxu1 %v12046_v0  ;;  %v12109_v52 = vld [vmem:[%s16463_s8 + $0x2bc] ss:$56 sps:$4 sm:$0xff]  }
 0x5bc   : > { %v12112_v0 = vld [vmem:[%s16463_s8 + $0x2d4] ss:$56 sps:$4 sm:$0xff]  }
 0x5bd   : > { %6981 = vmatpush1.bf16.msra.mxu0 %v12041_v6  ;;  %7200 = vmatpush1.bf16.msra.mxu1 %v12044_v19  ;;  %v12107_v6 = vld [vmem:[%s16463_s8 + $0x2b8] ss:$56 sps:$4 sm:$0xff]  }
 0x5be   : > { %6982 = vmatprep.subr.bf16.mxu0 %v12049_v23  ;;  %7201 = vmatprep.subr.bf16.mxu1 %v12052_v25  ;;  %v12110_v19 = vld [vmem:[%s16463_s8 + $0x2d0] ss:$56 sps:$4 sm:$0xff]   ;;  %v12115_v23 = vld [vmem:[%s16463_s8 + $0x32c] ss:$56 sps:$4 sm:$0xff]  }
 0x5bf   : > { %v12118_v25 = vld [vmem:[%s16463_s8 + $0x344] ss:$56 sps:$4 sm:$0xff]  }
 0x5c1   : > { %6983 = vmatpush1.bf16.msra.mxu0 %v12047_v26  ;;  %7202 = vmatpush1.bf16.msra.mxu1 %v12050_v44  ;;  %v12113_v26 = vld [vmem:[%s16463_s8 + $0x328] ss:$56 sps:$4 sm:$0xff]  }
 0x5c2   : > { %6984 = vmatprep.subr.bf16.mxu0 %v12055_v33  ;;  %7203 = vmatprep.subr.bf16.mxu1 %v12058_v12  ;;  %v12116_v44 = vld [vmem:[%s16463_s8 + $0x340] ss:$56 sps:$4 sm:$0xff]   ;;  %v12121_v33 = vld [vmem:[%s16463_s8 + $0x39c] ss:$56 sps:$4 sm:$0xff]  }
 0x5c3   : > { %v12124_v12 = vld [vmem:[%s16463_s8 + $0x3b4] ss:$56 sps:$4 sm:$0xff]  }
 0x5c5   : > { %6985 = vmatpush1.bf16.msra.mxu0 %v12053_v55  ;;  %7204 = vmatpush1.bf16.msra.mxu1 %v12056_v46  ;;  %v12119_v55 = vld [vmem:[%s16463_s8 + $0x398] ss:$56 sps:$4 sm:$0xff]  }
 0x5c6   : > { %6986 = vmatprep.subr.bf16.mxu0 %v12061_v56  ;;  %7205 = vmatprep.subr.bf16.mxu1 %v12064_v21  ;;  %v12122_v46 = vld [vmem:[%s16463_s8 + $0x3b0] ss:$56 sps:$4 sm:$0xff]   ;;  %v12127_v56 = vld [vmem:[%s16463_s8 + $0x40c] ss:$56 sps:$4 sm:$0xff]  }
 0x5c7   : > { %v12130_v21 = vld [vmem:[%s16463_s8 + $0x424] ss:$56 sps:$4 sm:$0xff]  }
 0x5c9   : > { %6987 = vmatpush1.bf16.msra.mxu0 %v12059_v35  ;;  %7206 = vmatpush1.bf16.msra.mxu1 %v12062_v51  ;;  %v12125_v35 = vld [vmem:[%s16463_s8 + $0x408] ss:$56 sps:$4 sm:$0xff]  }
 0x5ca   : > { %6988 = vmatprep.subr.bf16.mxu0 %v12067_v41  ;;  %7207 = vmatprep.subr.bf16.mxu1 %v12070_v63  ;;  %v12128_v51 = vld [vmem:[%s16463_s8 + $0x420] ss:$56 sps:$4 sm:$0xff]   ;;  %v12133_v41 = vld [vmem:[%s16463_s8 + $0x47c] ss:$56 sps:$4 sm:$0xff]  }
 0x5cb   : > { %v12136_v63 = vld [vmem:[%s16463_s8 + $0x494] ss:$56 sps:$4 sm:$0xff]  }
 0x5cd   : > { %6989 = vmatpush1.bf16.msra.mxu0 %v12065_v45  ;;  %7208 = vmatpush1.bf16.msra.mxu1 %v12068_v32  ;;  %v12131_v45 = vld [vmem:[%s16463_s8 + $0x478] ss:$56 sps:$4 sm:$0xff]  }
 0x5ce   : > { %7112 = vmatprep.subr.bf16.mxu0 %v12073_v1  ;;  %7331 = vmatprep.subr.bf16.mxu1 %v12076_v62  ;;  %v12134_v32 = vld [vmem:[%s16463_s8 + $0x490] ss:$56 sps:$4 sm:$0xff]   ;;  %v12139_v1 = vld [vmem:[%s16463_s8 + $0x4ec] ss:$56 sps:$4 sm:$0xff]  }
 0x5cf   : > { %v12142_v62 = vld [vmem:[%s16463_s8 + $0x504] ss:$56 sps:$4 sm:$0xff]  }
 0x5d0   : > { %6999 = vmatmul.mubr.bf16.vlgmr.msra.gmra.mrb[32].mxu0 %v14989_v27  ;;  %7218 = vmatmul.mubr.bf16.vlgmr.msra.gmra.mrb[160].mxu1 %v14989_v27 }
 0x5d1   : > { %10331 = vmatprep.mubr.msk.bf16.mxu0 %vm4014_vm1, %v15029_v10  ;;  %7113 = vmatpush1.bf16.msra.mxu0 %v12071_v28  ;;  %v12137_v28 = vld [vmem:[%s16463_s8 + $0x4e8] ss:$56 sps:$4 sm:$0xff]  }
 0x5d2   : > { %10343 = vmatprep.mubr.msk.bf16.mxu1 %vm4014_vm1, %v15029_v10  ;;  %7332 = vmatpush1.bf16.msra.mxu1 %v12074_v17  ;;  %v12140_v17 = vld [vmem:[%s16463_s8 + $0x500] ss:$56 sps:$4 sm:$0xff]  }
 0x5d3   : > { %7114 = vmatprep.subr.bf16.mxu0 %v12079_v9  ;;  %7333 = vmatprep.subr.bf16.mxu1 %v12082_v16  ;;  %v12145_v9 = vld [vmem:[%s16463_s8 + $0x2c] ss:$56 sps:$4 sm:$0xff]  }
 0x5d4   : > { %v12148_v16 = vld [vmem:[%s16462_s7 + $0x14] ss:$56 sps:$4 sm:$0xff]  }
 0x5d5   : > { %7115 = vmatpush1.bf16.msra.mxu0 %v12077_v43  ;;  %v12143_v43 = vld [vmem:[%s16463_s8 + $0x28] ss:$56 sps:$4 sm:$0xff]  }
 0x5d6   : > { %7334 = vmatpush1.bf16.msra.mxu1 %v12080_v37  ;;  %7116 = vmatprep.subr.bf16.mxu0 %v12085_v22  ;;  %v12146_v37 = vld [vmem:[%s16462_s7 + $0x10] ss:$56 sps:$4 sm:$0xff]   ;;  %v12151_v22 = vld [vmem:[%s16463_s8 + $0x9c] ss:$56 sps:$4 sm:$0xff]  }
 0x5d7   : > { %7335 = vmatprep.subr.bf16.mxu1 %v12088_v18  ;;  %v12154_v18 = vld [vmem:[%s16462_s7 + $0x84] ss:$56 sps:$4 sm:$0xff]  }
 0x5d8   : > { %7009 = vmatmul.mubr.bf16.gmra.mrb[36].mxu0 %v15027_v20  ;;  %7228 = vmatmul.mubr.bf16.gmra.mrb[164].mxu1 %v15027_v20 }
 0x5d9   : > { %10332 = vmatprep.mubr.msk.bf16.mxu0 %vm4014_vm1, %v15067_v38  ;;  %7117 = vmatpush1.bf16.msra.mxu0 %v12083_v40  ;;  %v12149_v40 = vld [vmem:[%s16463_s8 + $0x98] ss:$56 sps:$4 sm:$0xff]  }
 0x5da   : > { %10344 = vmatprep.mubr.msk.bf16.mxu1 %vm4014_vm1, %v15067_v38  ;;  %7336 = vmatpush1.bf16.msra.mxu1 %v12086_v8  ;;  %v12152_v8 = vld [vmem:[%s16462_s7 + $0x80] ss:$56 sps:$4 sm:$0xff]  }
 0x5db   : > { %7118 = vmatprep.subr.bf16.mxu0 %v12091_v50  ;;  %7337 = vmatprep.subr.bf16.mxu1 %v12094_v13  ;;  %v12157_v50 = vld [vmem:[%s16463_s8 + $0x10c] ss:$56 sps:$4 sm:$0xff]  }
 0x5dc   : > { %v12160_v13 = vld [vmem:[%s16462_s7 + $0xf4] ss:$56 sps:$4 sm:$0xff]  }
 0x5dd   : > { %7119 = vmatpush1.bf16.msra.mxu0 %v12089_v47  ;;  %v12155_v47 = vld [vmem:[%s16463_s8 + $0x108] ss:$56 sps:$4 sm:$0xff]  }
 0x5de   : > { %7338 = vmatpush1.bf16.msra.mxu1 %v12092_v3  ;;  %7120 = vmatprep.subr.bf16.mxu0 %v12097_v15  ;;  %v12158_v3 = vld [vmem:[%s16462_s7 + $0xf0] ss:$56 sps:$4 sm:$0xff]   ;;  %v12163_v15 = vld [vmem:[%s16463_s8 + $0x17c] ss:$56 sps:$4 sm:$0xff]  }
 0x5df   : > { %7339 = vmatprep.subr.bf16.mxu1 %v12100_v39  ;;  %v12166_v39 = vld [vmem:[%s16462_s7 + $0x164] ss:$56 sps:$4 sm:$0xff]  }
 0x5e0   : > { %7019 = vmatmul.mubr.bf16.gmra.mrb[40].mxu0 %v15065_v14  ;;  %7238 = vmatmul.mubr.bf16.gmra.mrb[168].mxu1 %v15065_v14 }
 0x5e1   : > { %10333 = vmatprep.mubr.msk.bf16.mxu0 %vm4014_vm1, %v15105_v54  ;;  %7121 = vmatpush1.bf16.msra.mxu0 %v12095_v29  ;;  %v12161_v29 = vld [vmem:[%s16463_s8 + $0x178] ss:$56 sps:$4 sm:$0xff]  }
 0x5e2   : > { %10345 = vmatprep.mubr.msk.bf16.mxu1 %vm4014_vm1, %v15105_v54  ;;  %7340 = vmatpush1.bf16.msra.mxu1 %v12098_v24  ;;  %v12164_v24 = vld [vmem:[%s16462_s7 + $0x160] ss:$56 sps:$4 sm:$0xff]  }
 0x5e3   : > { %7122 = vmatprep.subr.bf16.mxu0 %v12103_v11  ;;  %7341 = vmatprep.subr.bf16.mxu1 %v12106_v34  ;;  %v12169_v11 = vld [vmem:[%s16463_s8 + $0x1ec] ss:$56 sps:$4 sm:$0xff]  }
 0x5e4   : > { %v12172_v34 = vld [vmem:[%s16462_s7 + $0x1d4] ss:$56 sps:$4 sm:$0xff]  }
 0x5e5   : > { %7123 = vmatpush1.bf16.msra.mxu0 %v12101_v61  ;;  %v12167_v61 = vld [vmem:[%s16463_s8 + $0x1e8] ss:$56 sps:$4 sm:$0xff]  }
 0x5e6   : > { %7342 = vmatpush1.bf16.msra.mxu1 %v12104_v36  ;;  %7124 = vmatprep.subr.bf16.mxu0 %v12109_v52  ;;  %v12170_v36 = vld [vmem:[%s16462_s7 + $0x1d0] ss:$56 sps:$4 sm:$0xff]   ;;  %v12175_v52 = vld [vmem:[%s16463_s8 + $0x25c] ss:$56 sps:$4 sm:$0xff]  }
 0x5e7   : > { %7343 = vmatprep.subr.bf16.mxu1 %v12112_v0  ;;  %v12178_v0 = vld [vmem:[%s16462_s7 + $0x244] ss:$56 sps:$4 sm:$0xff]  }
 0x5e8   : > { %7029 = vmatmul.mubr.bf16.gmra.mrb[44].mxu0 %v15103_v7  ;;  %7248 = vmatmul.mubr.bf16.gmra.mrb[172].mxu1 %v15103_v7 }
 0x5e9   : > { %7125 = vmatpush1.bf16.msra.mxu0 %v12107_v6  ;;  %10338 = vmatprep.mubr.msk.bf16.mxu0 %vm4014_vm1, %v14991_v2  ;;  %v12173_v6 = vld [vmem:[%s16463_s8 + $0x258] ss:$56 sps:$4 sm:$0xff]  }
 0x5ea   : > { %7344 = vmatpush1.bf16.msra.mxu1 %v12110_v19  ;;  %10350 = vmatprep.mubr.msk.bf16.mxu1 %vm4014_vm1, %v14991_v2  ;;  %v12176_v19 = vld [vmem:[%s16462_s7 + $0x240] ss:$56 sps:$4 sm:$0xff]  }
 0x5eb   : > { %7126 = vmatprep.subr.bf16.mxu0 %v12115_v23  ;;  %7345 = vmatprep.subr.bf16.mxu1 %v12118_v25  ;;  %v12181_v23 = vld [vmem:[%s16463_s8 + $0x2cc] ss:$56 sps:$4 sm:$0xff]  }
 0x5ec   : > { %v12184_v25 = vld [vmem:[%s16462_s7 + $0x2b4] ss:$56 sps:$4 sm:$0xff]  }
 0x5ed   : > { %7127 = vmatpush1.bf16.msra.mxu0 %v12113_v26  ;;  %v12179_v26 = vld [vmem:[%s16463_s8 + $0x2c8] ss:$56 sps:$4 sm:$0xff]  }
 0x5ee   : > { %7346 = vmatpush1.bf16.msra.mxu1 %v12116_v44  ;;  %7128 = vmatprep.subr.bf16.mxu0 %v12121_v33  ;;  %v12182_v44 = vld [vmem:[%s16462_s7 + $0x2b0] ss:$56 sps:$4 sm:$0xff]   ;;  %v12187_v33 = vld [vmem:[%s16463_s8 + $0x33c] ss:$56 sps:$4 sm:$0xff]  }
 0x5ef   : > { %7347 = vmatprep.subr.bf16.mxu1 %v12124_v12  ;;  %v12190_v12 = vld [vmem:[%s16462_s7 + $0x324] ss:$56 sps:$4 sm:$0xff]  }
 0x5f1   : > { %7129 = vmatpush1.bf16.msra.mxu0 %v12119_v55  ;;  %v12185_v55 = vld [vmem:[%s16463_s8 + $0x338] ss:$56 sps:$4 sm:$0xff]  }
 0x5f2   : > { %7348 = vmatpush1.bf16.msra.mxu1 %v12122_v46  ;;  %7130 = vmatprep.subr.bf16.mxu0 %v12127_v56  ;;  %v12188_v46 = vld [vmem:[%s16462_s7 + $0x320] ss:$56 sps:$4 sm:$0xff]   ;;  %v12193_v56 = vld [vmem:[%s16463_s8 + $0x3ac] ss:$56 sps:$4 sm:$0xff]  }
 0x5f3   : > { %7349 = vmatprep.subr.bf16.mxu1 %v12130_v21  ;;  %v12191_v21 = vld [vmem:[%s16463_s8 + $0x3a8] ss:$56 sps:$4 sm:$0xff]  }
 0x5f5   : > { %7131 = vmatpush1.bf16.msra.mxu0 %v12125_v35  ;;  %v12194_v35 = vld [vmem:[%s16462_s7 + $0x390] ss:$56 sps:$4 sm:$0xff]  }
 0x5f6   : > { %7350 = vmatpush1.bf16.msra.mxu1 %v12128_v51  ;;  %7132 = vmatprep.subr.bf16.mxu0 %v12133_v41  ;;  %v12199_v51 = vld [vmem:[%s16463_s8 + $0x41c] ss:$56 sps:$4 sm:$0xff]  }
 0x5f7   : > { %7351 = vmatprep.subr.bf16.mxu1 %v12136_v63  ;;  %v12202_v41 = vld [vmem:[%s16462_s7 + $0x404] ss:$56 sps:$4 sm:$0xff]   ;;  %v12197_v63 = vld [vmem:[%s16463_s8 + $0x418] ss:$56 sps:$4 sm:$0xff]  }
 0x5f9   : > { %7133 = vmatpush1.bf16.msra.mxu0 %v12131_v45  ;;  %v12200_v45 = vld [vmem:[%s16462_s7 + $0x400] ss:$56 sps:$4 sm:$0xff]  }
 0x5fa   : > { %7352 = vmatpush1.bf16.msra.mxu1 %v12134_v32  ;;  %7134 = vmatprep.subr.bf16.mxu0 %v12139_v1  ;;  %v12205_v32 = vld [vmem:[%s16463_s8 + $0x48c] ss:$56 sps:$4 sm:$0xff]  }
 0x5fb   : > { %7353 = vmatprep.subr.bf16.mxu1 %v12142_v62  ;;  %v12208_v1 = vld [vmem:[%s16462_s7 + $0x474] ss:$56 sps:$4 sm:$0xff]   ;;  %v12203_v62 = vld [vmem:[%s16463_s8 + $0x488] ss:$56 sps:$4 sm:$0xff]  }
 0x5fd   : > { %7135 = vmatpush1.bf16.msra.mxu0 %v12137_v28  ;;  %v12206_v28 = vld [vmem:[%s16462_s7 + $0x470] ss:$56 sps:$4 sm:$0xff]  }
 0x5fe   : > { %7354 = vmatpush1.bf16.msra.mxu1 %v12140_v17  ;;  %7258 = vmatprep.subr.bf16.mxu0 %v12145_v9  ;;  %v12211_v17 = vld [vmem:[%s16463_s8 + $0x4fc] ss:$56 sps:$4 sm:$0xff]  }
 0x5ff   : > { %8402 = vmatprep.subr.bf16.mxu1 %v12148_v16  ;;  %v12214_v9 = vld [vmem:[%s16462_s7 + $0x4e4] ss:$56 sps:$4 sm:$0xff]   ;;  %v12209_v16 = vld [vmem:[%s16463_s8 + $0x4f8] ss:$56 sps:$4 sm:$0xff]  }
 0x600   : > { %7145 = vmatmul.mubr.bf16.vlgmr.msra.gmra.mrb[48].mxu0 %v14989_v27 }
 0x601   : > { %7364 = vmatmul.mubr.bf16.vlgmr.msra.gmra.mrb[176].mxu1 %v14989_v27  ;;  %10339 = vmatprep.mubr.msk.bf16.mxu0 %vm4014_vm1, %v15029_v10 }
 0x602   : > { %7259 = vmatpush1.bf16.msra.mxu0 %v12143_v43  ;;  %10351 = vmatprep.mubr.msk.bf16.mxu1 %vm4014_vm1, %v15029_v10  ;;  %v12212_v43 = vld [vmem:[%s16462_s7 + $0x4e0] ss:$56 sps:$4 sm:$0xff]  }
 0x603   : > { %8403 = vmatpush1.bf16.msra.mxu1 %v12146_v37  ;;  %7260 = vmatprep.subr.bf16.mxu0 %v12151_v22  ;;  %v12217_v37 = vld [vmem:[%s16462_s7 + $0x4] ss:$56 sps:$4 sm:$0xff]  }
 0x604   : > { %8404 = vmatprep.subr.bf16.mxu1 %v12154_v18  ;;  %v12220_v22 = vld [vmem:[%s16462_s7 + $0x24] ss:$56 sps:$4 sm:$0xff]   ;;  %v12215_v18 = vld [vmem:[%s16462_s7] ss:$56 sps:$4 sm:$0xff]  }
 0x606   : > { %7261 = vmatpush1.bf16.msra.mxu0 %v12149_v40  ;;  %v12218_v40 = vld [vmem:[%s16462_s7 + $0x20] ss:$56 sps:$4 sm:$0xff]  }
 0x607   : > { %8405 = vmatpush1.bf16.msra.mxu1 %v12152_v8  ;;  %7262 = vmatprep.subr.bf16.mxu0 %v12157_v50  ;;  %v12223_v8 = vld [vmem:[%s16462_s7 + $0x74] ss:$56 sps:$4 sm:$0xff]  }
 0x608   : > { %7155 = vmatmul.mubr.bf16.gmra.mrb[52].mxu0 %v15027_v20  ;;  %8406 = vmatprep.subr.bf16.mxu1 %v12160_v13  ;;  %v12226_v50 = vld [vmem:[%s16462_s7 + $0x94] ss:$56 sps:$4 sm:$0xff]   ;;  %v12221_v13 = vld [vmem:[%s16462_s7 + $0x70] ss:$56 sps:$4 sm:$0xff]  }
 0x609   : > { %7374 = vmatmul.mubr.bf16.gmra.mrb[180].mxu1 %v15027_v20  ;;  %10340 = vmatprep.mubr.msk.bf16.mxu0 %vm4014_vm1, %v15067_v38 }
 0x60a   : > { %7263 = vmatpush1.bf16.msra.mxu0 %v12155_v47  ;;  %10352 = vmatprep.mubr.msk.bf16.mxu1 %vm4014_vm1, %v15067_v38  ;;  %v12229_v47 = vld [vmem:[%s16462_s7 + $0xe4] ss:$56 sps:$4 sm:$0xff]  }
 0x60b   : > { %8407 = vmatpush1.bf16.msra.mxu1 %v12158_v3  ;;  %7264 = vmatprep.subr.bf16.mxu0 %v12163_v15  ;;  %v12227_v3 = vld [vmem:[%s16462_s7 + $0xe0] ss:$56 sps:$4 sm:$0xff]  }
 0x60c   : > { %8408 = vmatprep.subr.bf16.mxu1 %v12166_v39  ;;  %v12230_v15 = vld [vmem:[%s16462_s7 + $0x100] ss:$56 sps:$4 sm:$0xff]   ;;  %v12235_v39 = vld [vmem:[%s16462_s7 + $0x154] ss:$56 sps:$4 sm:$0xff]  }
 0x60e   : > { %7265 = vmatpush1.bf16.msra.mxu0 %v12161_v29  ;;  %v12238_v29 = vld [vmem:[%s16462_s7 + $0x174] ss:$56 sps:$4 sm:$0xff]  }
 0x60f   : > { %8409 = vmatpush1.bf16.msra.mxu1 %v12164_v24  ;;  %7266 = vmatprep.subr.bf16.mxu0 %v12169_v11  ;;  %v12233_v24 = vld [vmem:[%s16462_s7 + $0x150] ss:$56 sps:$4 sm:$0xff]   ;;  %v12241_v11 = vld [vmem:[%s16462_s7 + $0x1c4] ss:$56 sps:$4 sm:$0xff]  }
 0x610   : > { %7165 = vmatmul.mubr.bf16.gmra.mrb[56].mxu0 %v15065_v14  ;;  %8410 = vmatprep.subr.bf16.mxu1 %v12172_v34  ;;  %v12239_v34 = vld [vmem:[%s16462_s7 + $0x1c0] ss:$56 sps:$4 sm:$0xff]  }
 0x611   : > { %7384 = vmatmul.mubr.bf16.gmra.mrb[184].mxu1 %v15065_v14  ;;  %10341 = vmatprep.mubr.msk.bf16.mxu0 %vm4014_vm1, %v15105_v54 }
 0x612   : > { %7267 = vmatpush1.bf16.msra.mxu0 %v12167_v61  ;;  %10353 = vmatprep.mubr.msk.bf16.mxu1 %vm4014_vm1, %v15105_v54  ;;  %v12242_v61 = vld [vmem:[%s16462_s7 + $0x1e0] ss:$56 sps:$4 sm:$0xff]  }
 0x613   : > { %8411 = vmatpush1.bf16.msra.mxu1 %v12170_v36  ;;  %7268 = vmatprep.subr.bf16.mxu0 %v12175_v52  ;;  %v12247_v36 = vld [vmem:[%s16462_s7 + $0x234] ss:$56 sps:$4 sm:$0xff]  }
 0x614   : > { %8412 = vmatprep.subr.bf16.mxu1 %v12178_v0  ;;  %v12250_v52 = vld [vmem:[%s16462_s7 + $0x254] ss:$56 sps:$4 sm:$0xff]   ;;  %v12245_v0 = vld [vmem:[%s16462_s7 + $0x230] ss:$56 sps:$4 sm:$0xff]  }
 0x616   : > { %7269 = vmatpush1.bf16.msra.mxu0 %v12173_v6  ;;  %v12253_v6 = vld [vmem:[%s16462_s7 + $0x2a4] ss:$56 sps:$4 sm:$0xff]  }
 0x617   : > { %8413 = vmatpush1.bf16.msra.mxu1 %v12176_v19  ;;  %7270 = vmatprep.subr.bf16.mxu0 %v12181_v23  ;;  %v12251_v19 = vld [vmem:[%s16462_s7 + $0x2a0] ss:$56 sps:$4 sm:$0xff]  }
 0x618   : > { %7175 = vmatmul.mubr.bf16.gmra.mrb[60].mxu0 %v15103_v7  ;;  %8414 = vmatprep.subr.bf16.mxu1 %v12184_v25  ;;  %v12254_v23 = vld [vmem:[%s16462_s7 + $0x2c0] ss:$56 sps:$4 sm:$0xff]   ;;  %v12259_v25 = vld [vmem:[%s16462_s7 + $0x314] ss:$56 sps:$4 sm:$0xff]  }
 0x619   : > { %7394 = vmatmul.mubr.bf16.gmra.mrb[188].mxu1 %v15103_v7  ;;  %10346 = vmatprep.mubr.msk.bf16.mxu0 %vm4014_vm1, %v14991_v2  ;;  %v12196_v2 = vld [vmem:[%s16462_s7 + $0x394] ss:$56 sps:$4 sm:$0xff]  }
 0x61a   : > { %7271 = vmatpush1.bf16.msra.mxu0 %v12179_v26  ;;  %10530 = vmatprep.mubr.msk.bf16.mxu1 %vm4014_vm1, %v14237_v31  ;;  %v12262_v26 = vld [vmem:[%s16462_s7 + $0x334] ss:$56 sps:$4 sm:$0xff]  }
 0x61b   : > { %8415 = vmatpush1.bf16.msra.mxu1 %v12182_v44  ;;  %7272 = vmatprep.subr.bf16.mxu0 %v12187_v33  ;;  %v12257_v44 = vld [vmem:[%s16462_s7 + $0x310] ss:$56 sps:$4 sm:$0xff]   ;;  %v12265_v33 = vld [vmem:[%s16462_s7 + $0x384] ss:$56 sps:$4 sm:$0xff]  }
 0x61c   : > { %8416 = vmatprep.subr.bf16.mxu1 %v12190_v12  ;;  %v12268_v12 = vld [vmem:[%s16462_s7 + $0x3a4] ss:$56 sps:$4 sm:$0xff]  }
 0x61e   : > { %7273 = vmatpush1.bf16.msra.mxu0 %v12185_v55  ;;  %v12263_v55 = vld [vmem:[%s16462_s7 + $0x380] ss:$56 sps:$4 sm:$0xff]  }
 0x61f   : > { %8417 = vmatpush1.bf16.msra.mxu1 %v12188_v46  ;;  %7274 = vmatprep.subr.bf16.mxu0 %v12193_v56  ;;  %v12266_v46 = vld [vmem:[%s16462_s7 + $0x3a0] ss:$56 sps:$4 sm:$0xff]   ;;  %v12271_v56 = vld [vmem:[%s16462_s7 + $0x3f4] ss:$56 sps:$4 sm:$0xff]  }
 0x620   : > { %8418 = vmatprep.subr.bf16.mxu1 %v12196_v2  ;;  %v12274_v2 = vld [vmem:[%s16462_s7 + $0x414] ss:$56 sps:$4 sm:$0xff]  }
 0x622   : > { %7275 = vmatpush1.bf16.msra.mxu0 %v12191_v21  ;;  %v12269_v21 = vld [vmem:[%s16462_s7 + $0x3f0] ss:$56 sps:$4 sm:$0xff]  }
 0x623   : > { %8419 = vmatpush1.bf16.msra.mxu1 %v12194_v35  ;;  %7276 = vmatprep.subr.bf16.mxu0 %v12199_v51  ;;  %v12272_v35 = vld [vmem:[%s16462_s7 + $0x410] ss:$56 sps:$4 sm:$0xff]   ;;  %v12277_v51 = vld [vmem:[%s16462_s7 + $0x464] ss:$56 sps:$4 sm:$0xff]  }
 0x624   : > { %8420 = vmatprep.subr.bf16.mxu1 %v12202_v41  ;;  %v12280_v41 = vld [vmem:[%s16462_s7 + $0x484] ss:$56 sps:$4 sm:$0xff]  }
 0x626   : > { %7277 = vmatpush1.bf16.msra.mxu0 %v12197_v63  ;;  %v12275_v63 = vld [vmem:[%s16462_s7 + $0x460] ss:$56 sps:$4 sm:$0xff]  }
 0x627   : > { %8421 = vmatpush1.bf16.msra.mxu1 %v12200_v45  ;;  %7278 = vmatprep.subr.bf16.mxu0 %v12205_v32  ;;  %v12278_v45 = vld [vmem:[%s16462_s7 + $0x480] ss:$56 sps:$4 sm:$0xff]   ;;  %v12283_v32 = vld [vmem:[%s16462_s7 + $0x4d4] ss:$56 sps:$4 sm:$0xff]  }
 0x628   : > { %8422 = vmatprep.subr.bf16.mxu1 %v12208_v1  ;;  %v12286_v1 = vld [vmem:[%s16462_s7 + $0x4f4] ss:$56 sps:$4 sm:$0xff]  }
 0x62a   : > { %7279 = vmatpush1.bf16.msra.mxu0 %v12203_v62  ;;  %v12281_v62 = vld [vmem:[%s16462_s7 + $0x4d0] ss:$56 sps:$4 sm:$0xff]  }
 0x62b   : > { %8423 = vmatpush1.bf16.msra.mxu1 %v12206_v28  ;;  %7280 = vmatprep.subr.bf16.mxu0 %v12211_v17  ;;  %v12284_v28 = vld [vmem:[%s16462_s7 + $0x4f0] ss:$56 sps:$4 sm:$0xff]   ;;  %v12289_v17 = vld [vmem:[%s16462_s7 + $0xc] ss:$56 sps:$4 sm:$0xff]  }
 0x62c   : > { %8424 = vmatprep.subr.bf16.mxu1 %v12214_v9  ;;  %v12292_v9 = vld [vmem:[%s16462_s7 + $0x34] ss:$56 sps:$4 sm:$0xff]  }
 0x62e   : > { %7281 = vmatpush1.bf16.msra.mxu0 %v12209_v16  ;;  %v12287_v16 = vld [vmem:[%s16462_s7 + $0x8] ss:$56 sps:$4 sm:$0xff]  }
 0x62f   : > { %8425 = vmatpush1.bf16.msra.mxu1 %v12212_v43  ;;  %8256 = vmatprep.subr.bf16.mxu0 %v12217_v37  ;;  %v12290_v43 = vld [vmem:[%s16462_s7 + $0x30] ss:$56 sps:$4 sm:$0xff]   ;;  %v12295_v37 = vld [vmem:[%s16462_s7 + $0x7c] ss:$56 sps:$4 sm:$0xff]  }
 0x630   : > { %8548 = vmatprep.subr.bf16.mxu1 %v12220_v22  ;;  %v12298_v22 = vld [vmem:[%s16462_s7 + $0xa4] ss:$56 sps:$4 sm:$0xff]  }
 0x631   : > { %7291 = vmatmul.mubr.bf16.vlgmr.msra.gmra.mrb[64].mxu0 %v14989_v27  ;;  %v12224_v27 = vld [vmem:[%s16462_s7 + $0x90] ss:$56 sps:$4 sm:$0xff]  }
 0x632   : > { %8435 = vmatmul.mubr.bf16.vlgmr.msra.gmra.mrb[144].mxu1 %v14235_v5  ;;  %10347 = vmatprep.mubr.msk.bf16.mxu0 %vm4014_vm1, %v15029_v10  ;;  %v12232_v10 = vld [vmem:[%s16462_s7 + $0x104] ss:$56 sps:$4 sm:$0xff]  }
 0x633   : > { %8257 = vmatpush1.bf16.msra.mxu0 %v12215_v18  ;;  %10531 = vmatprep.mubr.msk.bf16.mxu1 %vm4014_vm1, %v14261_v48  ;;  %v12293_v18 = vld [vmem:[%s16462_s7 + $0x78] ss:$56 sps:$4 sm:$0xff]  }
 0x634   : > { %8549 = vmatpush1.bf16.msra.mxu1 %v12218_v40  ;;  %8258 = vmatprep.subr.bf16.mxu0 %v12223_v8  ;;  %v12296_v40 = vld [vmem:[%s16462_s7 + $0xa0] ss:$56 sps:$4 sm:$0xff]   ;;  %v12301_v8 = vld [vmem:[%s16462_s7 + $0xec] ss:$56 sps:$4 sm:$0xff]  }
 0x635   : > { %8550 = vmatprep.subr.bf16.mxu1 %v12226_v50  ;;  %v12304_v50 = vld [vmem:[%s16462_s7 + $0x114] ss:$56 sps:$4 sm:$0xff]  }
 0x637   : > { %8259 = vmatpush1.bf16.msra.mxu0 %v12221_v13  ;;  %v12299_v13 = vld [vmem:[%s16462_s7 + $0xe8] ss:$56 sps:$4 sm:$0xff]  }
 0x638   : > { %8551 = vmatpush1.bf16.msra.mxu1 %v12224_v27  ;;  %8260 = vmatprep.subr.bf16.mxu0 %v12229_v47  ;;  %v12302_v27 = vld [vmem:[%s16462_s7 + $0x110] ss:$56 sps:$4 sm:$0xff]   ;;  %v12307_v47 = vld [vmem:[%s16462_s7 + $0x15c] ss:$56 sps:$4 sm:$0xff]  }
 0x639   : > { %7301 = vmatmul.mubr.bf16.gmra.mrb[68].mxu0 %v15027_v20  ;;  %8552 = vmatprep.subr.bf16.mxu1 %v12232_v10  ;;  %v12236_v20 = vld [vmem:[%s16462_s7 + $0x170] ss:$56 sps:$4 sm:$0xff]   ;;  %v12310_v10 = vld [vmem:[%s16462_s7 + $0x184] ss:$56 sps:$4 sm:$0xff]  }
 0x63a   : > { %8445 = vmatmul.mubr.bf16.gmra.mrb[148].mxu1 %v14259_v4  ;;  %10348 = vmatprep.mubr.msk.bf16.mxu0 %vm4014_vm1, %v15067_v38  ;;  %v12244_v38 = vld [vmem:[%s16462_s7 + $0x1e4] ss:$56 sps:$4 sm:$0xff]  }
 0x63b   : > { %8261 = vmatpush1.bf16.msra.mxu0 %v12227_v3  ;;  %10532 = vmatprep.mubr.msk.bf16.mxu1 %vm4014_vm1, %v14277_v57  ;;  %v12305_v3 = vld [vmem:[%s16462_s7 + $0x158] ss:$56 sps:$4 sm:$0xff]  }
 0x63c   : > { %8553 = vmatpush1.bf16.msra.mxu1 %v12230_v15  ;;  %8262 = vmatprep.subr.bf16.mxu0 %v12235_v39  ;;  %v12308_v15 = vld [vmem:[%s16462_s7 + $0x180] ss:$56 sps:$4 sm:$0xff]   ;;  %v12313_v39 = vld [vmem:[%s16462_s7 + $0x1cc] ss:$56 sps:$4 sm:$0xff]  }
 0x63d   : > { %8554 = vmatprep.subr.bf16.mxu1 %v12238_v29  ;;  %v12316_v29 = vld [vmem:[%s16462_s7 + $0x1f4] ss:$56 sps:$4 sm:$0xff]  }
 0x63f   : > { %8263 = vmatpush1.bf16.msra.mxu0 %v12233_v24  ;;  %v12311_v24 = vld [vmem:[%s16462_s7 + $0x1c8] ss:$56 sps:$4 sm:$0xff]  }
 0x640   : > { %8555 = vmatpush1.bf16.msra.mxu1 %v12236_v20  ;;  %8264 = vmatprep.subr.bf16.mxu0 %v12241_v11  ;;  %v12314_v20 = vld [vmem:[%s16462_s7 + $0x1f0] ss:$56 sps:$4 sm:$0xff]   ;;  %v12319_v11 = vld [vmem:[%s16462_s7 + $0x23c] ss:$56 sps:$4 sm:$0xff]  }
 0x641   : > { %7311 = vmatmul.mubr.bf16.gmra.mrb[72].mxu0 %v15065_v14  ;;  %8556 = vmatprep.subr.bf16.mxu1 %v12244_v38  ;;  %v12248_v14 = vld [vmem:[%s16462_s7 + $0x250] ss:$56 sps:$4 sm:$0xff]   ;;  %v12322_v38 = vld [vmem:[%s16462_s7 + $0x264] ss:$56 sps:$4 sm:$0xff]  }
 0x642   : > { %8455 = vmatmul.mubr.bf16.gmra.mrb[152].mxu1 %v14275_v58  ;;  %10349 = vmatprep.mubr.msk.bf16.mxu0 %vm4014_vm1, %v15105_v54  ;;  %v12256_v54 = vld [vmem:[%s16462_s7 + $0x2c4] ss:$56 sps:$4 sm:$0xff]  }
 0x643   : > { %8265 = vmatpush1.bf16.msra.mxu0 %v12239_v34  ;;  %10533 = vmatprep.mubr.msk.bf16.mxu1 %vm4014_vm1, %v14297_v60  ;;  %v12317_v34 = vld [vmem:[%s16462_s7 + $0x238] ss:$56 sps:$4 sm:$0xff]  }
 0x644   : > { %8557 = vmatpush1.bf16.msra.mxu1 %v12242_v61  ;;  %8266 = vmatprep.subr.bf16.mxu0 %v12247_v36  ;;  %v12320_v61 = vld [vmem:[%s16462_s7 + $0x260] ss:$56 sps:$4 sm:$0xff]   ;;  %v12325_v36 = vld [vmem:[%s16462_s7 + $0x2ac] ss:$56 sps:$4 sm:$0xff]  }
 0x645   : > { %8558 = vmatprep.subr.bf16.mxu1 %v12250_v52  ;;  %v12328_v52 = vld [vmem:[%s16462_s7 + $0x2d4] ss:$56 sps:$4 sm:$0xff]  }
 0x647   : > { %8267 = vmatpush1.bf16.msra.mxu0 %v12245_v0  ;;  %v12323_v0 = vld [vmem:[%s16462_s7 + $0x2a8] ss:$56 sps:$4 sm:$0xff]  }
 0x648   : > { %8559 = vmatpush1.bf16.msra.mxu1 %v12248_v14  ;;  %8268 = vmatprep.subr.bf16.mxu0 %v12253_v6  ;;  %v12326_v14 = vld [vmem:[%s16462_s7 + $0x2d0] ss:$56 sps:$4 sm:$0xff]   ;;  %v12331_v6 = vld [vmem:[%s16462_s7 + $0x31c] ss:$56 sps:$4 sm:$0xff]  }
 0x649   : > { %7321 = vmatmul.mubr.bf16.gmra.mrb[76].mxu0 %v15103_v7  ;;  %8560 = vmatprep.subr.bf16.mxu1 %v12256_v54  ;;  %v12260_v7 = vld [vmem:[%s16462_s7 + $0x330] ss:$56 sps:$4 sm:$0xff]   ;;  %v12334_v54 = vld [vmem:[%s16462_s7 + $0x344] ss:$56 sps:$4 sm:$0xff]  }
 0x64a   : > { %8465 = vmatmul.mubr.bf16.gmra.mrb[156].mxu1 %v14295_v59  ;;  %10522 = vmatprep.mubr.msk.bf16.mxu0 %vm4014_vm1, %v14237_v31 }
 0x64b   : > { %8269 = vmatpush1.bf16.msra.mxu0 %v12251_v19  ;;  %10538 = vmatprep.mubr.msk.bf16.mxu1 %vm4014_vm1, %v14237_v31  ;;  %v12329_v19 = vld [vmem:[%s16462_s7 + $0x318] ss:$56 sps:$4 sm:$0xff]  }
 0x64c   : > { %8561 = vmatpush1.bf16.msra.mxu1 %v12254_v23  ;;  %8270 = vmatprep.subr.bf16.mxu0 %v12259_v25  ;;  %v12332_v23 = vld [vmem:[%s16462_s7 + $0x340] ss:$56 sps:$4 sm:$0xff]   ;;  %v12337_v25 = vld [vmem:[%s16462_s7 + $0x38c] ss:$56 sps:$4 sm:$0xff]  }
 0x64d   : > { %8562 = vmatprep.subr.bf16.mxu1 %v12262_v26  ;;  %v12340_v26 = vld [vmem:[%s16462_s7 + $0x3b4] ss:$56 sps:$4 sm:$0xff]  }
 0x64f   : > { %8271 = vmatpush1.bf16.msra.mxu0 %v12257_v44  ;;  %v12335_v44 = vld [vmem:[%s16462_s7 + $0x388] ss:$56 sps:$4 sm:$0xff]  }
 0x650   : > { %8563 = vmatpush1.bf16.msra.mxu1 %v12260_v7  ;;  %8272 = vmatprep.subr.bf16.mxu0 %v12265_v33  ;;  %v12338_v7 = vld [vmem:[%s16462_s7 + $0x3b0] ss:$56 sps:$4 sm:$0xff]   ;;  %v12343_v33 = vld [vmem:[%s16462_s7 + $0x3fc] ss:$56 sps:$4 sm:$0xff]  }
 0x651   : > { %8564 = vmatprep.subr.bf16.mxu1 %v12268_v12  ;;  %v12346_v12 = vld [vmem:[%s16462_s7 + $0x424] ss:$56 sps:$4 sm:$0xff]  }
 0x653   : > { %8273 = vmatpush1.bf16.msra.mxu0 %v12263_v55  ;;  %v12341_v55 = vld [vmem:[%s16462_s7 + $0x3f8] ss:$56 sps:$4 sm:$0xff]  }
 0x654   : > { %8565 = vmatpush1.bf16.msra.mxu1 %v12266_v46  ;;  %8274 = vmatprep.subr.bf16.mxu0 %v12271_v56  ;;  %v12344_v46 = vld [vmem:[%s16462_s7 + $0x420] ss:$56 sps:$4 sm:$0xff]   ;;  %v12349_v56 = vld [vmem:[%s16462_s7 + $0x46c] ss:$56 sps:$4 sm:$0xff]  }
 0x655   : > { %8566 = vmatprep.subr.bf16.mxu1 %v12274_v2  ;;  %v12352_v2 = vld [vmem:[%s16462_s7 + $0x494] ss:$56 sps:$4 sm:$0xff]  }
 0x657   : > { %8275 = vmatpush1.bf16.msra.mxu0 %v12269_v21  ;;  %v12347_v21 = vld [vmem:[%s16462_s7 + $0x468] ss:$56 sps:$4 sm:$0xff]  }
 0x658   : > { %8567 = vmatpush1.bf16.msra.mxu1 %v12272_v35  ;;  %8276 = vmatprep.subr.bf16.mxu0 %v12277_v51  ;;  %v12350_v35 = vld [vmem:[%s16462_s7 + $0x490] ss:$56 sps:$4 sm:$0xff]   ;;  %v12355_v51 = vld [vmem:[%s16462_s7 + $0x4dc] ss:$56 sps:$4 sm:$0xff]  }
 0x659   : > { %8568 = vmatprep.subr.bf16.mxu1 %v12280_v41  ;;  %v12358_v41 = vld [vmem:[%s16462_s7 + $0x504] ss:$56 sps:$4 sm:$0xff]  }
 0x65b   : > { %8277 = vmatpush1.bf16.msra.mxu0 %v12275_v63  ;;  %v12353_v63 = vld [vmem:[%s16462_s7 + $0x4d8] ss:$56 sps:$4 sm:$0xff]  }
 0x65c   : > { %8569 = vmatpush1.bf16.msra.mxu1 %v12278_v45  ;;  %8278 = vmatprep.subr.bf16.mxu0 %v12283_v32  ;;  %v12356_v45 = vld [vmem:[%s16462_s7 + $0x500] ss:$56 sps:$4 sm:$0xff]   ;;  %v12361_v32 = vld [vmem:[%s16462_s7 + $0x1c] ss:$56 sps:$4 sm:$0xff]  }
 0x65d   : > { %8570 = vmatprep.subr.bf16.mxu1 %v12286_v1  ;;  %v12359_v1 = vld [vmem:[%s16462_s7 + $0x18] ss:$56 sps:$4 sm:$0xff]  }
 0x65f   : > { %8279 = vmatpush1.bf16.msra.mxu0 %v12281_v62  ;;  %v12364_v62 = vld [vmem:[%s16462_s7 + $0x8c] ss:$56 sps:$4 sm:$0xff]  }
 0x660   : > { %8571 = vmatpush1.bf16.msra.mxu1 %v12284_v28  ;;  %8329 = vmatprep.subr.bf16.mxu0 %v12289_v17  ;;  %v12362_v28 = vld [vmem:[%s16462_s7 + $0x88] ss:$56 sps:$4 sm:$0xff]   ;;  %v12367_v17 = vld [vmem:[%s16462_s7 + $0xfc] ss:$56 sps:$4 sm:$0xff]  }
 0x661   : > { %8694 = vmatprep.subr.bf16.mxu1 %v12292_v9  ;;  %v12365_v9 = vld [vmem:[%s16462_s7 + $0xf8] ss:$56 sps:$4 sm:$0xff]  }
 0x662   : > { %8289 = vmatmul.mubr.bf16.vlgmr.msra.gmra.mrb[16].mxu0 %v14235_v5 }
 0x663   : > { %8581 = vmatmul.mubr.bf16.vlgmr.msra.gmra.mrb[160].mxu1 %v14235_v5  ;;  %10523 = vmatprep.mubr.msk.bf16.mxu0 %vm4014_vm1, %v14261_v48 }
 0x664   : > { %8330 = vmatpush1.bf16.msra.mxu0 %v12287_v16  ;;  %10539 = vmatprep.mubr.msk.bf16.mxu1 %vm4014_vm1, %v14261_v48  ;;  %v12370_v16 = vld [vmem:[%s16462_s7 + $0x16c] ss:$56 sps:$4 sm:$0xff]  }
 0x665   : > { %8695 = vmatpush1.bf16.msra.mxu1 %v12290_v43  ;;  %8331 = vmatprep.subr.bf16.mxu0 %v12295_v37  ;;  %v12368_v43 = vld [vmem:[%s16462_s7 + $0x168] ss:$56 sps:$4 sm:$0xff]   ;;  %v12373_v37 = vld [vmem:[%s16462_s7 + $0x1dc] ss:$56 sps:$4 sm:$0xff]  }
 0x666   : > { %8696 = vmatprep.subr.bf16.mxu1 %v12298_v22  ;;  %v12371_v22 = vld [vmem:[%s16462_s7 + $0x1d8] ss:$56 sps:$4 sm:$0xff]  }
 0x668   : > { %8332 = vmatpush1.bf16.msra.mxu0 %v12293_v18  ;;  %v12376_v18 = vld [vmem:[%s16462_s7 + $0x24c] ss:$56 sps:$4 sm:$0xff]  }
 0x669   : > { %8697 = vmatpush1.bf16.msra.mxu1 %v12296_v40  ;;  %8333 = vmatprep.subr.bf16.mxu0 %v12301_v8  ;;  %v12374_v40 = vld [vmem:[%s16462_s7 + $0x248] ss:$56 sps:$4 sm:$0xff]   ;;  %v12379_v8 = vld [vmem:[%s16462_s7 + $0x2bc] ss:$56 sps:$4 sm:$0xff]  }
 0x66a   : > { %8299 = vmatmul.mubr.bf16.gmra.mrb[20].mxu0 %v14259_v4  ;;  %8698 = vmatprep.subr.bf16.mxu1 %v12304_v50  ;;  %v12377_v50 = vld [vmem:[%s16462_s7 + $0x2b8] ss:$56 sps:$4 sm:$0xff]  }
 0x66b   : > { %8591 = vmatmul.mubr.bf16.gmra.mrb[164].mxu1 %v14259_v4  ;;  %10524 = vmatprep.mubr.msk.bf16.mxu0 %vm4014_vm1, %v14277_v57 }
 0x66c   : > { %8334 = vmatpush1.bf16.msra.mxu0 %v12299_v13  ;;  %10540 = vmatprep.mubr.msk.bf16.mxu1 %vm4014_vm1, %v14277_v57  ;;  %v12382_v13 = vld [vmem:[%s16462_s7 + $0x32c] ss:$56 sps:$4 sm:$0xff]  }
 0x66d   : > { %8699 = vmatpush1.bf16.msra.mxu1 %v12302_v27  ;;  %8335 = vmatprep.subr.bf16.mxu0 %v12307_v47  ;;  %v12380_v27 = vld [vmem:[%s16462_s7 + $0x328] ss:$56 sps:$4 sm:$0xff]   ;;  %v12385_v47 = vld [vmem:[%s16462_s7 + $0x39c] ss:$56 sps:$4 sm:$0xff]  }
 0x66e   : > { %8700 = vmatprep.subr.bf16.mxu1 %v12310_v10  ;;  %v12383_v10 = vld [vmem:[%s16462_s7 + $0x398] ss:$56 sps:$4 sm:$0xff]  }
 0x670   : > { %8336 = vmatpush1.bf16.msra.mxu0 %v12305_v3  ;;  %v12388_v3 = vld [vmem:[%s16462_s7 + $0x40c] ss:$56 sps:$4 sm:$0xff]  }
 0x671   : > { %8701 = vmatpush1.bf16.msra.mxu1 %v12308_v15  ;;  %8337 = vmatprep.subr.bf16.mxu0 %v12313_v39  ;;  %v12386_v15 = vld [vmem:[%s16462_s7 + $0x408] ss:$56 sps:$4 sm:$0xff]   ;;  %v12391_v39 = vld [vmem:[%s16462_s7 + $0x47c] ss:$56 sps:$4 sm:$0xff]  }
 0x672   : > { %8309 = vmatmul.mubr.bf16.gmra.mrb[24].mxu0 %v14275_v58  ;;  %8702 = vmatprep.subr.bf16.mxu1 %v12316_v29  ;;  %v12389_v29 = vld [vmem:[%s16462_s7 + $0x478] ss:$56 sps:$4 sm:$0xff]  }
 0x673   : > { %8601 = vmatmul.mubr.bf16.gmra.mrb[168].mxu1 %v14275_v58  ;;  %10525 = vmatprep.mubr.msk.bf16.mxu0 %vm4014_vm1, %v14297_v60 }
 0x674   : > { %8338 = vmatpush1.bf16.msra.mxu0 %v12311_v24  ;;  %10541 = vmatprep.mubr.msk.bf16.mxu1 %vm4014_vm1, %v14297_v60  ;;  %v12394_v24 = vld [vmem:[%s16462_s7 + $0x4ec] ss:$56 sps:$4 sm:$0xff]  }
 0x675   : > { %8703 = vmatpush1.bf16.msra.mxu1 %v12314_v20  ;;  %8339 = vmatprep.subr.bf16.mxu0 %v12319_v11  ;;  %v12392_v20 = vld [vmem:[%s16462_s7 + $0x4e8] ss:$56 sps:$4 sm:$0xff]   ;;  %v12397_v11 = vld [vmem:[%s16462_s7 + $0x2c] ss:$56 sps:$4 sm:$0xff]  }
 0x676   : > { %8704 = vmatprep.subr.bf16.mxu1 %v12322_v38  ;;  %v12395_v38 = vld [vmem:[%s16462_s7 + $0x28] ss:$56 sps:$4 sm:$0xff]  }
 0x678   : > { %8340 = vmatpush1.bf16.msra.mxu0 %v12317_v34  ;;  %v12400_v34 = vld [vmem:[%s16462_s7 + $0x9c] ss:$56 sps:$4 sm:$0xff]  }
 0x679   : > { %8705 = vmatpush1.bf16.msra.mxu1 %v12320_v61  ;;  %8341 = vmatprep.subr.bf16.mxu0 %v12325_v36  ;;  %v12398_v61 = vld [vmem:[%s16462_s7 + $0x98] ss:$56 sps:$4 sm:$0xff]   ;;  %v12403_v36 = vld [vmem:[%s16462_s7 + $0x10c] ss:$56 sps:$4 sm:$0xff]  }
 0x67a   : > { %8319 = vmatmul.mubr.bf16.gmra.mrb[28].mxu0 %v14295_v59  ;;  %8706 = vmatprep.subr.bf16.mxu1 %v12328_v52  ;;  %v12401_v52 = vld [vmem:[%s16462_s7 + $0x108] ss:$56 sps:$4 sm:$0xff]  }
 0x67b   : > { %8611 = vmatmul.mubr.bf16.gmra.mrb[172].mxu1 %v14295_v59  ;;  %10526 = vmatprep.mubr.msk.bf16.mxu0 %vm4014_vm1, %v14237_v31 }
 0x67c   : > { %8342 = vmatpush1.bf16.msra.mxu0 %v12323_v0  ;;  %10546 = vmatprep.mubr.msk.bf16.mxu1 %vm4014_vm1, %v14237_v31  ;;  %v12406_v0 = vld [vmem:[%s16462_s7 + $0x17c] ss:$56 sps:$4 sm:$0xff]  }
 0x67d   : > { %8707 = vmatpush1.bf16.msra.mxu1 %v12326_v14  ;;  %8343 = vmatprep.subr.bf16.mxu0 %v12331_v6  ;;  %v12404_v14 = vld [vmem:[%s16462_s7 + $0x178] ss:$56 sps:$4 sm:$0xff]   ;;  %v12409_v6 = vld [vmem:[%s16462_s7 + $0x1ec] ss:$56 sps:$4 sm:$0xff]  }
 0x67e   : > { %8708 = vmatprep.subr.bf16.mxu1 %v12334_v54  ;;  %v12407_v54 = vld [vmem:[%s16462_s7 + $0x1e8] ss:$56 sps:$4 sm:$0xff]  }
 0x680   : > { %8344 = vmatpush1.bf16.msra.mxu0 %v12329_v19  ;;  %v12412_v19 = vld [vmem:[%s16462_s7 + $0x25c] ss:$56 sps:$4 sm:$0xff]  }
 0x681   : > { %8709 = vmatpush1.bf16.msra.mxu1 %v12332_v23  ;;  %8345 = vmatprep.subr.bf16.mxu0 %v12337_v25  ;;  %v12410_v23 = vld [vmem:[%s16462_s7 + $0x258] ss:$56 sps:$4 sm:$0xff]   ;;  %v12415_v25 = vld [vmem:[%s16462_s7 + $0x2cc] ss:$56 sps:$4 sm:$0xff]  }
 0x682   : > { %8710 = vmatprep.subr.bf16.mxu1 %v12340_v26  ;;  %v12413_v26 = vld [vmem:[%s16462_s7 + $0x2c8] ss:$56 sps:$4 sm:$0xff]  }
 0x684   : > { %8346 = vmatpush1.bf16.msra.mxu0 %v12335_v44  ;;  %v12418_v44 = vld [vmem:[%s16462_s7 + $0x33c] ss:$56 sps:$4 sm:$0xff]  }
 0x685   : > { %8711 = vmatpush1.bf16.msra.mxu1 %v12338_v7  ;;  %8347 = vmatprep.subr.bf16.mxu0 %v12343_v33  ;;  %v12416_v7 = vld [vmem:[%s16462_s7 + $0x338] ss:$56 sps:$4 sm:$0xff]   ;;  %v12421_v33 = vld [vmem:[%s16462_s7 + $0x3ac] ss:$56 sps:$4 sm:$0xff]  }
 0x686   : > { %8712 = vmatprep.subr.bf16.mxu1 %v12346_v12  ;;  %v12419_v12 = vld [vmem:[%s16462_s7 + $0x3a8] ss:$56 sps:$4 sm:$0xff]  }
 0x688   : > { %8348 = vmatpush1.bf16.msra.mxu0 %v12341_v55  ;;  %v12424_v55 = vld [vmem:[%s16462_s7 + $0x41c] ss:$56 sps:$4 sm:$0xff]  }
 0x689   : > { %8713 = vmatpush1.bf16.msra.mxu1 %v12344_v46  ;;  %8349 = vmatprep.subr.bf16.mxu0 %v12349_v56  ;;  %v12427_v46 = vld [vmem:[%s16462_s7 + $0x48c] ss:$56 sps:$4 sm:$0xff]   ;;  %v12425_v56 = vld [vmem:[%s16462_s7 + $0x488] ss:$56 sps:$4 sm:$0xff]  }
 0x68a   : > { %8714 = vmatprep.subr.bf16.mxu1 %v12352_v2  ;;  %v12430_v2 = vld [vmem:[%s16462_s7 + $0x4fc] ss:$56 sps:$4 sm:$0xff]  }
 0x68c   : > { %8350 = vmatpush1.bf16.msra.mxu0 %v12347_v21  ;;  %v12428_v21 = vld [vmem:[%s16462_s7 + $0x4f8] ss:$56 sps:$4 sm:$0xff]  }
 0x68d   : > { %8715 = vmatpush1.bf16.msra.mxu1 %v12350_v35  ;;  %8351 = vmatprep.subr.bf16.mxu0 %v12355_v51  ;;  %v8789_v35 = vsub.s32 4, %v13661_v42  ;;  %v16043_v51 = vld [vmem:[%s16464_s9] sm:$0xff] }
 0x68e   : > { %8716 = vmatprep.subr.bf16.mxu1 %v12358_v41  ;;  %v8793_v41 = vsub.s32 5, %v13661_v42 }
 0x690   : > { %8352 = vmatpush1.bf16.msra.mxu0 %v12353_v63 }
 0x691   : > { %8717 = vmatpush1.bf16.msra.mxu1 %v12356_v45  ;;  %8475 = vmatprep.subr.bf16.mxu0 %v12361_v32 }
 0x693   : > { %8362 = vmatmul.mubr.bf16.vlgmr.msra.gmra.mrb[32].mxu0 %v14235_v5 }
 0x694   : > { %8727 = vmatmul.mubr.bf16.vlgmr.msra.gmra.mrb[176].mxu1 %v14235_v5  ;;  %10527 = vmatprep.mubr.msk.bf16.mxu0 %vm4014_vm1, %v14261_v48 }
 0x695   : > { %8476 = vmatpush1.bf16.msra.mxu0 %v12359_v1  ;;  %10547 = vmatprep.mubr.msk.bf16.mxu1 %vm4014_vm1, %v14261_v48 }
 0x696   : > { %8477 = vmatprep.subr.bf16.mxu0 %v12364_v62  ;;  %v12433_v62 = vld [vmem:[%s12746_s28 + $0x48] sm:$0xff] }
 0x699   : > { %8478 = vmatpush1.bf16.msra.mxu0 %v12362_v28  ;;  %v8971_v28 = vunpack.c.l.bf16 %v12433_v62 }
 0x69a   : > { %8479 = vmatprep.subr.bf16.mxu0 %v12367_v17 }
 0x69b   : > { %8372 = vmatmul.mubr.bf16.gmra.mrb[36].mxu0 %v14259_v4 }
 0x69c   : > { %8737 = vmatmul.mubr.bf16.gmra.mrb[180].mxu1 %v14259_v4  ;;  %10528 = vmatprep.mubr.msk.bf16.mxu0 %vm4014_vm1, %v14277_v57 }
 0x69d   : > { %8480 = vmatpush1.bf16.msra.mxu0 %v12365_v9  ;;  %10548 = vmatprep.mubr.msk.bf16.mxu1 %vm4014_vm1, %v14277_v57 }
 0x69e   : > { %8481 = vmatprep.subr.bf16.mxu0 %v12370_v16  ;;  %v8972_v16 = vunpack.c.h.bf16 %v12433_v62 }
 0x6a1   : > { %8482 = vmatpush1.bf16.msra.mxu0 %v12368_v43 }
 0x6a2   : > { %8483 = vmatprep.subr.bf16.mxu0 %v12373_v37 }
 0x6a3   : > { %8382 = vmatmul.mubr.bf16.gmra.mrb[40].mxu0 %v14275_v58 }
 0x6a4   : > { %8747 = vmatmul.mubr.bf16.gmra.mrb[184].mxu1 %v14275_v58  ;;  %10529 = vmatprep.mubr.msk.bf16.mxu0 %vm4014_vm1, %v14297_v60 }
 0x6a5   : > { %8484 = vmatpush1.bf16.msra.mxu0 %v12371_v22  ;;  %10549 = vmatprep.mubr.msk.bf16.mxu1 %vm4014_vm1, %v14297_v60 }
 0x6a6   : > { %8485 = vmatprep.subr.bf16.mxu0 %v12376_v18 }
 0x6a9   : > { %8486 = vmatpush1.bf16.msra.mxu0 %v12374_v40 }
 0x6aa   : > { %8487 = vmatprep.subr.bf16.mxu0 %v12379_v8 }
 0x6ab   : > { %8392 = vmatmul.mubr.bf16.gmra.mrb[44].mxu0 %v14295_v59 }
 0x6ac   : > { %8757 = vmatmul.mubr.bf16.gmra.mrb[188].mxu1 %v14295_v59  ;;  %10534 = vmatprep.mubr.msk.bf16.mxu0 %vm4014_vm1, %v14237_v31 }
 0x6ad   : > { %8488 = vmatpush1.bf16.msra.mxu0 %v12377_v50 }
 0x6ae   : > { %8489 = vmatprep.subr.bf16.mxu0 %v12382_v13 }
 0x6b1   : > { %8490 = vmatpush1.bf16.msra.mxu0 %v12380_v27  ;;  %v12434_v27 = vld [vmem:[%s12746_s28 + $0x80] sm:$0xff] }
 0x6b2   : > { %8491 = vmatprep.subr.bf16.mxu0 %v12385_v47  ;;  %v8985_v47 = vunpack.c.l.bf16 %v12434_v27 }
 0x6b5   : > { %8492 = vmatpush1.bf16.msra.mxu0 %v12383_v10 }
 0x6b6   : > { %8493 = vmatprep.subr.bf16.mxu0 %v12388_v3 }
 0x6b9   : > { %8494 = vmatpush1.bf16.msra.mxu0 %v12386_v15  ;;  %v8986_v15 = vunpack.c.h.bf16 %v12434_v27 }
 0x6ba   : > { %8495 = vmatprep.subr.bf16.mxu0 %v12391_v39 }
 0x6bd   : > { %8496 = vmatpush1.bf16.msra.mxu0 %v12389_v29 }
 0x6be   : > { %8497 = vmatprep.subr.bf16.mxu0 %v12394_v24  ;;  %v12435_v24 = vld [vmem:[%s12746_s28 + $0xb8] sm:$0xff] }
 0x6c1   : > { %8498 = vmatpush1.bf16.msra.mxu0 %v12392_v20  ;;  %v8999_v20 = vunpack.c.l.bf16 %v12435_v24 }
 0x6c2   : > { %8621 = vmatprep.subr.bf16.mxu0 %v12397_v11 }
 0x6c4   : > { %8508 = vmatmul.mubr.bf16.vlgmr.msra.gmra.mrb[48].mxu0 %v14235_v5 }
 0x6c5   : > { %10535 = vmatprep.mubr.msk.bf16.mxu0 %vm4014_vm1, %v14261_v48  ;;  %8622 = vmatpush1.bf16.msra.mxu0 %v12395_v38 }
 0x6c6   : > { %8623 = vmatprep.subr.bf16.mxu0 %v12400_v34 }
 0x6c9   : > { %8624 = vmatpush1.bf16.msra.mxu0 %v12398_v61 }
 0x6ca   : > { %8625 = vmatprep.subr.bf16.mxu0 %v12403_v36 }
 0x6cc   : > { %8518 = vmatmul.mubr.bf16.gmra.mrb[52].mxu0 %v14259_v4 }
 0x6cd   : > { %10536 = vmatprep.mubr.msk.bf16.mxu0 %vm4014_vm1, %v14277_v57  ;;  %8626 = vmatpush1.bf16.msra.mxu0 %v12401_v52 }
 0x6ce   : > { %8627 = vmatprep.subr.bf16.mxu0 %v12406_v0 }
 0x6d1   : > { %8628 = vmatpush1.bf16.msra.mxu0 %v12404_v14 }
 0x6d2   : > { %8629 = vmatprep.subr.bf16.mxu0 %v12409_v6 }
 0x6d4   : > { %8528 = vmatmul.mubr.bf16.gmra.mrb[56].mxu0 %v14275_v58 }
 0x6d5   : > { %10537 = vmatprep.mubr.msk.bf16.mxu0 %vm4014_vm1, %v14297_v60  ;;  %8630 = vmatpush1.bf16.msra.mxu0 %v12407_v54 }
 0x6d6   : > { %8631 = vmatprep.subr.bf16.mxu0 %v12412_v19 }
 0x6d9   : > { %8632 = vmatpush1.bf16.msra.mxu0 %v12410_v23 }
 0x6da   : > { %8633 = vmatprep.subr.bf16.mxu0 %v12415_v25  ;;  %v12436_v25 = vld [vmem:[%s12746_s28 + $0xf0] sm:$0xff] }
 0x6dc   : > { %8538 = vmatmul.mubr.bf16.gmra.mrb[60].mxu0 %v14295_v59 }
 0x6dd   : > { %8634 = vmatpush1.bf16.msra.mxu0 %v12413_v26  ;;  %10542 = vmatprep.mubr.msk.bf16.mxu0 %vm4014_vm1, %v14237_v31  ;;  %v12422_v31 = vld [vmem:[%s16462_s7 + $0x418] ss:$56 sps:$4 sm:$0xff]   ;;  %v9013_v26 = vunpack.c.l.bf16 %v12436_v25 }
 0x6de   : > { %8635 = vmatprep.subr.bf16.mxu0 %v12418_v44 }
 0x6e1   : > { %8636 = vmatpush1.bf16.msra.mxu0 %v12416_v7 }
 0x6e2   : > { %8637 = vmatprep.subr.bf16.mxu0 %v12421_v33  ;;  %v9014_v33 = vunpack.c.h.bf16 %v12436_v25 }
 0x6e5   : > { %8638 = vmatpush1.bf16.msra.mxu0 %v12419_v12 }
 0x6e6   : > { %8639 = vmatprep.subr.bf16.mxu0 %v12424_v55 }
 0x6e9   : > { %8640 = vmatpush1.bf16.msra.mxu0 %v12422_v31  ;;  %v12437_v31 = vld [vmem:[%s12746_s28 + $0x128] sm:$0xff] }
 0x6ea   : > { %8641 = vmatprep.subr.bf16.mxu0 %v12427_v46  ;;  %v9027_v46 = vunpack.c.l.bf16 %v12437_v31 }
 0x6ed   : > { %8642 = vmatpush1.bf16.msra.mxu0 %v12425_v56 }
 0x6ee   : > { %8643 = vmatprep.subr.bf16.mxu0 %v12430_v2 }
 0x6f1   : > { %8644 = vmatpush1.bf16.msra.mxu0 %v12428_v21  ;;  %v9028_v21 = vunpack.c.h.bf16 %v12437_v31 }
 0x6f4   : > { %8654 = vmatmul.mubr.bf16.vlgmr.msra.gmra.mrb[64].mxu0 %v14235_v5  ;;  %v16050_v5 = vrot.slane %v16043_v51, %v8789_v35 }
 0x6f5   : > { %10543 = vmatprep.mubr.msk.bf16.mxu0 %vm4014_vm1, %v14261_v48  ;;  %v12432_v48 = vld [vmem:[%s12746_s28 + $0x10] sm:$0xff] }
 0x6f6   : > { %v8958_v45 = vunpack.c.h.bf16 %v12432_v48 }
 0x6fc   : > { %8664 = vmatmul.mubr.bf16.gmra.mrb[68].mxu0 %v14259_v4  ;;  %v16055_v4 = vrot.slane %v16043_v51, %v8793_v41 }
 0x6fd   : > { %10544 = vmatprep.mubr.msk.bf16.mxu0 %vm4014_vm1, %v14277_v57  ;;  %v8957_v57 = vunpack.c.l.bf16 %v12432_v48 }
 0x704   : > { %8674 = vmatmul.mubr.bf16.gmra.mrb[72].mxu0 %v14275_v58 }
 0x705   : > { %10545 = vmatprep.mubr.msk.bf16.mxu0 %vm4014_vm1, %v14297_v60  ;;  %v8436_v63 = vpop.f32.mrb[144].mxu1 }
 0x706   : > { %v8845_v32 = vadd.f32 %v16050_v5, %v8436_v63  ;;  %v8438_v1 = vpop.f32.mrb[145].mxu1 }
 0x707   : > { %v8846_v17 = vadd.f32 %v16055_v4, %v8438_v1  ;;  %v8440_v9 = vpop.f32.mrb[146].mxu1 }
 0x708   : > { %v9069_v58 = vadd.f32 %v8957_v57, %v8845_v32  ;;  %v8859_v43 = vadd.f32 %v16050_v5, %v8440_v9  ;;  %v8442_v37 = vpop.f32.mrb[147].mxu1 }
 0x709   : > { %v9070_v22 = vadd.f32 %v8958_v45, %v8846_v17  ;;  %v8860_v60 = vadd.f32 %v16055_v4, %v8442_v37 }
 0x70a   : > { %v9181_v18 = vmax.f32 %v9069_v58, 0.0  ;;  %v9083_v40 = vadd.f32 %v8971_v28, %v8859_v43 }
 0x70b   : > { %v9182_v8 = vmax.f32 %v9070_v22, 0.0  ;;  %v9084_v50 = vadd.f32 %v8972_v16, %v8860_v60  ;;  %v12438_v16 = vld [vmem:[%s12746_s28 + $0x160] sm:$0xff] }
 0x70c   : > { %9293 = vst [vmem:[%s16068_s26 + $0x20] sm:$0xff] %v9181_v18  ;;  %v9195_v13 = vmax.f32 %v9083_v40, 0.0  ;;  %8684 = vmatmul.mubr.bf16.gmra.mrb[76].mxu0 %v14295_v59  ;;  %v9000_v59 = vunpack.c.h.bf16 %v12435_v24  ;;  %v9041_v58 = vunpack.c.l.bf16 %v12438_v16  ;;  %v9042_v22 = vunpack.c.h.bf16 %v12438_v16  ;;  %v12439_v40 = vld [vmem:[%s12746_s28 + $0x198] sm:$0xff] }
 0x70d   : > { %9294 = vst [vmem:[%s16068_s26 + $0x28] sm:$0xff] %v9182_v8  ;;  %v9196_v10 = vmax.f32 %v9084_v50, 0.0  ;;  %v8446_v3 = vpop.f32.mrb[148].mxu1  ;;  %v9055_v8 = vunpack.c.l.bf16 %v12439_v40  ;;  %v9056_v27 = vunpack.c.h.bf16 %v12439_v40 }
 0x70e   : > { %9307 = vst [vmem:[%s16068_s26 + $0x90] sm:$0xff] %v9195_v13  ;;  %v8873_v39 = vadd.f32 %v16050_v5, %v8446_v3  ;;  %v8448_v29 = vpop.f32.mrb[149].mxu1 }
 0x70f   : > { %9308 = vst [vmem:[%s16068_s26 + $0x98] sm:$0xff] %v9196_v10  ;;  %v8874_v11 = vadd.f32 %v16055_v4, %v8448_v29  ;;  %v8450_v38 = vpop.f32.mrb[150].mxu1 }
 0x710   : > { %v9097_v34 = vadd.f32 %v8985_v47, %v8873_v39  ;;  %v8887_v61 = vadd.f32 %v16050_v5, %v8450_v38  ;;  %v8452_v36 = vpop.f32.mrb[151].mxu1 }
 0x711   : > { %v9098_v52 = vadd.f32 %v8986_v15, %v8874_v11  ;;  %v8888_v0 = vadd.f32 %v16055_v4, %v8452_v36  ;;  %v12440_v36 = vld [vmem:[%s12746_s28] sm:$0xff] }
 0x712   : > { %v9209_v14 = vmax.f32 %v9097_v34, 0.0  ;;  %v9111_v6 = vadd.f32 %v8999_v20, %v8887_v61  ;;  %v16120_v61 = vrot.slane %v16043_v51, %v14211_v53 }
 0x713   : > { %v9210_v54 = vmax.f32 %v9098_v52, 0.0  ;;  %v9112_v19 = vadd.f32 %v9000_v59, %v8888_v0  ;;  %v8953_v52 = vunpack.c.l.bf16 %v12440_v36 }
 0x714   : > { %9321 = vst [vmem:[%s16068_s26 + $0x100] sm:$0xff] %v9209_v14  ;;  %v9223_v23 = vmax.f32 %v9111_v6, 0.0  ;;  %v12441_v6 = vld [vmem:[%s12746_s28 + $0x20] sm:$0xff] }
 0x715   : > { %9322 = vst [vmem:[%s16068_s26 + $0x108] sm:$0xff] %v9210_v54  ;;  %v9224_v44 = vmax.f32 %v9112_v19, 0.0  ;;  %v8456_v7 = vpop.f32.mrb[152].mxu1  ;;  %v8961_v54 = vunpack.c.l.bf16 %v12441_v6  ;;  %v8954_v19 = vunpack.c.h.bf16 %v12440_v36  ;;  %v12446_v36 = vld [vmem:[%s12746_s28 + $0xa8] sm:$0xff] }
 0x716   : > { %9335 = vst [vmem:[%s16068_s26 + $0x170] sm:$0xff] %v9223_v23  ;;  %v8901_v12 = vadd.f32 %v16050_v5, %v8456_v7  ;;  %v8458_v55 = vpop.f32.mrb[153].mxu1 }
 0x717   : > { %9336 = vst [vmem:[%s16068_s26 + $0x178] sm:$0xff] %v9224_v44  ;;  %v8902_v56 = vadd.f32 %v16055_v4, %v8458_v55  ;;  %v8460_v2 = vpop.f32.mrb[154].mxu1  ;;  %v12442_v44 = vld [vmem:[%s12746_s28 + $0x38] sm:$0xff] }
 0x718   : > { %v9125_v48 = vadd.f32 %v9013_v26, %v8901_v12  ;;  %v8915_v57 = vadd.f32 %v16050_v5, %v8460_v2  ;;  %v8462_v63 = vpop.f32.mrb[155].mxu1  ;;  %v8962_v26 = vunpack.c.h.bf16 %v12441_v6  ;;  %v8967_v7 = vunpack.c.l.bf16 %v12442_v44 }
 0x719   : > { %v9126_v45 = vadd.f32 %v9014_v33, %v8902_v56  ;;  %v8916_v32 = vadd.f32 %v16055_v4, %v8462_v63  ;;  %v8968_v56 = vunpack.c.h.bf16 %v12442_v44 }
 0x71a   : > { %v9237_v1 = vmax.f32 %v9125_v48, 0.0  ;;  %v9139_v62 = vadd.f32 %v9027_v46, %v8915_v57  ;;  %v12443_v46 = vld [vmem:[%s12746_s28 + $0x58] sm:$0xff] }
 0x71b   : > { %v9238_v28 = vmax.f32 %v9126_v45, 0.0  ;;  %v9140_v17 = vadd.f32 %v9028_v21, %v8916_v32  ;;  %v8976_v45 = vunpack.c.h.bf16 %v12443_v46 }
 0x71c   : > { %9349 = vst [vmem:[%s16068_s26 + $0x1e0] sm:$0xff] %v9237_v1  ;;  %v9251_v9 = vmax.f32 %v9139_v62, 0.0 }
 0x71d   : > { %9350 = vst [vmem:[%s16068_s26 + $0x1e8] sm:$0xff] %v9238_v28  ;;  %v9252_v43 = vmax.f32 %v9140_v17, 0.0  ;;  %v8466_v37 = vpop.f32.mrb[156].mxu1 }
 0x71e   : > { %9363 = vst [vmem:[%s16068_s26 + $0x250] sm:$0xff] %v9251_v9  ;;  %v8929_v60 = vadd.f32 %v16050_v5, %v8466_v37  ;;  %v8468_v18 = vpop.f32.mrb[157].mxu1 }
 0x71f   : > { %9364 = vst [vmem:[%s16068_s26 + $0x258] sm:$0xff] %v9252_v43  ;;  %v8930_v50 = vadd.f32 %v16055_v4, %v8468_v18  ;;  %v8470_v13 = vpop.f32.mrb[158].mxu1 }
 0x720   : > { %v9153_v47 = vadd.f32 %v9041_v58, %v8929_v60  ;;  %v8943_v10 = vadd.f32 %v16050_v5, %v8470_v13  ;;  %v8472_v3 = vpop.f32.mrb[159].mxu1  ;;  %v16108_v5 = vld [vmem:[%s16464_s9 + $0x8] sm:$0x3f]  ;;  %v12444_v13 = vld [vmem:[%s12746_s28 + $0x70] sm:$0xff] }
 0x721   : > { %v9154_v15 = vadd.f32 %v9042_v22, %v8930_v50  ;;  %v8944_v39 = vadd.f32 %v16055_v4, %v8472_v3  ;;  %v16112_v4 = vrot.slane %v16043_v51, %v14208_v30  ;;  %v16116_v34 = vrot.slane %v16108_v5, %v14208_v30 }
 0x722   : > { %v9265_v29 = vmax.f32 %v9153_v47, 0.0  ;;  %v9167_v24 = vadd.f32 %v9055_v8, %v8943_v10  ;;  %v16125_v0 = vrot.slane %v16108_v5, %v14211_v53  ;;  %v8975_v53 = vunpack.c.l.bf16 %v12443_v46 }
 0x723   : > { %v9266_v20 = vmax.f32 %v9154_v15, 0.0  ;;  %v9168_v11 = vadd.f32 %v9056_v27, %v8944_v39  ;;  %v8981_v27 = vunpack.c.l.bf16 %v12444_v13  ;;  %v12445_v15 = vld [vmem:[%s12746_s28 + $0x90] sm:$0xff] }
 0x724   : > { %9377 = vst [vmem:[%s16068_s26 + $0x2c0] sm:$0xff] %v9265_v29  ;;  %v9279_v38 = vmax.f32 %v9167_v24, 0.0  ;;  %v8989_v39 = vunpack.c.l.bf16 %v12445_v15  ;;  %v8982_v29 = vunpack.c.h.bf16 %v12444_v13 }
 0x725   : > { %9378 = vst [vmem:[%s16068_s26 + $0x2c8] sm:$0xff] %v9266_v20  ;;  %v9280_v59 = vmax.f32 %v9168_v11, 0.0 }
 0x726   : > { %9391 = vst [vmem:[%s16068_s26 + $0x330] sm:$0xff] %v9279_v38 }
 0x727   : > { %9392 = vst [vmem:[%s16068_s26 + $0x338] sm:$0xff] %v9280_v59  ;;  %v8990_v59 = vunpack.c.h.bf16 %v12445_v15 }
 0x735   : > { %v8290_v14 = vpop.f32.mrb[16].mxu0 }
 0x736   : > { %v8841_v23 = vadd.f32 %v16112_v4, %v8290_v14  ;;  %v8582_v25 = vpop.f32.mrb[160].mxu1  ;;  %v8292_v30 = vpop.f32.mrb[17].mxu0 }
 0x737   : > { %v8849_v33 = vadd.f32 %v16116_v34, %v8582_v25  ;;  %v8842_v12 = vadd.f32 %v16120_v61, %v8292_v30  ;;  %v8584_v55 = vpop.f32.mrb[161].mxu1  ;;  %v8294_v31 = vpop.f32.mrb[18].mxu0  ;;  %v8996_v30 = vunpack.c.h.bf16 %v12446_v36 }
 0x738   : > { %v9065_v2 = vadd.f32 %v8953_v52, %v8841_v23  ;;  %v8850_v21 = vadd.f32 %v16125_v0, %v8584_v55  ;;  %v8855_v48 = vadd.f32 %v16112_v4, %v8294_v31  ;;  %v8586_v57 = vpop.f32.mrb[162].mxu1  ;;  %v8296_v63 = vpop.f32.mrb[19].mxu0  ;;  %v8995_v52 = vunpack.c.l.bf16 %v12446_v36  ;;  %v12447_v23 = vld [vmem:[%s12746_s28 + $0xc8] sm:$0xff] }
 0x739   : > { %v9073_v32 = vadd.f32 %v8961_v54, %v8849_v33  ;;  %v9066_v1 = vadd.f32 %v8954_v19, %v8842_v12  ;;  %v8863_v62 = vadd.f32 %v16116_v34, %v8586_v57  ;;  %v8856_v28 = vadd.f32 %v16120_v61, %v8296_v63  ;;  %v8588_v17 = vpop.f32.mrb[163].mxu1 }
 0x73a   : > { %v9177_v9 = vmax.f32 %v9065_v2, 0.0  ;;  %v9074_v16 = vadd.f32 %v8962_v26, %v8850_v21  ;;  %v9079_v58 = vadd.f32 %v8967_v7, %v8855_v48  ;;  %v8864_v43 = vadd.f32 %v16125_v0, %v8588_v17 }
 0x73b   : > { %v9185_v37 = vmax.f32 %v9073_v32, 0.0  ;;  %v9178_v22 = vmax.f32 %v9066_v1, 0.0  ;;  %v9087_v60 = vadd.f32 %v8975_v53, %v8863_v62  ;;  %v9080_v18 = vadd.f32 %v8968_v56, %v8856_v28 }
 0x73c   : > { %9289 = vst [vmem:[%s16068_s26] sm:$0xff] %v9177_v9  ;;  %v9186_v40 = vmax.f32 %v9074_v16, 0.0  ;;  %v9191_v8 = vmax.f32 %v9079_v58, 0.0  ;;  %v9088_v50 = vadd.f32 %v8976_v45, %v8864_v43  ;;  %v9003_v25 = vunpack.c.l.bf16 %v12447_v23  ;;  %v12448_v16 = vld [vmem:[%s12746_s28 + $0xe0] sm:$0xff] }
 0x73d   : > { %9297 = vst [vmem:[%s16068_s26 + $0x40] sm:$0xff] %v9185_v37  ;;  %9290 = vst [vmem:[%s16068_s26 + $0x8] sm:$0xff] %v9178_v22  ;;  %v9199_v47 = vmax.f32 %v9087_v60, 0.0  ;;  %v9192_v10 = vmax.f32 %v9080_v18, 0.0  ;;  %v8300_v3 = vpop.f32.mrb[20].mxu0  ;;  %v9004_v55 = vunpack.c.h.bf16 %v12447_v23  ;;  %v9009_v58 = vunpack.c.l.bf16 %v12448_v16  ;;  %v12449_v60 = vld [vmem:[%s12746_s28 + $0x100] sm:$0xff] }
 0x73e   : > { %9298 = vst [vmem:[%s16068_s26 + $0x48] sm:$0xff] %v9186_v40  ;;  %9303 = vst [vmem:[%s16068_s26 + $0x70] sm:$0xff] %v9191_v8  ;;  %v9200_v24 = vmax.f32 %v9088_v50, 0.0  ;;  %v8869_v20 = vadd.f32 %v16112_v4, %v8300_v3  ;;  %v8592_v11 = vpop.f32.mrb[164].mxu1  ;;  %v8302_v38 = vpop.f32.mrb[21].mxu0  ;;  %v9017_v18 = vunpack.c.l.bf16 %v12449_v60  ;;  %v9010_v40 = vunpack.c.h.bf16 %v12448_v16 }
 0x73f   : > { %9311 = vst [vmem:[%s16068_s26 + $0xb0] sm:$0xff] %v9199_v47  ;;  %9304 = vst [vmem:[%s16068_s26 + $0x78] sm:$0xff] %v9192_v10  ;;  %v8877_v14 = vadd.f32 %v16116_v34, %v8592_v11  ;;  %v8870_v6 = vadd.f32 %v16120_v61, %v8302_v38  ;;  %v8594_v54 = vpop.f32.mrb[165].mxu1  ;;  %v8304_v19 = vpop.f32.mrb[22].mxu0  ;;  %v9018_v47 = vunpack.c.h.bf16 %v12449_v60  ;;  %v12450_v10 = vld [vmem:[%s12746_s28 + $0x118] sm:$0xff] }
 0x740   : > { %9312 = vst [vmem:[%s16068_s26 + $0xb8] sm:$0xff] %v9200_v24  ;;  %v9093_v26 = vadd.f32 %v8981_v27, %v8869_v20  ;;  %v8878_v44 = vadd.f32 %v16125_v0, %v8594_v54  ;;  %v8883_v7 = vadd.f32 %v16112_v4, %v8304_v19  ;;  %v8596_v33 = vpop.f32.mrb[166].mxu1  ;;  %v8306_v12 = vpop.f32.mrb[23].mxu0  ;;  %v9023_v3 = vunpack.c.l.bf16 %v12450_v10  ;;  %v12451_v20 = vld [vmem:[%s12746_s28 + $0x138] sm:$0xff] }
 0x741   : > { %v9101_v31 = vadd.f32 %v8989_v39, %v8877_v14  ;;  %v9094_v46 = vadd.f32 %v8982_v29, %v8870_v6  ;;  %v8891_v53 = vadd.f32 %v16116_v34, %v8596_v33  ;;  %v8884_v56 = vadd.f32 %v16120_v61, %v8306_v12  ;;  %v8598_v2 = vpop.f32.mrb[167].mxu1 }
 0x742   : > { %v9205_v21 = vmax.f32 %v9093_v26, 0.0  ;;  %v9102_v48 = vadd.f32 %v8990_v59, %v8878_v44  ;;  %v9107_v57 = vadd.f32 %v8995_v52, %v8883_v7  ;;  %v8892_v63 = vadd.f32 %v16125_v0, %v8598_v2 }
 0x743   : > { %v9213_v45 = vmax.f32 %v9101_v31, 0.0  ;;  %v9206_v32 = vmax.f32 %v9094_v46, 0.0  ;;  %v9115_v1 = vadd.f32 %v9003_v25, %v8891_v53  ;;  %v9108_v62 = vadd.f32 %v8996_v30, %v8884_v56 }
 0x744   : > { %9317 = vst [vmem:[%s16068_s26 + $0xe0] sm:$0xff] %v9205_v21  ;;  %v9214_v28 = vmax.f32 %v9102_v48, 0.0  ;;  %v9219_v17 = vmax.f32 %v9107_v57, 0.0  ;;  %v9116_v9 = vadd.f32 %v9004_v55, %v8892_v63  ;;  %v9031_v11 = vunpack.c.l.bf16 %v12451_v20  ;;  %v12452_v48 = vld [vmem:[%s12746_s28 + $0x150] sm:$0xff] }
 0x745   : > { %9325 = vst [vmem:[%s16068_s26 + $0x120] sm:$0xff] %v9213_v45  ;;  %9318 = vst [vmem:[%s16068_s26 + $0xe8] sm:$0xff] %v9206_v32  ;;  %v9227_v43 = vmax.f32 %v9115_v1, 0.0  ;;  %v9220_v37 = vmax.f32 %v9108_v62, 0.0  ;;  %v8310_v22 = vpop.f32.mrb[24].mxu0  ;;  %v9024_v38 = vunpack.c.h.bf16 %v12450_v10  ;;  %v9032_v54 = vunpack.c.h.bf16 %v12451_v20  ;;  %v12453_v1 = vld [vmem:[%s12746_s28 + $0x170] sm:$0xff] }
 0x746   : > { %9326 = vst [vmem:[%s16068_s26 + $0x128] sm:$0xff] %v9214_v28  ;;  %9331 = vst [vmem:[%s16068_s26 + $0x150] sm:$0xff] %v9219_v17  ;;  %v9228_v8 = vmax.f32 %v9116_v9, 0.0  ;;  %v8897_v50 = vadd.f32 %v16112_v4, %v8310_v22  ;;  %v8602_v13 = vpop.f32.mrb[168].mxu1  ;;  %v8312_v27 = vpop.f32.mrb[25].mxu0  ;;  %v9037_v57 = vunpack.c.l.bf16 %v12452_v48  ;;  %v9045_v62 = vunpack.c.l.bf16 %v12453_v1 }
 0x747   : > { %9339 = vst [vmem:[%s16068_s26 + $0x190] sm:$0xff] %v9227_v43  ;;  %9332 = vst [vmem:[%s16068_s26 + $0x158] sm:$0xff] %v9220_v37  ;;  %v8905_v15 = vadd.f32 %v16116_v34, %v8602_v13  ;;  %v8898_v39 = vadd.f32 %v16120_v61, %v8312_v27  ;;  %v8604_v29 = vpop.f32.mrb[169].mxu1  ;;  %v8314_v24 = vpop.f32.mrb[26].mxu0  ;;  %v9038_v28 = vunpack.c.h.bf16 %v12452_v48  ;;  %v9046_v43 = vunpack.c.h.bf16 %v12453_v1  ;;  %v12454_v37 = vld [vmem:[%s12746_s28 + $0x188] sm:$0xff] }
 0x748   : > { %9340 = vst [vmem:[%s16068_s26 + $0x198] sm:$0xff] %v9228_v8  ;;  %v9121_v59 = vadd.f32 %v9009_v58, %v8897_v50  ;;  %v8906_v36 = vadd.f32 %v16125_v0, %v8604_v29  ;;  %v8911_v52 = vadd.f32 %v16112_v4, %v8314_v24  ;;  %v8606_v14 = vpop.f32.mrb[170].mxu1  ;;  %v8316_v6 = vpop.f32.mrb[27].mxu0  ;;  %v9051_v22 = vunpack.c.l.bf16 %v12454_v37  ;;  %v12455_v50 = vld [vmem:[%s12746_s28 + $0x1a8] sm:$0xff] }
 0x749   : > { %v9129_v19 = vadd.f32 %v9017_v18, %v8905_v15  ;;  %v9122_v23 = vadd.f32 %v9010_v40, %v8898_v39  ;;  %v8919_v25 = vadd.f32 %v16116_v34, %v8606_v14  ;;  %v8912_v30 = vadd.f32 %v16120_v61, %v8316_v6  ;;  %v8608_v26 = vpop.f32.mrb[171].mxu1 }
 0x74a   : > { %v9233_v44 = vmax.f32 %v9121_v59, 0.0  ;;  %v9130_v7 = vadd.f32 %v9018_v47, %v8906_v36  ;;  %v9135_v33 = vadd.f32 %v9023_v3, %v8911_v52  ;;  %v8920_v12 = vadd.f32 %v16125_v0, %v8608_v26 }
 0x74b   : > { %v9241_v55 = vmax.f32 %v9129_v19, 0.0  ;;  %v9234_v31 = vmax.f32 %v9122_v23, 0.0  ;;  %v9143_v46 = vadd.f32 %v9031_v11, %v8919_v25  ;;  %v9136_v53 = vadd.f32 %v9024_v38, %v8912_v30 }
 0x74c   : > { %9345 = vst [vmem:[%s16068_s26 + $0x1c0] sm:$0xff] %v9233_v44  ;;  %v9242_v56 = vmax.f32 %v9130_v7, 0.0  ;;  %v9247_v2 = vmax.f32 %v9135_v33, 0.0  ;;  %v9144_v21 = vadd.f32 %v9032_v54, %v8920_v12  ;;  %v9059_v13 = vunpack.c.l.bf16 %v12455_v50 }
 0x74d   : > { %9353 = vst [vmem:[%s16068_s26 + $0x200] sm:$0xff] %v9241_v55  ;;  %9346 = vst [vmem:[%s16068_s26 + $0x1c8] sm:$0xff] %v9234_v31  ;;  %v9255_v63 = vmax.f32 %v9143_v46, 0.0  ;;  %v9248_v45 = vmax.f32 %v9136_v53, 0.0  ;;  %v8320_v32 = vpop.f32.mrb[28].mxu0  ;;  %v9052_v27 = vunpack.c.h.bf16 %v12454_v37  ;;  %v9060_v29 = vunpack.c.h.bf16 %v12455_v50  ;;  %v12456_v55 = vld [vmem:[%s12746_s28 + $0x8] sm:$0xff] }
 0x74e   : > { %9354 = vst [vmem:[%s16068_s26 + $0x208] sm:$0xff] %v9242_v56  ;;  %9359 = vst [vmem:[%s16068_s26 + $0x230] sm:$0xff] %v9247_v2  ;;  %v9256_v17 = vmax.f32 %v9144_v21, 0.0  ;;  %v8925_v9 = vadd.f32 %v16112_v4, %v8320_v32  ;;  %v8612_v16 = vpop.f32.mrb[172].mxu1  ;;  %v8322_v58 = vpop.f32.mrb[29].mxu0  ;;  %v8785_v44 = vsub.s32 3, %v13661_v42  ;;  %v16209_v7 = vrot.slane %v16043_v51, %v13677_v49 }
 0x74f   : > { %9367 = vst [vmem:[%s16068_s26 + $0x270] sm:$0xff] %v9255_v63  ;;  %9360 = vst [vmem:[%s16068_s26 + $0x238] sm:$0xff] %v9248_v45  ;;  %v8933_v60 = vadd.f32 %v16116_v34, %v8612_v16  ;;  %v8926_v18 = vadd.f32 %v16120_v61, %v8322_v58  ;;  %v8614_v40 = vpop.f32.mrb[173].mxu1  ;;  %v8324_v8 = vpop.f32.mrb[30].mxu0  ;;  %v16214_v33 = vrot.slane %v16108_v5, %v8789_v35  ;;  %v8955_v31 = vunpack.c.l.bf16 %v12456_v55  ;;  %v12457_v56 = vld [vmem:[%s12746_s28 + $0x30] sm:$0xff]  ;;  %v12458_v45 = vld [vmem:[%s12746_s28 + $0x40] sm:$0xff] }
 0x750   : > { %9368 = vst [vmem:[%s16068_s26 + $0x278] sm:$0xff] %v9256_v17  ;;  %v9149_v47 = vadd.f32 %v9037_v57, %v8925_v9  ;;  %v8934_v10 = vadd.f32 %v16125_v0, %v8614_v40  ;;  %v8939_v3 = vadd.f32 %v16112_v4, %v8324_v8  ;;  %v8616_v15 = vpop.f32.mrb[174].mxu1  ;;  %v8326_v39 = vpop.f32.mrb[31].mxu0  ;;  %v16219_v12 = vrot.slane %v16043_v51, %v8785_v44  ;;  %v12459_v9 = vld [vmem:[%s12746_s28 + $0x68] sm:$0xff] }
 0x751   : > { %v9157_v24 = vadd.f32 %v9045_v62, %v8933_v60  ;;  %v9150_v20 = vadd.f32 %v9038_v28, %v8926_v18  ;;  %v8947_v11 = vadd.f32 %v16116_v34, %v8616_v15  ;;  %v8940_v38 = vadd.f32 %v16120_v61, %v8326_v39  ;;  %v8618_v59 = vpop.f32.mrb[175].mxu1 }
 0x752   : > { %v9261_v36 = vmax.f32 %v9149_v47, 0.0  ;;  %v9158_v52 = vadd.f32 %v9046_v43, %v8934_v10  ;;  %v9163_v14 = vadd.f32 %v9051_v22, %v8939_v3  ;;  %v8948_v4 = vadd.f32 %v16125_v0, %v8618_v59 }
 0x753   : > { %v9269_v6 = vmax.f32 %v9157_v24, 0.0  ;;  %v9262_v54 = vmax.f32 %v9150_v20, 0.0  ;;  %v9171_v19 = vadd.f32 %v9059_v13, %v8947_v11  ;;  %v9164_v23 = vadd.f32 %v9052_v27, %v8940_v38 }
 0x754   : > { %9373 = vst [vmem:[%s16068_s26 + $0x2a0] sm:$0xff] %v9261_v36  ;;  %v9270_v34 = vmax.f32 %v9158_v52, 0.0  ;;  %v9275_v25 = vmax.f32 %v9163_v14, 0.0  ;;  %v9172_v61 = vadd.f32 %v9060_v29, %v8948_v4  ;;  %v16225_v46 = vrot.slane %v16108_v5, %v8793_v41  ;;  %v12460_v36 = vld [vmem:[%s12746_s28 + $0x78] sm:$0xff] }
 0x755   : > { %9381 = vst [vmem:[%s16068_s26 + $0x2e0] sm:$0xff] %v9269_v6  ;;  %9374 = vst [vmem:[%s16068_s26 + $0x2a8] sm:$0xff] %v9262_v54  ;;  %v9283_v30 = vmax.f32 %v9171_v19, 0.0  ;;  %v9276_v26 = vmax.f32 %v9164_v23, 0.0  ;;  %v8965_v2 = vunpack.c.l.bf16 %v12457_v56  ;;  %v8956_v21 = vunpack.c.h.bf16 %v12456_v55  ;;  %v12461_v54 = vld [vmem:[%s12746_s28 + $0xa0] sm:$0xff] }
 0x756   : > { %9382 = vst [vmem:[%s16068_s26 + $0x2e8] sm:$0xff] %v9270_v34  ;;  %9387 = vst [vmem:[%s16068_s26 + $0x310] sm:$0xff] %v9275_v25  ;;  %v9284_v0 = vmax.f32 %v9172_v61, 0.0  ;;  %v8966_v63 = vunpack.c.h.bf16 %v12457_v56  ;;  %v8969_v32 = vunpack.c.l.bf16 %v12458_v45  ;;  %v8979_v41 = vunpack.c.l.bf16 %v12459_v9 }
 0x757   : > { %9395 = vst [vmem:[%s16068_s26 + $0x350] sm:$0xff] %v9283_v30  ;;  %9388 = vst [vmem:[%s16068_s26 + $0x318] sm:$0xff] %v9276_v26  ;;  %v8970_v16 = vunpack.c.h.bf16 %v12458_v45  ;;  %v8980_v18 = vunpack.c.h.bf16 %v12459_v9  ;;  %v8983_v52 = vunpack.c.l.bf16 %v12460_v36  ;;  %v8993_v19 = vunpack.c.l.bf16 %v12461_v54 }
 0x758   : > { %9396 = vst [vmem:[%s16068_s26 + $0x358] sm:$0xff] %v9284_v0  ;;  %v8984_v23 = vunpack.c.h.bf16 %v12460_v36  ;;  %v8994_v26 = vunpack.c.h.bf16 %v12461_v54  ;;  %v12462_v0 = vld [vmem:[%s12746_s28 + $0xb0] sm:$0xff] }
 0x759   : > { %v8997_v55 = vunpack.c.l.bf16 %v12462_v0 }
 0x766   : > { %v8363_v53 = vpop.f32.mrb[32].mxu0 }
 0x767   : > { %v8843_v35 = vadd.f32 %v16209_v7, %v8363_v53  ;;  %v8728_v48 = vpop.f32.mrb[176].mxu1  ;;  %v8365_v57 = vpop.f32.mrb[33].mxu0 }
 0x768   : > { %v8853_v1 = vadd.f32 %v16214_v33, %v8728_v48  ;;  %v8844_v62 = vadd.f32 %v16219_v12, %v8365_v57  ;;  %v8730_v28 = vpop.f32.mrb[177].mxu1  ;;  %v8367_v17 = vpop.f32.mrb[34].mxu0  ;;  %v8998_v48 = vunpack.c.h.bf16 %v12462_v0 }
 0x769   : > { %v9067_v58 = vadd.f32 %v8955_v31, %v8843_v35  ;;  %v8854_v43 = vadd.f32 %v16225_v46, %v8730_v28  ;;  %v8857_v37 = vadd.f32 %v16209_v7, %v8367_v17  ;;  %v8732_v22 = vpop.f32.mrb[178].mxu1  ;;  %v8369_v60 = vpop.f32.mrb[35].mxu0 }
 0x76a   : > { %v9077_v40 = vadd.f32 %v8965_v2, %v8853_v1  ;;  %v9068_v8 = vadd.f32 %v8956_v21, %v8844_v62  ;;  %v8867_v50 = vadd.f32 %v16214_v33, %v8732_v22  ;;  %v8858_v13 = vadd.f32 %v16219_v12, %v8369_v60  ;;  %v8734_v27 = vpop.f32.mrb[179].mxu1  ;;  %v12463_v21 = vld [vmem:[%s12746_s28 + $0xd8] sm:$0xff] }
 0x76b   : > { %v9179_v47 = vmax.f32 %v9067_v58, 0.0  ;;  %v9078_v10 = vadd.f32 %v8966_v63, %v8854_v43  ;;  %v9081_v3 = vadd.f32 %v8969_v32, %v8857_v37  ;;  %v8868_v15 = vadd.f32 %v16225_v46, %v8734_v27 }
 0x76c   : > { %v9189_v39 = vmax.f32 %v9077_v40, 0.0  ;;  %v9180_v29 = vmax.f32 %v9068_v8, 0.0  ;;  %v9091_v24 = vadd.f32 %v8979_v41, %v8867_v50  ;;  %v9082_v20 = vadd.f32 %v8970_v16, %v8858_v13 }
 0x76d   : > { %9291 = vst [vmem:[%s16068_s26 + $0x10] sm:$0xff] %v9179_v47  ;;  %v9190_v11 = vmax.f32 %v9078_v10, 0.0  ;;  %v9193_v38 = vmax.f32 %v9081_v3, 0.0  ;;  %v9092_v59 = vadd.f32 %v8980_v18, %v8868_v15  ;;  %v9007_v35 = vunpack.c.l.bf16 %v12463_v21  ;;  %v12464_v47 = vld [vmem:[%s12746_s28 + $0xe8] sm:$0xff] }
 0x76e   : > { %9301 = vst [vmem:[%s16068_s26 + $0x60] sm:$0xff] %v9189_v39  ;;  %9292 = vst [vmem:[%s16068_s26 + $0x18] sm:$0xff] %v9180_v29  ;;  %v9203_v14 = vmax.f32 %v9091_v24, 0.0  ;;  %v9194_v4 = vmax.f32 %v9082_v20, 0.0  ;;  %v8373_v6 = vpop.f32.mrb[36].mxu0  ;;  %v9008_v62 = vunpack.c.h.bf16 %v12463_v21  ;;  %v9011_v10 = vunpack.c.l.bf16 %v12464_v47  ;;  %v12465_v29 = vld [vmem:[%s12746_s28 + $0x110] sm:$0xff] }
 0x76f   : > { %9302 = vst [vmem:[%s16068_s26 + $0x68] sm:$0xff] %v9190_v11  ;;  %9305 = vst [vmem:[%s16068_s26 + $0x80] sm:$0xff] %v9193_v38  ;;  %v9204_v34 = vmax.f32 %v9092_v59, 0.0  ;;  %v8871_v25 = vadd.f32 %v16209_v7, %v8373_v6  ;;  %v8738_v61 = vpop.f32.mrb[180].mxu1  ;;  %v8375_v30 = vpop.f32.mrb[37].mxu0  ;;  %v9021_v24 = vunpack.c.l.bf16 %v12465_v29  ;;  %v9012_v20 = vunpack.c.h.bf16 %v12464_v47 }
 0x770   : > { %9315 = vst [vmem:[%s16068_s26 + $0xd0] sm:$0xff] %v9203_v14  ;;  %9306 = vst [vmem:[%s16068_s26 + $0x88] sm:$0xff] %v9194_v4  ;;  %v8881_v31 = vadd.f32 %v16214_v33, %v8738_v61  ;;  %v8872_v53 = vadd.f32 %v16219_v12, %v8375_v30  ;;  %v8740_v56 = vpop.f32.mrb[181].mxu1  ;;  %v8377_v2 = vpop.f32.mrb[38].mxu0  ;;  %v12466_v14 = vld [vmem:[%s12746_s28 + $0x120] sm:$0xff] }
 0x771   : > { %9316 = vst [vmem:[%s16068_s26 + $0xd8] sm:$0xff] %v9204_v34  ;;  %v9095_v57 = vadd.f32 %v8983_v52, %v8871_v25  ;;  %v8882_v63 = vadd.f32 %v16225_v46, %v8740_v56  ;;  %v8885_v45 = vadd.f32 %v16209_v7, %v8377_v2  ;;  %v8742_v32 = vpop.f32.mrb[182].mxu1  ;;  %v8379_v1 = vpop.f32.mrb[39].mxu0  ;;  %v9022_v52 = vunpack.c.h.bf16 %v12465_v29  ;;  %v12467_v34 = vld [vmem:[%s12746_s28 + $0x148] sm:$0xff] }
 0x772   : > { %v9105_v28 = vadd.f32 %v8993_v19, %v8881_v31  ;;  %v9096_v17 = vadd.f32 %v8984_v23, %v8872_v53  ;;  %v8895_v9 = vadd.f32 %v16214_v33, %v8742_v32  ;;  %v8886_v41 = vadd.f32 %v16219_v12, %v8379_v1  ;;  %v8744_v16 = vpop.f32.mrb[183].mxu1 }
 0x773   : > { %v9207_v58 = vmax.f32 %v9095_v57, 0.0  ;;  %v9106_v43 = vadd.f32 %v8994_v26, %v8882_v63  ;;  %v9109_v37 = vadd.f32 %v8997_v55, %v8885_v45  ;;  %v8896_v22 = vadd.f32 %v16225_v46, %v8744_v16 }
 0x774   : > { %v9217_v60 = vmax.f32 %v9105_v28, 0.0  ;;  %v9208_v18 = vmax.f32 %v9096_v17, 0.0  ;;  %v9119_v40 = vadd.f32 %v9007_v35, %v8895_v9  ;;  %v9110_v8 = vadd.f32 %v8998_v48, %v8886_v41 }
 0x775   : > { %9319 = vst [vmem:[%s16068_s26 + $0xf0] sm:$0xff] %v9207_v58  ;;  %v9218_v50 = vmax.f32 %v9106_v43, 0.0  ;;  %v9221_v13 = vmax.f32 %v9109_v37, 0.0  ;;  %v9120_v27 = vadd.f32 %v9008_v62, %v8896_v22  ;;  %v9025_v4 = vunpack.c.l.bf16 %v12466_v14  ;;  %v12468_v58 = vld [vmem:[%s12746_s28 + $0x158] sm:$0xff] }
 0x776   : > { %9329 = vst [vmem:[%s16068_s26 + $0x140] sm:$0xff] %v9217_v60  ;;  %9320 = vst [vmem:[%s16068_s26 + $0xf8] sm:$0xff] %v9208_v18  ;;  %v9231_v3 = vmax.f32 %v9119_v40, 0.0  ;;  %v9222_v15 = vmax.f32 %v9110_v8, 0.0  ;;  %v8383_v39 = vpop.f32.mrb[40].mxu0  ;;  %v9035_v25 = vunpack.c.l.bf16 %v12467_v34  ;;  %v9026_v61 = vunpack.c.h.bf16 %v12466_v14  ;;  %v12469_v18 = vld [vmem:[%s12746_s28 + $0x180] sm:$0xff] }
 0x777   : > { %9330 = vst [vmem:[%s16068_s26 + $0x148] sm:$0xff] %v9218_v50  ;;  %9333 = vst [vmem:[%s16068_s26 + $0x160] sm:$0xff] %v9221_v13  ;;  %v9232_v11 = vmax.f32 %v9120_v27, 0.0  ;;  %v8899_v38 = vadd.f32 %v16209_v7, %v8383_v39  ;;  %v8748_v59 = vpop.f32.mrb[184].mxu1  ;;  %v8385_v36 = vpop.f32.mrb[41].mxu0  ;;  %v9036_v53 = vunpack.c.h.bf16 %v12467_v34  ;;  %v9039_v43 = vunpack.c.l.bf16 %v12468_v58 }
 0x778   : > { %9343 = vst [vmem:[%s16068_s26 + $0x1b0] sm:$0xff] %v9231_v3  ;;  %9334 = vst [vmem:[%s16068_s26 + $0x168] sm:$0xff] %v9222_v15  ;;  %v8909_v6 = vadd.f32 %v16214_v33, %v8748_v59  ;;  %v8900_v54 = vadd.f32 %v16219_v12, %v8385_v36  ;;  %v8750_v19 = vpop.f32.mrb[185].mxu1  ;;  %v8387_v23 = vpop.f32.mrb[42].mxu0  ;;  %v9049_v40 = vunpack.c.l.bf16 %v12469_v18  ;;  %v9040_v8 = vunpack.c.h.bf16 %v12468_v58  ;;  %v12470_v3 = vld [vmem:[%s12746_s28 + $0x190] sm:$0xff] }
 0x779   : > { %9344 = vst [vmem:[%s16068_s26 + $0x1b8] sm:$0xff] %v9232_v11  ;;  %v9123_v30 = vadd.f32 %v9011_v10, %v8899_v38  ;;  %v8910_v26 = vadd.f32 %v16225_v46, %v8750_v19  ;;  %v8913_v0 = vadd.f32 %v16209_v7, %v8387_v23  ;;  %v8752_v55 = vpop.f32.mrb[186].mxu1  ;;  %v8389_v31 = vpop.f32.mrb[43].mxu0  ;;  %v9050_v10 = vunpack.c.h.bf16 %v12469_v18  ;;  %v12471_v11 = vld [vmem:[%s12746_s28 + $0x1b8] sm:$0xff] }
 0x77a   : > { %v9133_v56 = vadd.f32 %v9021_v24, %v8909_v6  ;;  %v9124_v2 = vadd.f32 %v9012_v20, %v8900_v54  ;;  %v8923_v21 = vadd.f32 %v16214_v33, %v8752_v55  ;;  %v8914_v35 = vadd.f32 %v16219_v12, %v8389_v31  ;;  %v8754_v48 = vpop.f32.mrb[187].mxu1 }
 0x77b   : > { %v9235_v57 = vmax.f32 %v9123_v30, 0.0  ;;  %v9134_v63 = vadd.f32 %v9022_v52, %v8910_v26  ;;  %v9137_v45 = vadd.f32 %v9025_v4, %v8913_v0  ;;  %v8924_v32 = vadd.f32 %v16225_v46, %v8754_v48 }
 0x77c   : > { %v9245_v1 = vmax.f32 %v9133_v56, 0.0  ;;  %v9236_v62 = vmax.f32 %v9124_v2, 0.0  ;;  %v9147_v28 = vadd.f32 %v9035_v25, %v8923_v21  ;;  %v9138_v17 = vadd.f32 %v9026_v61, %v8914_v35 }
 0x77d   : > { %9347 = vst [vmem:[%s16068_s26 + $0x1d0] sm:$0xff] %v9235_v57  ;;  %v9246_v9 = vmax.f32 %v9134_v63, 0.0  ;;  %v9249_v41 = vmax.f32 %v9137_v45, 0.0  ;;  %v9148_v16 = vadd.f32 %v9036_v53, %v8924_v32  ;;  %v9053_v15 = vunpack.c.l.bf16 %v12470_v3  ;;  %v12472_v32 = vld [vmem:[%s12746_s28 + $0x18] sm:$0xff] }
 0x77e   : > { %9357 = vst [vmem:[%s16068_s26 + $0x220] sm:$0xff] %v9245_v1  ;;  %9348 = vst [vmem:[%s16068_s26 + $0x1d8] sm:$0xff] %v9236_v62  ;;  %v9259_v37 = vmax.f32 %v9147_v28, 0.0  ;;  %v9250_v22 = vmax.f32 %v9138_v17, 0.0  ;;  %v8393_v60 = vpop.f32.mrb[44].mxu0  ;;  %v9063_v38 = vunpack.c.l.bf16 %v12471_v11  ;;  %v9054_v59 = vunpack.c.h.bf16 %v12470_v3 }
 0x77f   : > { %9358 = vst [vmem:[%s16068_s26 + $0x228] sm:$0xff] %v9246_v9  ;;  %9361 = vst [vmem:[%s16068_s26 + $0x240] sm:$0xff] %v9249_v41  ;;  %v9260_v50 = vmax.f32 %v9148_v16, 0.0  ;;  %v8927_v13 = vadd.f32 %v16209_v7, %v8393_v60  ;;  %v8758_v27 = vpop.f32.mrb[188].mxu1  ;;  %v8395_v47 = vpop.f32.mrb[45].mxu0  ;;  %v9064_v54 = vunpack.c.h.bf16 %v12471_v11  ;;  %v8797_v48 = vsub.s32 6, %v13661_v42 }
 0x780   : > { %9371 = vst [vmem:[%s16068_s26 + $0x290] sm:$0xff] %v9259_v37  ;;  %9362 = vst [vmem:[%s16068_s26 + $0x248] sm:$0xff] %v9250_v22  ;;  %v8937_v39 = vadd.f32 %v16214_v33, %v8758_v27  ;;  %v8928_v29 = vadd.f32 %v16219_v12, %v8395_v47  ;;  %v8760_v24 = vpop.f32.mrb[189].mxu1  ;;  %v8397_v20 = vpop.f32.mrb[46].mxu0  ;;  %v8801_v57 = vsub.s32 7, %v13661_v42  ;;  %v8959_v1 = vunpack.c.l.bf16 %v12472_v32  ;;  %v12473_v41 = vld [vmem:[%s12746_s28 + $0x50] sm:$0xff] }
 0x781   : > { %9372 = vst [vmem:[%s16068_s26 + $0x298] sm:$0xff] %v9260_v50  ;;  %v9151_v36 = vadd.f32 %v9039_v43, %v8927_v13  ;;  %v8938_v52 = vadd.f32 %v16225_v46, %v8760_v24  ;;  %v8941_v14 = vadd.f32 %v16209_v7, %v8397_v20  ;;  %v8762_v4 = vpop.f32.mrb[190].mxu1  ;;  %v8399_v6 = vpop.f32.mrb[47].mxu0  ;;  %v16309_v63 = vrot.slane %v16043_v51, %v8797_v48  ;;  %v12475_v11 = vld [vmem:[%s12746_s28 + $0xc0] sm:$0xff] }
 0x782   : > { %v9161_v19 = vadd.f32 %v9049_v40, %v8937_v39  ;;  %v9152_v23 = vadd.f32 %v9040_v8, %v8928_v29  ;;  %v8951_v34 = vadd.f32 %v16214_v33, %v8762_v4  ;;  %v8942_v25 = vadd.f32 %v16219_v12, %v8399_v6  ;;  %v8764_v61 = vpop.f32.mrb[191].mxu1 }
 0x783   : > { %v9263_v30 = vmax.f32 %v9151_v36, 0.0  ;;  %v9162_v26 = vadd.f32 %v9050_v10, %v8938_v52  ;;  %v9165_v0 = vadd.f32 %v9053_v15, %v8941_v14  ;;  %v8952_v7 = vadd.f32 %v16225_v46, %v8764_v61  ;;  %v12474_v10 = vld [vmem:[%s12746_s28 + $0x88] sm:$0xff] }
 0x784   : > { %v9273_v55 = vmax.f32 %v9161_v19, 0.0  ;;  %v9264_v31 = vmax.f32 %v9152_v23, 0.0  ;;  %v9175_v53 = vadd.f32 %v9063_v38, %v8951_v34  ;;  %v9166_v56 = vadd.f32 %v9054_v59, %v8942_v25 }
 0x785   : > { %9375 = vst [vmem:[%s16068_s26 + $0x2b0] sm:$0xff] %v9263_v30  ;;  %v9274_v33 = vmax.f32 %v9162_v26, 0.0  ;;  %v9277_v2 = vmax.f32 %v9165_v0, 0.0  ;;  %v9176_v12 = vadd.f32 %v9064_v54, %v8952_v7  ;;  %v16312_v45 = vrot.slane %v16043_v51, %v8801_v57  ;;  %v12476_v26 = vld [vmem:[%s12746_s28 + $0xf8] sm:$0xff] }
 0x786   : > { %9385 = vst [vmem:[%s16068_s26 + $0x300] sm:$0xff] %v9273_v55  ;;  %9376 = vst [vmem:[%s16068_s26 + $0x2b8] sm:$0xff] %v9264_v31  ;;  %v9287_v21 = vmax.f32 %v9175_v53, 0.0  ;;  %v9278_v35 = vmax.f32 %v9166_v56, 0.0  ;;  %v8960_v28 = vunpack.c.h.bf16 %v12472_v32  ;;  %v8973_v16 = vunpack.c.l.bf16 %v12473_v41 }
 0x787   : > { %9386 = vst [vmem:[%s16068_s26 + $0x308] sm:$0xff] %v9274_v33  ;;  %9389 = vst [vmem:[%s16068_s26 + $0x320] sm:$0xff] %v9277_v2  ;;  %v9288_v46 = vmax.f32 %v9176_v12, 0.0  ;;  %v8974_v37 = vunpack.c.h.bf16 %v12473_v41  ;;  %v8987_v3 = vunpack.c.l.bf16 %v12474_v10  ;;  %v8988_v29 = vunpack.c.h.bf16 %v12474_v10  ;;  %v12477_v33 = vld [vmem:[%s12746_s28 + $0x130] sm:$0xff] }
 0x788   : > { %9399 = vst [vmem:[%s16068_s26 + $0x370] sm:$0xff] %v9287_v21  ;;  %9390 = vst [vmem:[%s16068_s26 + $0x328] sm:$0xff] %v9278_v35  ;;  %v9001_v38 = vunpack.c.l.bf16 %v12475_v11  ;;  %v9002_v52 = vunpack.c.h.bf16 %v12475_v11  ;;  %v9015_v0 = vunpack.c.l.bf16 %v12476_v26  ;;  %v9016_v31 = vunpack.c.h.bf16 %v12476_v26 }
 0x789   : > { %9400 = vst [vmem:[%s16068_s26 + $0x378] sm:$0xff] %v9288_v46  ;;  %v9029_v2 = vunpack.c.l.bf16 %v12477_v33  ;;  %v9030_v35 = vunpack.c.h.bf16 %v12477_v33 }
 0x797   : > { %v8509_v62 = vpop.f32.mrb[48].mxu0 }
 0x798   : > { %v8847_v17 = vadd.f32 %v16309_v63, %v8509_v62  ;;  %v8511_v9 = vpop.f32.mrb[49].mxu0 }
 0x799   : > { %v8848_v58 = vadd.f32 %v16312_v45, %v8511_v9  ;;  %v8513_v43 = vpop.f32.mrb[50].mxu0 }
 0x79a   : > { %v9071_v22 = vadd.f32 %v8959_v1, %v8847_v17  ;;  %v8861_v51 = vadd.f32 %v16309_v63, %v8513_v43  ;;  %v8515_v60 = vpop.f32.mrb[51].mxu0 }
 0x79b   : > { %v9072_v18 = vadd.f32 %v8960_v28, %v8848_v58  ;;  %v8862_v40 = vadd.f32 %v16312_v45, %v8515_v60 }
 0x79c   : > { %v9183_v8 = vmax.f32 %v9071_v22, 0.0  ;;  %v9085_v50 = vadd.f32 %v8973_v16, %v8861_v51  ;;  %v12478_v16 = vld [vmem:[%s12746_s28 + $0x168] sm:$0xff] }
 0x79d   : > { %v9184_v13 = vmax.f32 %v9072_v18, 0.0  ;;  %v9086_v27 = vadd.f32 %v8974_v37, %v8862_v40  ;;  %v9043_v58 = vunpack.c.l.bf16 %v12478_v16  ;;  %v9044_v22 = vunpack.c.h.bf16 %v12478_v16  ;;  %v12479_v18 = vld [vmem:[%s12746_s28 + $0x1a0] sm:$0xff] }
 0x79e   : > { %9295 = vst [vmem:[%s16068_s26 + $0x30] sm:$0xff] %v9183_v8  ;;  %v9197_v47 = vmax.f32 %v9085_v50, 0.0  ;;  %v9057_v40 = vunpack.c.l.bf16 %v12479_v18 }
 0x79f   : > { %9296 = vst [vmem:[%s16068_s26 + $0x38] sm:$0xff] %v9184_v13  ;;  %v9198_v15 = vmax.f32 %v9086_v27, 0.0  ;;  %v8519_v39 = vpop.f32.mrb[52].mxu0  ;;  %v9058_v13 = vunpack.c.h.bf16 %v12479_v18 }
 0x7a0   : > { %9309 = vst [vmem:[%s16068_s26 + $0xa0] sm:$0xff] %v9197_v47  ;;  %v8875_v24 = vadd.f32 %v16309_v63, %v8519_v39  ;;  %v8521_v20 = vpop.f32.mrb[53].mxu0 }
 0x7a1   : > { %9310 = vst [vmem:[%s16068_s26 + $0xa8] sm:$0xff] %v9198_v15  ;;  %v8876_v59 = vadd.f32 %v16312_v45, %v8521_v20  ;;  %v8523_v36 = vpop.f32.mrb[54].mxu0 }
 0x7a2   : > { %v9099_v14 = vadd.f32 %v8987_v3, %v8875_v24  ;;  %v8889_v4 = vadd.f32 %v16309_v63, %v8523_v36  ;;  %v8525_v6 = vpop.f32.mrb[55].mxu0 }
 0x7a3   : > { %v9100_v54 = vadd.f32 %v8988_v29, %v8876_v59  ;;  %v8890_v19 = vadd.f32 %v16312_v45, %v8525_v6  ;;  %v16356_v59 = vrot.slane %v16108_v5, %v13677_v49 }
 0x7a4   : > { %v9211_v23 = vmax.f32 %v9099_v14, 0.0  ;;  %v9113_v34 = vadd.f32 %v9001_v38, %v8889_v4 }
 0x7a5   : > { %v9212_v25 = vmax.f32 %v9100_v54, 0.0  ;;  %v9114_v61 = vadd.f32 %v9002_v52, %v8890_v19  ;;  %v12481_v54 = vld [vmem:[%s12746_s28 + $0x60] sm:$0xff] }
 0x7a6   : > { %9323 = vst [vmem:[%s16068_s26 + $0x110] sm:$0xff] %v9211_v23  ;;  %v9225_v30 = vmax.f32 %v9113_v34, 0.0  ;;  %v8977_v19 = vunpack.c.l.bf16 %v12481_v54  ;;  %v8978_v34 = vunpack.c.h.bf16 %v12481_v54 }
 0x7a7   : > { %9324 = vst [vmem:[%s16068_s26 + $0x118] sm:$0xff] %v9212_v25  ;;  %v9226_v7 = vmax.f32 %v9114_v61, 0.0  ;;  %v8529_v55 = vpop.f32.mrb[56].mxu0 }
 0x7a8   : > { %9337 = vst [vmem:[%s16068_s26 + $0x180] sm:$0xff] %v9225_v30  ;;  %v8903_v53 = vadd.f32 %v16309_v63, %v8529_v55  ;;  %v8531_v56 = vpop.f32.mrb[57].mxu0 }
 0x7a9   : > { %9338 = vst [vmem:[%s16068_s26 + $0x188] sm:$0xff] %v9226_v7  ;;  %v8904_v12 = vadd.f32 %v16312_v45, %v8531_v56  ;;  %v8533_v21 = vpop.f32.mrb[58].mxu0 }
 0x7aa   : > { %v9127_v46 = vadd.f32 %v9015_v0, %v8903_v53  ;;  %v8917_v48 = vadd.f32 %v16309_v63, %v8533_v21  ;;  %v8535_v57 = vpop.f32.mrb[59].mxu0 }
 0x7ab   : > { %v9128_v32 = vadd.f32 %v9016_v31, %v8904_v12  ;;  %v8918_v1 = vadd.f32 %v16312_v45, %v8535_v57  ;;  %v12482_v31 = vld [vmem:[%s12746_s28 + $0x98] sm:$0xff] }
 0x7ac   : > { %v9239_v62 = vmax.f32 %v9127_v46, 0.0  ;;  %v9141_v28 = vadd.f32 %v9029_v2, %v8917_v48  ;;  %v8991_v53 = vunpack.c.l.bf16 %v12482_v31  ;;  %v8992_v2 = vunpack.c.h.bf16 %v12482_v31 }
 0x7ad   : > { %v9240_v17 = vmax.f32 %v9128_v32, 0.0  ;;  %v9142_v9 = vadd.f32 %v9030_v35, %v8918_v1  ;;  %v12483_v35 = vld [vmem:[%s12746_s28 + $0xd0] sm:$0xff] }
 0x7ae   : > { %9351 = vst [vmem:[%s16068_s26 + $0x1f0] sm:$0xff] %v9239_v62  ;;  %v9253_v41 = vmax.f32 %v9141_v28, 0.0  ;;  %v9005_v46 = vunpack.c.l.bf16 %v12483_v35  ;;  %v9006_v32 = vunpack.c.h.bf16 %v12483_v35 }
 0x7af   : > { %9352 = vst [vmem:[%s16068_s26 + $0x1f8] sm:$0xff] %v9240_v17  ;;  %v9254_v43 = vmax.f32 %v9142_v9, 0.0  ;;  %v8539_v37 = vpop.f32.mrb[60].mxu0 }
 0x7b0   : > { %9365 = vst [vmem:[%s16068_s26 + $0x260] sm:$0xff] %v9253_v41  ;;  %v8931_v51 = vadd.f32 %v16309_v63, %v8539_v37  ;;  %v8541_v60 = vpop.f32.mrb[61].mxu0 }
 0x7b1   : > { %9366 = vst [vmem:[%s16068_s26 + $0x268] sm:$0xff] %v9254_v43  ;;  %v8932_v8 = vadd.f32 %v16312_v45, %v8541_v60  ;;  %v8543_v50 = vpop.f32.mrb[62].mxu0 }
 0x7b2   : > { %v9155_v27 = vadd.f32 %v9043_v58, %v8931_v51  ;;  %v8945_v47 = vadd.f32 %v16309_v63, %v8543_v50  ;;  %v8545_v10 = vpop.f32.mrb[63].mxu0  ;;  %v16361_v63 = vrot.slane %v16108_v5, %v8785_v44 }
 0x7b3   : > { %v9156_v3 = vadd.f32 %v9044_v22, %v8932_v8  ;;  %v8946_v15 = vadd.f32 %v16312_v45, %v8545_v10  ;;  %v12480_v45 = vld [vmem:[%s12746_s28 + $0x28] sm:$0xff] }
 0x7b4   : > { %v9267_v39 = vmax.f32 %v9155_v27, 0.0  ;;  %v9169_v29 = vadd.f32 %v9057_v40, %v8945_v47  ;;  %v8963_v36 = vunpack.c.l.bf16 %v12480_v45  ;;  %v8964_v14 = vunpack.c.h.bf16 %v12480_v45  ;;  %v12484_v22 = vld [vmem:[%s12746_s28 + $0x108] sm:$0xff] }
 0x7b5   : > { %v9268_v24 = vmax.f32 %v9156_v3, 0.0  ;;  %v9170_v20 = vadd.f32 %v9058_v13, %v8946_v15  ;;  %v9019_v51 = vunpack.c.l.bf16 %v12484_v22  ;;  %v9020_v40 = vunpack.c.h.bf16 %v12484_v22  ;;  %v12485_v13 = vld [vmem:[%s12746_s28 + $0x140] sm:$0xff] }
 0x7b6   : > { %9379 = vst [vmem:[%s16068_s26 + $0x2d0] sm:$0xff] %v9267_v39  ;;  %v9281_v11 = vmax.f32 %v9169_v29, 0.0  ;;  %v9033_v27 = vunpack.c.l.bf16 %v12485_v13  ;;  %v9034_v3 = vunpack.c.h.bf16 %v12485_v13 }
 0x7b7   : > { %9380 = vst [vmem:[%s16068_s26 + $0x2d8] sm:$0xff] %v9268_v24  ;;  %v9282_v38 = vmax.f32 %v9170_v20, 0.0 }
 0x7b8   : > { %9393 = vst [vmem:[%s16068_s26 + $0x340] sm:$0xff] %v9281_v11 }
 0x7b9   : > { %9394 = vst [vmem:[%s16068_s26 + $0x348] sm:$0xff] %v9282_v38 }
 0x7c7   : > { %v8655_v52 = vpop.f32.mrb[64].mxu0 }
 0x7c8   : > { %v8851_v4 = vadd.f32 %v16356_v59, %v8655_v52  ;;  %v8657_v6 = vpop.f32.mrb[65].mxu0 }
 0x7c9   : > { %v8852_v23 = vadd.f32 %v16361_v63, %v8657_v6  ;;  %v8659_v49 = vpop.f32.mrb[66].mxu0 }
 0x7ca   : > { %v9075_v42 = vadd.f32 %v8963_v36, %v8851_v4  ;;  %v8865_v5 = vadd.f32 %v16356_v59, %v8659_v49  ;;  %v8661_v44 = vpop.f32.mrb[67].mxu0 }
 0x7cb   : > { %v9076_v25 = vadd.f32 %v8964_v14, %v8852_v23  ;;  %v8866_v61 = vadd.f32 %v16361_v63, %v8661_v44  ;;  %v12486_v14 = vld [vmem:[%s12746_s28 + $0x178] sm:$0xff] }
 0x7cc   : > { %v9187_v30 = vmax.f32 %v9075_v42, 0.0  ;;  %v9089_v26 = vadd.f32 %v8977_v19, %v8865_v5  ;;  %v9047_v4 = vunpack.c.l.bf16 %v12486_v14  ;;  %v9048_v19 = vunpack.c.h.bf16 %v12486_v14 }
 0x7cd   : > { %v9188_v0 = vmax.f32 %v9076_v25, 0.0  ;;  %v9090_v7 = vadd.f32 %v8978_v34, %v8866_v61  ;;  %v12487_v34 = vld [vmem:[%s12746_s28 + $0x1b0] sm:$0xff]  ;;  %s9415_s28 = sshll.u32 %s16068_s26, 4  ;;  %s16407_s28 = int_to_ptr.vmem [resolvable:$true] %s9415_s28 }
 0x7ce   : > { %9299 = vst [vmem:[%s16068_s26 + $0x50] sm:$0xff] %v9187_v30  ;;  %v9201_v55 = vmax.f32 %v9089_v26, 0.0  ;;  %v9061_v42 = vunpack.c.l.bf16 %v12487_v34  ;;  %v9062_v25 = vunpack.c.h.bf16 %v12487_v34  ;;  %s12488_s12 = scalar_lea.vmem %s16407_s28, 14336  ;;  %p12495_p0 = scmp.lt.s32.totalorder %s16407_s28, %s12493_s27 }
 0x7cf   : > { %9300 = vst [vmem:[%s16068_s26 + $0x58] sm:$0xff] %v9188_v0  ;;  %v9202_v56 = vmax.f32 %v9090_v7, 0.0  ;;  %v8665_v33 = vpop.f32.mrb[68].mxu0  ;;  %p12489_p11 = scmp.ne.s32.totalorder %s16407_s28, %s12488_s12  ;;  %p12496_p1 = scmp.lt.s32.totalorder %s12494_s21, %s12488_s12 }
 0x7d0   : > { %9313 = vst [vmem:[%s16068_s26 + $0xc0] sm:$0xff] %v9201_v55  ;;  %v8879_v12 = vadd.f32 %v16356_v59, %v8665_v33  ;;  %v8667_v21 = vpop.f32.mrb[69].mxu0 }
 0x7d1   : > { %9314 = vst [vmem:[%s16068_s26 + $0xc8] sm:$0xff] %v9202_v56  ;;  %v8880_v48 = vadd.f32 %v16361_v63, %v8667_v21  ;;  %v8669_v57 = vpop.f32.mrb[70].mxu0  ;;  %p12490_p12 = pnand %p12489_p11, %p12650_p5  ;;  %p12497_p2 = por %p12496_p1, %p12495_p0 }
 0x7d2   : > { %v9103_v1 = vadd.f32 %v8991_v53, %v8879_v12  ;;  %v8893_v62 = vadd.f32 %v16356_v59, %v8669_v57  ;;  %v8671_v28 = vpop.f32.mrb[71].mxu0 }
 0x7d3   : > { %v9104_v17 = vadd.f32 %v8992_v2, %v8880_v48  ;;  %v8894_v9 = vadd.f32 %v16361_v63, %v8671_v28  ;;  %p12491_p13 = pneg %p12490_p12 }
 0x7d4   : > { %v9215_v41 = vmax.f32 %v9103_v1, 0.0  ;;  %v9117_v16 = vadd.f32 %v9005_v46, %v8893_v62 }
 0x7d5   : > { %v9216_v58 = vmax.f32 %v9104_v17, 0.0  ;;  %v9118_v43 = vadd.f32 %v9006_v32, %v8894_v9  ;;  %p12498_p3 = pnand %p12497_p2, %p12491_p13 }
 0x7d6   : > { %9327 = vst [vmem:[%s16068_s26 + $0x130] sm:$0xff] %v9215_v41  ;;  %v9229_v37 = vmax.f32 %v9117_v16, 0.0 }
 0x7d7   : > { %9328 = vst [vmem:[%s16068_s26 + $0x138] sm:$0xff] %v9216_v58  ;;  %v9230_v60 = vmax.f32 %v9118_v43, 0.0  ;;  %v8675_v18 = vpop.f32.mrb[72].mxu0 }
 0x7d8   : > { %9341 = vst [vmem:[%s16068_s26 + $0x1a0] sm:$0xff] %v9229_v37  ;;  %v8907_v8 = vadd.f32 %v16356_v59, %v8675_v18  ;;  %v8677_v50 = vpop.f32.mrb[73].mxu0 }
 0x7d9   : > { %9342 = vst [vmem:[%s16068_s26 + $0x1a8] sm:$0xff] %v9230_v60  ;;  %v8908_v47 = vadd.f32 %v16361_v63, %v8677_v50  ;;  %v8679_v10 = vpop.f32.mrb[74].mxu0 }
 0x7da   : > { %v9131_v15 = vadd.f32 %v9019_v51, %v8907_v8  ;;  %v8921_v39 = vadd.f32 %v16356_v59, %v8679_v10  ;;  %v8681_v29 = vpop.f32.mrb[75].mxu0 }
 0x7db   : > { %v9132_v24 = vadd.f32 %v9020_v40, %v8908_v47  ;;  %v8922_v20 = vadd.f32 %v16361_v63, %v8681_v29 }
 0x7dc   : > { %v9243_v11 = vmax.f32 %v9131_v15, 0.0  ;;  %v9145_v38 = vadd.f32 %v9033_v27, %v8921_v39 }
 0x7dd   : > { %v9244_v45 = vmax.f32 %v9132_v24, 0.0  ;;  %v9146_v36 = vadd.f32 %v9034_v3, %v8922_v20 }
 0x7de   : > { %9355 = vst [vmem:[%s16068_s26 + $0x210] sm:$0xff] %v9243_v11  ;;  %v9257_v52 = vmax.f32 %v9145_v38, 0.0 }
 0x7df   : > { %9356 = vst [vmem:[%s16068_s26 + $0x218] sm:$0xff] %v9244_v45  ;;  %v9258_v6 = vmax.f32 %v9146_v36, 0.0  ;;  %v8685_v54 = vpop.f32.mrb[76].mxu0 }
 0x7e0   : > { %9369 = vst [vmem:[%s16068_s26 + $0x280] sm:$0xff] %v9257_v52  ;;  %v8935_v23 = vadd.f32 %v16356_v59, %v8685_v54  ;;  %v8687_v49 = vpop.f32.mrb[77].mxu0 }
 0x7e1   : > { %9370 = vst [vmem:[%s16068_s26 + $0x288] sm:$0xff] %v9258_v6  ;;  %v8936_v5 = vadd.f32 %v16361_v63, %v8687_v49  ;;  %v8689_v44 = vpop.f32.mrb[78].mxu0 }
 0x7e2   : > { %v9159_v61 = vadd.f32 %v9047_v4, %v8935_v23  ;;  %v8949_v30 = vadd.f32 %v16356_v59, %v8689_v44  ;;  %v8691_v26 = vpop.f32.mrb[79].mxu0 }
 0x7e3   : > { %v9160_v0 = vadd.f32 %v9048_v19, %v8936_v5  ;;  %v8950_v7 = vadd.f32 %v16361_v63, %v8691_v26 }
 0x7e4   : > { %v9271_v55 = vmax.f32 %v9159_v61, 0.0  ;;  %v9173_v31 = vadd.f32 %v9061_v42, %v8949_v30 }
 0x7e5   : > { %v9272_v53 = vmax.f32 %v9160_v0, 0.0  ;;  %v9174_v56 = vadd.f32 %v9062_v25, %v8950_v7 }
 0x7e6   : > { %9383 = vst [vmem:[%s16068_s26 + $0x2f0] sm:$0xff] %v9271_v55  ;;  %v9285_v33 = vmax.f32 %v9173_v31, 0.0 }
 0x7e7   : > { %9384 = vst [vmem:[%s16068_s26 + $0x2f8] sm:$0xff] %v9272_v53  ;;  %v9286_v59 = vmax.f32 %v9174_v56, 0.0 }
 0x7e8   : > { %9397 = vst [vmem:[%s16068_s26 + $0x360] sm:$0xff] %v9285_v33 }
 0x7e9   : > { %9398 = vst [vmem:[%s16068_s26 + $0x368] sm:$0xff] %v9286_v59 }
 0x7ea   : > { %12501 = shalt.err (!%p12498_p3)
}
 0x7eb   : > { %s12502_s20 = scalar_lea.hbm %s16405_s11, 14336  ;;  %s12506_s25 = scalar_lea.hbm %s16465_s10, 28672 }
 0x7ec   : > { %p12503_p4 = scmp.ne.s32.totalorder %s16405_s11, %s12502_s20  ;;  %p12507_p9 = scmp.lt.u32.totalorder %s16405_s11, %s16465_s10 }
 0x7ed   : > { %p12508_p10 = scmp.lt.u32.totalorder %s12506_s25, %s12502_s20  ;;  %p12510_p12 = scmp.lt.u32.totalorder %s12502_s20, %s16405_s11 }
 0x7ee   : > { %p12504_p7 = pnand %p12503_p4, %p12650_p5 }
 0x7ef   : > { %p12509_p11 = por %p12508_p10, %p12507_p9 }
 0x7f0   : > { %p12505_p8 = pneg %p12504_p7 }
 0x7f1   : > { %p12511_p13 = por %p12510_p12, %p12509_p11 }
 0x7f3   : > { %p12512_p0 = pnand %p12511_p13, %p12505_p8 }
 0x7f5   : > { %12515 = shalt.err (!%p12512_p0)
}
 0x7f6   : > { %s12555_s12 = smov 1792   ;;  %s12556_s18 = smov 112  }
 0x7f7   : > { %11124 = dma.vmem_to_hbm [thread:$0]  (%p12650_p5), %s16407_s28, 14336, %s16405_s11, %s16414_s17, %s12555_s12, %s12555_s12, %s12556_s18  }
 0x7f8 PF: > { %p11130_p1 = scmp.ge.s32.totalorder %s12550_s16, 2  ;;  %s9430_s27 = sand.u32 1, %s12538_s13  }
 0x7f9   : > { %s9431_s21 = scalar_lea.sflag [#allocation3], %s9430_s27 }
 0x7fa   : > { %p11127_p2 = pnand %p11130_p1, %p12654_p6 }
 0x7fc   : > { %12533 = dma.done.wait (!%p11127_p2), %s9431_s21, 14336  }
 0x7fd   : > { %12535 = vsyncadd (!%p11127_p2), %s9431_s21, 4294952960  ;;  %s16471_s20 = sld [smem:[#allocation5_spill]]  ;;  %p20_p3 = scmp.ge.s32.totalorder %s12637_s19, 4  }
 0x7fe   : > { %s16472_s13 = smov %s12542_s14  ;;  %s16473_s14 = smov %s12546_s15 }
 0x7ff   : > { %s16475_s16 = smov %s12637_s19  ;;  %22 = sbr.rel (!%p20_p3) target bundleno = 3 (0x3), region = 99 }
 0x803   : > { %s16474_s15 = smov %s16471_s20 }
 0x806   :  { %9436 = vsyncpa [#allocation3], 1 }
 0x807   :  { %9438 = vsyncpa [#allocation3 + $0x1], 1 }

</bundles_post_ra>
